<compile_context>
chip_gen: v7x
topology: tpu7x:2x2x1
jax: 0.10.0
libtpu: 0.0.40
codegen_flags: <defaults>
</compile_context>

<pallas_src>
import functools

import jax
import jax.numpy as jnp
from jax import lax
from jax.experimental import pallas as pl
from jax.experimental.pallas import tpu as pltpu

# ---- scaled-down sizes (module defaults are huge; the structure is identical) ----
N = 16          # total nodes in the batch
B = 2           # graphs in batch (N // B nodes each)
P = 2           # position dim used by radius_graph
F_IN = 1024     # node input features     (module: 16928)
TK = 512        # K tile for the lin01 matmul (review: >=512 for DMA efficiency)
H1 = 256        # lin01 hidden            (module: 2048)
HEADS = 8       # GAT heads               (module: 16)
CDIM = 32       # GAT per-head channels   (module: 128);  HEADS*CDIM == H1
HC = HEADS * CDIM
LAYERS = 3      # graph blocks            (module: 3)
D2 = 128        # lin2 hidden             (module: 1024)
A2_D = 8        # args.A2_D
RADIUS = 4.0
BN_EPS = 0.2


# ---------------------------------- fused kernel ----------------------------------
def fused_kernel(x_ref, w1_ref, scale1_ref, shift1_ref,
                 pos_ref, post_ref, bcol_ref, brow_ref,
                 wg_hbm_ref, asrc_ref, adst_ref, hsel_ref, biasg_ref,
                 w2_ref, scale2_ref, shift2_ref, w3_ref, b3_ref,
                 o_ref, acc_ref, wg_vmem, wg_sem,
                 *, heads, cdim, layers, radius, num_graphs):
    k = pl.program_id(0)

    @pl.when(k == 0)
    def _():
        acc_ref[...] = jnp.zeros_like(acc_ref)
        # epilogue-weight prefetch: overlap wg's HBM->VMEM DMA with the whole K reduction
        pltpu.make_async_copy(wg_hbm_ref, wg_vmem, wg_sem).start()

    # lin01 matmul, K-tiled over the grid: bf16 weights straight from HBM, f32 accumulation.
    acc_ref[...] += jnp.dot(x_ref[...].astype(jnp.bfloat16), w1_ref[...],
                            preferred_element_type=jnp.float32)

    @pl.when(k == pl.num_programs(0) - 1)
    def _():
        n = acc_ref.shape[0]

        # lin01 epilogue: LeakyReLU(0.01) -> BatchNorm1d(eval, folded) -> Dropout(identity)
        y = acc_ref[...]
        y = jnp.where(y > 0, y, 0.01 * y)
        x_cur = y * scale1_ref[...] + shift1_ref[...]

        # ------- radius_graph(pos, r, batch): VPU broadcast differences, int graph ids -------
        d2 = jnp.zeros((n, n), jnp.float32)
        for d in range(pos_ref.shape[1]):
            diff = pos_ref[:, d:d + 1] - post_ref[d:d + 1, :]
            d2 = d2 + diff * diff
        same = bcol_ref[...] == brow_ref[...]                 # (N, N) same-graph mask
        # GATConv(add_self_loops=True): the diagonal (d2 == 0, same graph) stays in the support.
        adj = (d2 <= radius * radius) & same
        adj_f = adj.astype(jnp.float32)
        adj3 = adj[None, :, :]
        adj3_f = adj_f[None, :, :]

        # per-node GraphSizeNorm factor 1 / sqrt(|G(i)|)
        n_nodes = jnp.sum(same.astype(jnp.float32), axis=1, keepdims=True)    # (N, 1)
        gn = 1.0 / jnp.sqrt(n_nodes)

        dn_bt = (((1,), (1,)), ((), ()))                      # contract feature dims (A @ B.T)
        dn_head = (((2,), (1,)), ((0,), (0,)))                # batch over heads, contract nodes

        # wg prefetch (started at k == 0) must have landed before the first GAT matmul
        pltpu.make_async_copy(wg_hbm_ref, wg_vmem, wg_sem).wait()

        # ------- layers x Graph_Block: GATConv(heads, concat) -> ReLU -> GraphSizeNorm -------
        for l in range(layers):
            h = jnp.dot(x_cur.astype(jnp.bfloat16), wg_vmem[l],
                        preferred_element_type=jnp.float32)                   # (N, heads*cdim)
            # attention terms for ALL heads at once (lane-dense, head-selection matrices)
            a_dst = lax.dot_general(adst_ref[l], h, dn_bt,
                                    preferred_element_type=jnp.float32)       # (heads, N)
            a_src = lax.dot_general(asrc_ref[l], h, dn_bt,
                                    preferred_element_type=jnp.float32)       # (heads, N)
            # e[hd, i, j] = a_dst[hd, i] + a_src[hd, j]   (i = target, j = source)
            e = a_dst[:, :, None] + a_src[:, None, :]                         # (heads, N, N)
            e = jnp.where(e > 0, e, 0.2 * e)                                  # LeakyReLU(0.2)
            e = jnp.where(adj3, e, -1e30)                                     # mask non-edges (f32)
            m = jnp.max(e, axis=-1, keepdims=True)
            p_ = jnp.exp(e - m) * adj3_f
            denom = jnp.sum(p_, axis=-1, keepdims=True)
            attn = p_ * jnp.where(denom > 0.0, 1.0 / denom, 0.0)              # (heads, N, N)
            # batched aggregation: head-masked rhs keeps each head's output in its own column
            # block, so one batched dot_general + a sum over heads yields the lane-dense (N, HC)
            # slab directly (no per-head 32-lane slice stores, no lane reshapes).
            h_m = h[None, :, :] * hsel_ref[...]                               # (heads, N, HC)
            agg = lax.dot_general(attn, h_m, dn_head,
                                  preferred_element_type=jnp.float32)         # (heads, N, HC)
            g = jnp.sum(agg, axis=0)                                          # (N, HC)
            # GAT bias + outer ReLU + GraphSizeNorm, one lane-dense pass over the full slab
            x_cur = jnp.maximum(g + biasg_ref[l], 0.0) * gn

        # ------- pool: global mean pool per graph (GATTP_1 approximation, see TODO) -------
        gid = lax.broadcasted_iota(jnp.int32, (num_graphs, n), 0)
        onehot = (gid == brow_ref[...]).astype(jnp.float32)                   # (B, N)
        counts = jnp.sum(onehot, axis=1, keepdims=True)
        pooled = jnp.dot(onehot, x_cur, preferred_element_type=jnp.float32)
        pooled = pooled * jnp.where(counts > 0, 1.0 / counts, 0.0)

        # ------- lin2: Dropout(id) -> Linear -> ReLU -> BN(eval) ; lin3: Linear + bias -------
        y2 = jnp.dot(pooled.astype(jnp.bfloat16), w2_ref[...],
                     preferred_element_type=jnp.float32)
        y2 = jnp.maximum(y2, 0.0) * scale2_ref[...] + shift2_ref[...]
        o_ref[...] = jnp.dot(y2.astype(jnp.bfloat16), w3_ref[...],
                             preferred_element_type=jnp.float32) + b3_ref[...]


# ------------------------------ pallas_call plumbing ------------------------------
def _const(shape):
    """Grid-invariant block: fetched once, single-buffered (saves one full copy of VMEM vs the
    default double buffer; the reclaimed space funds the larger TK — decisive on v7x 64 MiB)."""
    nd = len(shape)
    imap = lambda k, _nd=nd: (0,) * _nd
    if hasattr(pl, "Buffered"):
        try:
            return pl.BlockSpec(shape, imap, pipeline_mode=pl.Buffered(1))
        except TypeError:   # older jax without pipeline_mode: fall back to default buffering
            pass
    return pl.BlockSpec(shape, imap)


def forward(x, pos, batch_i, p):
    """x: (N, F_IN) f32, pos: (N, P) f32, batch_i: (N, 1) int32 graph ids."""
    pos_t = pos.T                              # (P, N)  host-side transposes (cheap data prep,
    batch_row = batch_i.reshape(1, N)          # (1, N)  avoids in-kernel XLU transposes)

    kernel = functools.partial(fused_kernel, heads=HEADS, cdim=CDIM, layers=LAYERS,
                               radius=RADIUS, num_graphs=B)

    inputs = (x, p["w1"], p["scale1"], p["shift1"], pos, pos_t, batch_i, batch_row,
              p["wg"], p["asrc"], p["adst"], p["hsel"], p["biasg"],
              p["w2"], p["scale2"], p["shift2"], p["w3"], p["b3"])

    in_specs = (
        [pl.BlockSpec((N, TK), lambda k: (0, k)),      # x   : K-tiled (double-buffered)
         pl.BlockSpec((TK, H1), lambda k: (k, 0))]     # w1  : K-tiled, bf16 (huge at module scale)
        + [_const(a.shape) for a in inputs[2:8]]       # lin01 epilogue / graph-structure constants
        + [pl.BlockSpec(memory_space=pl.ANY)]          # wg  : raw HBM ref, prefetched manually
        + [_const(a.shape) for a in inputs[9:]]        # attention params + lin2/lin3 weights
    )

    flops = (2 * N * F_IN * H1
             + LAYERS * (2 * N * H1 * HC + 2 * 2 * HEADS * N * HC
                         + 2 * HEADS * N * N * HC + 10 * HEADS * N * N)
             + 2 * B * N * HC + 2 * B * HC * D2 + 2 * B * D2 * A2_D)
    # bytes_accessed uses the real per-array itemsize (bf16 weights = 2 B/elem).
    bytes_accessed = sum(int(a.size) * int(a.dtype.itemsize) for a in inputs) + B * A2_D * 4
    cost = pl.CostEstimate(flops=int(flops),
                           transcendentals=int(LAYERS * HEADS * N * N),
                           bytes_accessed=int(bytes_accessed))

    out = pl.pallas_call(
        kernel,
        out_shape=jax.ShapeDtypeStruct((B, A2_D), jnp.float32),
        grid_spec=pltpu.PrefetchScalarGridSpec(
            num_scalar_prefetch=0,
            grid=(F_IN // TK,),
            in_specs=in_specs,
            out_specs=pl.BlockSpec((B, A2_D), lambda k: (0, 0)),
            scratch_shapes=[pltpu.VMEM((N, H1), jnp.float32),            # lin01 accumulator
                            pltpu.VMEM((LAYERS, H1, HC), jnp.bfloat16),  # prefetched GAT weights
                            pltpu.SemaphoreType.DMA(())],                # wg prefetch semaphore
        ),
        compiler_params=pltpu.CompilerParams(
            dimension_semantics=("arbitrary",),                  # K is a reduction axis
            # 48 MB scoped VMEM: headroom on v7x's 64 MiB; v5e/v6e (128 MiB) could go higher.
            vmem_limit_bytes=48 * 1024 * 1024),
        cost_estimate=cost,
    )(*inputs)
    return {"A2": out}


# ------------------------------- pure-JAX reference -------------------------------
def reference(x, pos, batch_i, p):
    hp = lax.Precision.HIGHEST

    def bf_mm(a, b):  # mirrors the kernel's bf16-weight / f32-accumulate MXU matmuls
        return jnp.dot(a.astype(jnp.bfloat16), b, preferred_element_type=jnp.float32)

    y = bf_mm(x, p["w1"])
    y = jnp.where(y > 0, y, 0.01 * y)
    x_cur = y * p["scale1"] + p["shift1"]

    d2 = jnp.sum((pos[:, None, :] - pos[None, :, :]) ** 2, axis=-1)
    same = batch_i == batch_i.T
    adj = (d2 <= RADIUS * RADIUS) & same                 # diagonal kept: GATConv self-loops
    adj_f = adj.astype(jnp.float32)
    gn = 1.0 / jnp.sqrt(jnp.sum(same.astype(jnp.float32), axis=1, keepdims=True))

    for l in range(LAYERS):
        h = bf_mm(x_cur, p["wg"][l])
        outs = []
        for hd in range(HEADS):
            s = hd * CDIM
            hh = h[:, s:s + CDIM]
            a_s = jnp.sum(hh * p["asrc_vec"][l, s:s + CDIM][None, :], axis=1, keepdims=True)
            a_d = jnp.sum(hh * p["adst_vec"][l, s:s + CDIM][None, :], axis=1, keepdims=True)
            e = a_d + a_s.T
            e = jnp.where(e > 0, e, 0.2 * e)
            e = jnp.where(adj, e, -1e30)
            m = jnp.max(e, axis=1, keepdims=True)
            pr = jnp.exp(e - m) * adj_f
            den = jnp.sum(pr, axis=1, keepdims=True)
            attn = pr * jnp.where(den > 0, 1.0 / den, 0.0)
            outs.append(jnp.dot(attn, hh, precision=hp))
        g = jnp.concatenate(outs, axis=1) + p["biasg"][l]
        x_cur = jnp.maximum(g, 0.0) * gn

    gid = jnp.arange(B, dtype=jnp.int32)[:, None]
    onehot = (gid == batch_i.T).astype(jnp.float32)
    counts = jnp.sum(onehot, axis=1, keepdims=True)
    pooled = jnp.dot(onehot, x_cur, precision=hp) / counts
    y2 = jnp.maximum(bf_mm(pooled, p["w2"]), 0.0) * p["scale2"] + p["shift2"]
    return bf_mm(y2, p["w3"]) + p["b3"]


# --------------------------------- params / main ----------------------------------
def make_params(key):
    ks = jax.random.split(key, 16)

    def bn_fold(kg, kb, km, kv, dim):
        gamma = 1.0 + 0.1 * jax.random.normal(kg, (dim,), jnp.float32)
        beta = 0.1 * jax.random.normal(kb, (dim,), jnp.float32)
        rmean = 0.1 * jax.random.normal(km, (dim,), jnp.float32)
        rvar = 1.0 + 0.5 * jax.random.uniform(kv, (dim,), jnp.float32)
        scale = gamma / jnp.sqrt(rvar + BN_EPS)
        shift = beta - rmean * scale
        return scale[None, :], shift[None, :]

    scale1, shift1 = bn_fold(ks[1], ks[2], ks[3], ks[4], H1)
    scale2, shift2 = bn_fold(ks[10], ks[11], ks[12], ks[13], D2)

    asrc_vec = jax.random.normal(ks[6], (LAYERS, HC), jnp.float32) / jnp.sqrt(CDIM)
    adst_vec = jax.random.normal(ks[7], (LAYERS, HC), jnp.float32) / jnp.sqrt(CDIM)
    # head-major selection matrices: sel[h, d] = 1 iff feature d belongs to head h, so a single
    # (heads,HC) x (N,HC)^T dot yields the per-head attention terms for every head at once.
    sel = (jnp.arange(HEADS)[:, None] == (jnp.arange(HC)[None, :] // CDIM)).astype(jnp.float32)
    asrc = asrc_vec[:, None, :] * sel[None, :, :]            # (LAYERS, HEADS, HC)
    adst = adst_vec[:, None, :] * sel[None, :, :]

    # weights stored bf16 on the host (review: halves HBM traffic of the bandwidth-bound
    # matmuls and removes every in-kernel weight cast)
    w1 = (jax.random.normal(ks[0], (F_IN, H1), jnp.float32) / jnp.sqrt(F_IN)).astype(jnp.bfloat16)
    wg = (jax.random.normal(ks[5], (LAYERS, H1, HC), jnp.float32) / jnp.sqrt(H1)).astype(jnp.bfloat16)
    w2 = (jax.random.normal(ks[9], (HC, D2), jnp.float32) / jnp.sqrt(HC)).astype(jnp.bfloat16)
    w3 = (jax.random.normal(ks[14], (D2, A2_D), jnp.float32) / jnp.sqrt(D2)).astype(jnp.bfloat16)

    return {
        "w1": w1,
        "scale1": scale1, "shift1": shift1,
        "wg": wg,
        "asrc_vec": asrc_vec, "adst_vec": adst_vec,
        "asrc": asrc, "adst": adst,
        "hsel": sel[:, None, :],                              # (HEADS, 1, HC) head column mask
        "biasg": 0.1 * jax.random.normal(ks[8], (LAYERS, 1, HC), jnp.float32),
        "w2": w2,
        "scale2": scale2, "shift2": shift2,
        "w3": w3,
        "b3": 0.1 * jax.random.normal(ks[15], (1, A2_D), jnp.float32),
    }


if __name__ == "__main__":
    key = jax.random.PRNGKey(0)
    kx, kp, kparam = jax.random.split(key, 3)

    # data.x, data.pos, data.batch
    x = jax.random.normal(kx, (N, F_IN), jnp.float32)
    pos = jax.random.uniform(kp, (N, P), jnp.float32, minval=0.0, maxval=6.0)
    batch_i = jnp.repeat(jnp.arange(B, dtype=jnp.int32), N // B)[:, None]   # (N, 1) graph ids

    params = make_params(kparam)

    out = forward(x, pos, batch_i, params)
    a2 = jax.block_until_ready(out["A2"])

    ref = reference(x, pos, batch_i, params)
    assert a2.shape == (B, A2_D)
    assert bool(jnp.all(jnp.isfinite(a2)))
    err = float(jnp.max(jnp.abs(a2 - ref)))
    assert err < 5e-2, f"mismatch vs pure-JAX reference: {err}"
    print("KERNEL_OK")
</pallas_src>

<mosaic_0001>
module attributes {stable_mosaic.version = 11 : i64} {
  func.func @fused_kernel(%arg0: i32, %arg1: memref<16x512xf32, #tpu.memory_space<vmem>>, %arg2: memref<512x256xbf16, #tpu.memory_space<vmem>>, %arg3: memref<1x256xf32, #tpu.memory_space<vmem>>, %arg4: memref<1x256xf32, #tpu.memory_space<vmem>>, %arg5: memref<16x2xf32, #tpu.memory_space<vmem>>, %arg6: memref<2x16xf32, #tpu.memory_space<vmem>>, %arg7: memref<16x1xi32, #tpu.memory_space<vmem>>, %arg8: memref<1x16xi32, #tpu.memory_space<vmem>>, %arg9: memref<3x256x256xbf16, #tpu.memory_space<any>>, %arg10: memref<3x8x256xf32, #tpu.memory_space<vmem>>, %arg11: memref<3x8x256xf32, #tpu.memory_space<vmem>>, %arg12: memref<8x1x256xf32, #tpu.memory_space<vmem>>, %arg13: memref<3x1x256xf32, #tpu.memory_space<vmem>>, %arg14: memref<256x128xbf16, #tpu.memory_space<vmem>>, %arg15: memref<1x128xf32, #tpu.memory_space<vmem>>, %arg16: memref<1x128xf32, #tpu.memory_space<vmem>>, %arg17: memref<128x8xbf16, #tpu.memory_space<vmem>>, %arg18: memref<1x8xf32, #tpu.memory_space<vmem>>, %arg19: memref<2x8xf32, #tpu.memory_space<vmem>>, %arg20: memref<16x256xf32, #tpu.memory_space<vmem>>, %arg21: memref<3x256x256xbf16, #tpu.memory_space<vmem>>, %arg22: memref<!tpu.dma_semaphore, #tpu.memory_space<semaphore_mem>>) attributes {dimension_semantics = [#tpu.dimension_semantics<arbitrary>], iteration_bounds = array<i64: 2>, scalar_prefetch = 0 : i64, scratch_operands = 3 : i64, tpu.core_type = #tpu.core_type<tc>, window_params = [{transform_indices = @transform_0, window_bounds = array<i64: 16, 512>}, {transform_indices = @transform_1, window_bounds = array<i64: 512, 256>}, {pipeline_mode = #tpu.pipeline_mode<synchronous>, transform_indices = @transform_2, window_bounds = array<i64: 1, 256>}, {pipeline_mode = #tpu.pipeline_mode<synchronous>, transform_indices = @transform_3, window_bounds = array<i64: 1, 256>}, {pipeline_mode = #tpu.pipeline_mode<synchronous>, transform_indices = @transform_4, window_bounds = array<i64: 16, 2>}, {pipeline_mode = #tpu.pipeline_mode<synchronous>, transform_indices = @transform_5, window_bounds = array<i64: 2, 16>}, {pipeline_mode = #tpu.pipeline_mode<synchronous>, transform_indices = @transform_6, window_bounds = array<i64: 16, 1>}, {pipeline_mode = #tpu.pipeline_mode<synchronous>, transform_indices = @transform_7, window_bounds = array<i64: 1, 16>}, {}, {pipeline_mode = #tpu.pipeline_mode<synchronous>, transform_indices = @transform_9, window_bounds = array<i64: 3, 8, 256>}, {pipeline_mode = #tpu.pipeline_mode<synchronous>, transform_indices = @transform_10, window_bounds = array<i64: 3, 8, 256>}, {pipeline_mode = #tpu.pipeline_mode<synchronous>, transform_indices = @transform_11, window_bounds = array<i64: 8, 1, 256>}, {pipeline_mode = #tpu.pipeline_mode<synchronous>, transform_indices = @transform_12, window_bounds = array<i64: 3, 1, 256>}, {pipeline_mode = #tpu.pipeline_mode<synchronous>, transform_indices = @transform_13, window_bounds = array<i64: 256, 128>}, {pipeline_mode = #tpu.pipeline_mode<synchronous>, transform_indices = @transform_14, window_bounds = array<i64: 1, 128>}, {pipeline_mode = #tpu.pipeline_mode<synchronous>, transform_indices = @transform_15, window_bounds = array<i64: 1, 128>}, {pipeline_mode = #tpu.pipeline_mode<synchronous>, transform_indices = @transform_16, window_bounds = array<i64: 128, 8>}, {pipeline_mode = #tpu.pipeline_mode<synchronous>, transform_indices = @transform_17, window_bounds = array<i64: 1, 8>}, {pipeline_mode = #tpu.pipeline_mode<synchronous>, transform_indices = @transform_18, window_bounds = array<i64: 2, 8>}]} {
    %c0_i32 = arith.constant 0 : i32
    %0 = arith.cmpi eq, %arg0, %c0_i32 : i32
    %1 = arith.extui %0 : i1 to i32
    %c0_i32_0 = arith.constant 0 : i32
    %2 = arith.cmpi ne, %1, %c0_i32_0 : i32
    scf.if %2 {
      %cst_9 = arith.constant 0.000000e+00 : f32
      %13 = vector.broadcast %cst_9 : f32 to vector<16x256xf32>
      %c0_10 = arith.constant 0 : index
      %c0_11 = arith.constant 0 : index
      %14 = vector.load %arg20[%c0_10, %c0_11] : memref<16x256xf32, #tpu.memory_space<vmem>>, vector<16x256xf32>
      tpu.vector_store %arg20[%c0_10, %c0_11], %13 {strides = array<i32>} : memref<16x256xf32, #tpu.memory_space<vmem>>, vector<16x256xf32>,
      tpu.enqueue_dma source(%arg9 : memref<3x256x256xbf16, #tpu.memory_space<any>>) target(%arg21 : memref<3x256x256xbf16, #tpu.memory_space<vmem>>) target_semaphore(%arg22 : memref<!tpu.dma_semaphore, #tpu.memory_space<semaphore_mem>>)
    } else {
    }
    %c0 = arith.constant 0 : index
    %c0_1 = arith.constant 0 : index
    %3 = vector.load %arg20[%c0, %c0_1] : memref<16x256xf32, #tpu.memory_space<vmem>>, vector<16x256xf32>
    %c0_2 = arith.constant 0 : index
    %c0_3 = arith.constant 0 : index
    %4 = vector.load %arg1[%c0_2, %c0_3] : memref<16x512xf32, #tpu.memory_space<vmem>>, vector<16x512xf32>
    %5 = arith.truncf %4 : vector<16x512xf32> to vector<16x512xbf16>
    %c0_4 = arith.constant 0 : index
    %c0_5 = arith.constant 0 : index
    %6 = vector.load %arg2[%c0_4, %c0_5] : memref<512x256xbf16, #tpu.memory_space<vmem>>, vector<512x256xbf16>
    %cst = arith.constant dense<0.000000e+00> : vector<16x256xf32>
    %7 = tpu.matmul %5, %6, %cst {dimension_numbers = #tpu.dot_dimension_numbers<[1], [0], [0], [1], [0, 0, 1, 1], [], []>} : vector<16x512xbf16>, vector<512x256xbf16>, vector<16x256xf32> -> vector<16x256xf32>
    %8 = arith.addf %3, %7 : vector<16x256xf32>
    %c0_6 = arith.constant 0 : index
    %c0_7 = arith.constant 0 : index
    %9 = vector.load %arg20[%c0_6, %c0_7] : memref<16x256xf32, #tpu.memory_space<vmem>>, vector<16x256xf32>
    tpu.vector_store %arg20[%c0_6, %c0_7], %8 {strides = array<i32>} : memref<16x256xf32, #tpu.memory_space<vmem>>, vector<16x256xf32>,
    %c1_i32 = arith.constant 1 : i32
    %10 = arith.cmpi eq, %arg0, %c1_i32 : i32
    %11 = arith.extui %10 : i1 to i32
    %c0_i32_8 = arith.constant 0 : i32
    %12 = arith.cmpi ne, %11, %c0_i32_8 : i32
    scf.if %12 {
      %c0_9 = arith.constant 0 : index
      %c0_10 = arith.constant 0 : index
      %13 = vector.load %arg20[%c0_9, %c0_10] : memref<16x256xf32, #tpu.memory_space<vmem>>, vector<16x256xf32>
      %cst_11 = arith.constant 0.000000e+00 : f32
      %14 = vector.broadcast %cst_11 : f32 to vector<16x256xf32>
      %15 = arith.cmpf ogt, %13, %14 : vector<16x256xf32>
      %cst_12 = arith.constant 0.00999999977 : f32
      %16 = vector.broadcast %cst_12 : f32 to vector<16x256xf32>
      %17 = arith.mulf %16, %13 : vector<16x256xf32>
      %18 = arith.select %15, %13, %17 : vector<16x256xi1>, vector<16x256xf32>
      %c0_13 = arith.constant 0 : index
      %c0_14 = arith.constant 0 : index
      %19 = vector.load %arg3[%c0_13, %c0_14] : memref<1x256xf32, #tpu.memory_space<vmem>>, vector<1x256xf32>
      %20 = vector.broadcast %19 : vector<1x256xf32> to vector<16x256xf32>
      %21 = arith.mulf %18, %20 : vector<16x256xf32>
      %c0_15 = arith.constant 0 : index
      %c0_16 = arith.constant 0 : index
      %22 = vector.load %arg4[%c0_15, %c0_16] : memref<1x256xf32, #tpu.memory_space<vmem>>, vector<1x256xf32>
      %23 = vector.broadcast %22 : vector<1x256xf32> to vector<16x256xf32>
      %24 = arith.addf %21, %23 : vector<16x256xf32>
      %cst_17 = arith.constant 0.000000e+00 : f32
      %25 = vector.broadcast %cst_17 : f32 to vector<16x16xf32>
      %c0_18 = arith.constant 0 : index
      %c0_19 = arith.constant 0 : index
      %26 = vector.load %arg5[%c0_18, %c0_19] : memref<16x2xf32, #tpu.memory_space<vmem>>, vector<16x1xf32>
      %c0_20 = arith.constant 0 : index
      %c0_21 = arith.constant 0 : index
      %27 = vector.load %arg6[%c0_20, %c0_21] : memref<2x16xf32, #tpu.memory_space<vmem>>, vector<1x16xf32>
      %28 = vector.broadcast %26 : vector<16x1xf32> to vector<16x16xf32>
      %29 = vector.broadcast %27 : vector<1x16xf32> to vector<16x16xf32>
      %30 = arith.subf %28, %29 : vector<16x16xf32>
      %31 = arith.mulf %30, %30 : vector<16x16xf32>
      %32 = arith.addf %25, %31 : vector<16x16xf32>
      %c0_22 = arith.constant 0 : index
      %c1 = arith.constant 1 : index
      %33 = vector.load %arg5[%c0_22, %c1] : memref<16x2xf32, #tpu.memory_space<vmem>>, vector<16x1xf32>
      %c1_23 = arith.constant 1 : index
      %c0_24 = arith.constant 0 : index
      %34 = vector.load %arg6[%c1_23, %c0_24] : memref<2x16xf32, #tpu.memory_space<vmem>>, vector<1x16xf32>
      %35 = vector.broadcast %33 : vector<16x1xf32> to vector<16x16xf32>
      %36 = vector.broadcast %34 : vector<1x16xf32> to vector<16x16xf32>
      %37 = arith.subf %35, %36 : vector<16x16xf32>
      %38 = arith.mulf %37, %37 : vector<16x16xf32>
      %39 = arith.addf %32, %38 : vector<16x16xf32>
      %c0_25 = arith.constant 0 : index
      %c0_26 = arith.constant 0 : index
      %40 = vector.load %arg7[%c0_25, %c0_26] : memref<16x1xi32, #tpu.memory_space<vmem>>, vector<16x1xi32>
      %c0_27 = arith.constant 0 : index
      %c0_28 = arith.constant 0 : index
      %41 = vector.load %arg8[%c0_27, %c0_28] : memref<1x16xi32, #tpu.memory_space<vmem>>, vector<1x16xi32>
      %42 = vector.broadcast %40 : vector<16x1xi32> to vector<16x16xi32>
      %43 = vector.broadcast %41 : vector<1x16xi32> to vector<16x16xi32>
      %44 = arith.cmpi eq, %42, %43 : vector<16x16xi32>
      %cst_29 = arith.constant 1.600000e+01 : f32
      %45 = vector.broadcast %cst_29 : f32 to vector<16x16xf32>
      %46 = arith.cmpf ole, %39, %45 : vector<16x16xf32>
      %47 = arith.andi %46, %44 : vector<16x16xi1>
      %48 = arith.extui %47 : vector<16x16xi1> to vector<16x16xi32>
      %49 = arith.sitofp %48 : vector<16x16xi32> to vector<16x16xf32>
      %50 = vector.shape_cast %47 : vector<16x16xi1> to vector<1x16x16xi1>
      %51 = vector.shape_cast %49 : vector<16x16xf32> to vector<1x16x16xf32>
      %52 = arith.extui %44 : vector<16x16xi1> to vector<16x16xi32>
      %53 = arith.sitofp %52 : vector<16x16xi32> to vector<16x16xf32>
      %cst_30 = arith.constant dense<0.000000e+00> : vector<16xf32>
      %54 = vector.multi_reduction <add>, %53, %cst_30 [1] : vector<16x16xf32> to vector<16xf32>
      %55 = vector.shape_cast %54 : vector<16xf32> to vector<16x1xf32>
      %56 = math.sqrt %55 : vector<16x1xf32>
      %cst_31 = arith.constant 1.000000e+00 : f32
      %57 = vector.broadcast %cst_31 : f32 to vector<16x1xf32>
      %58 = arith.divf %57, %56 : vector<16x1xf32>
      tpu.wait_dma2 semaphore(%arg22 : memref<!tpu.dma_semaphore, #tpu.memory_space<semaphore_mem>>) src(%arg9 : memref<3x256x256xbf16, #tpu.memory_space<any>>) dst(%arg21 : memref<3x256x256xbf16, #tpu.memory_space<vmem>>)
      %59 = arith.truncf %24 : vector<16x256xf32> to vector<16x256xbf16>
      %c0_32 = arith.constant 0 : index
      %c0_33 = arith.constant 0 : index
      %c0_34 = arith.constant 0 : index
      %60 = vector.load %arg21[%c0_32, %c0_33, %c0_34] : memref<3x256x256xbf16, #tpu.memory_space<vmem>>, vector<1x256x256xbf16>
      %61 = vector.shape_cast %60 : vector<1x256x256xbf16> to vector<256x256xbf16>
      %cst_35 = arith.constant dense<0.000000e+00> : vector<16x256xf32>
      %62 = tpu.matmul %59, %61, %cst_35 {dimension_numbers = #tpu.dot_dimension_numbers<[1], [0], [0], [1], [0, 0, 1, 1], [], []>} : vector<16x256xbf16>, vector<256x256xbf16>, vector<16x256xf32> -> vector<16x256xf32>
      %c0_36 = arith.constant 0 : index
      %c0_37 = arith.constant 0 : index
      %c0_38 = arith.constant 0 : index
      %63 = vector.load %arg11[%c0_36, %c0_37, %c0_38] : memref<3x8x256xf32, #tpu.memory_space<vmem>>, vector<1x8x256xf32>
      %64 = vector.shape_cast %63 : vector<1x8x256xf32> to vector<8x256xf32>
      %cst_39 = arith.constant dense<0.000000e+00> : vector<8x16xf32>
      %65 = tpu.matmul %64, %62, %cst_39 {dimension_numbers = #tpu.dot_dimension_numbers<[1], [1], [0], [0], [0, 0, 1, 0], [], []>} : vector<8x256xf32>, vector<16x256xf32>, vector<8x16xf32> -> vector<8x16xf32>
      %c0_40 = arith.constant 0 : index
      %c0_41 = arith.constant 0 : index
      %c0_42 = arith.constant 0 : index
      %66 = vector.load %arg10[%c0_40, %c0_41, %c0_42] : memref<3x8x256xf32, #tpu.memory_space<vmem>>, vector<1x8x256xf32>
      %67 = vector.shape_cast %66 : vector<1x8x256xf32> to vector<8x256xf32>
      %cst_43 = arith.constant dense<0.000000e+00> : vector<8x16xf32>
      %68 = tpu.matmul %67, %62, %cst_43 {dimension_numbers = #tpu.dot_dimension_numbers<[1], [1], [0], [0], [0, 0, 1, 0], [], []>} : vector<8x256xf32>, vector<16x256xf32>, vector<8x16xf32> -> vector<8x16xf32>
      %69 = vector.shape_cast %65 : vector<8x16xf32> to vector<8x16x1xf32>
      %70 = vector.shape_cast %68 : vector<8x16xf32> to vector<8x1x16xf32>
      %71 = vector.broadcast %69 : vector<8x16x1xf32> to vector<8x16x16xf32>
      %72 = vector.broadcast %70 : vector<8x1x16xf32> to vector<8x16x16xf32>
      %73 = arith.addf %71, %72 : vector<8x16x16xf32>
      %cst_44 = arith.constant 0.000000e+00 : f32
      %74 = vector.broadcast %cst_44 : f32 to vector<8x16x16xf32>
      %75 = arith.cmpf ogt, %73, %74 : vector<8x16x16xf32>
      %cst_45 = arith.constant 2.000000e-01 : f32
      %76 = vector.broadcast %cst_45 : f32 to vector<8x16x16xf32>
      %77 = arith.mulf %76, %73 : vector<8x16x16xf32>
      %78 = arith.select %75, %73, %77 : vector<8x16x16xi1>, vector<8x16x16xf32>
      %cst_46 = arith.constant -1.000000e+30 : f32
      %79 = vector.shape_cast %50 : vector<1x16x16xi1> to vector<1x16x16xi1>
      %80 = vector.broadcast %79 : vector<1x16x16xi1> to vector<8x16x16xi1>
      %81 = vector.broadcast %cst_46 : f32 to vector<8x16x16xf32>
      %82 = arith.select %80, %78, %81 : vector<8x16x16xi1>, vector<8x16x16xf32>
      %cst_47 = arith.constant dense<0xFF800000> : vector<8x16xf32>
      %83 = vector.multi_reduction <maximumf>, %82, %cst_47 [2] : vector<8x16x16xf32> to vector<8x16xf32>
      %84 = vector.shape_cast %83 : vector<8x16xf32> to vector<8x16x1xf32>
      %85 = vector.broadcast %84 : vector<8x16x1xf32> to vector<8x16x16xf32>
      %86 = arith.subf %82, %85 : vector<8x16x16xf32>
      %87 = math.exp %86 : vector<8x16x16xf32>
      %88 = vector.broadcast %51 : vector<1x16x16xf32> to vector<8x16x16xf32>
      %89 = arith.mulf %87, %88 : vector<8x16x16xf32>
      %cst_48 = arith.constant dense<0.000000e+00> : vector<8x16xf32>
      %90 = vector.multi_reduction <add>, %89, %cst_48 [2] : vector<8x16x16xf32> to vector<8x16xf32>
      %91 = vector.shape_cast %90 : vector<8x16xf32> to vector<8x16x1xf32>
      %cst_49 = arith.constant 0.000000e+00 : f32
      %92 = vector.broadcast %cst_49 : f32 to vector<8x16x1xf32>
      %93 = arith.cmpf ogt, %91, %92 : vector<8x16x1xf32>
      %cst_50 = arith.constant 1.000000e+00 : f32
      %94 = vector.broadcast %cst_50 : f32 to vector<8x16x1xf32>
      %95 = arith.divf %94, %91 : vector<8x16x1xf32>
      %cst_51 = arith.constant 0.000000e+00 : f32
      %96 = vector.broadcast %cst_51 : f32 to vector<8x16x1xf32>
      %97 = arith.select %93, %95, %96 : vector<8x16x1xi1>, vector<8x16x1xf32>
      %98 = vector.broadcast %97 : vector<8x16x1xf32> to vector<8x16x16xf32>
      %99 = arith.mulf %89, %98 : vector<8x16x16xf32>
      %100 = vector.shape_cast %62 : vector<16x256xf32> to vector<1x16x256xf32>
      %c0_52 = arith.constant 0 : index
      %c0_53 = arith.constant 0 : index
      %c0_54 = arith.constant 0 : index
      %101 = vector.load %arg12[%c0_52, %c0_53, %c0_54] : memref<8x1x256xf32, #tpu.memory_space<vmem>>, vector<8x1x256xf32>
      %102 = vector.broadcast %100 : vector<1x16x256xf32> to vector<8x16x256xf32>
      %103 = vector.broadcast %101 : vector<8x1x256xf32> to vector<8x16x256xf32>
      %104 = arith.mulf %102, %103 : vector<8x16x256xf32>
      %cst_55 = arith.constant dense<0.000000e+00> : vector<8x16x256xf32>
      %105 = tpu.matmul %99, %104, %cst_55 {dimension_numbers = #tpu.dot_dimension_numbers<[2], [1], [1], [2], [0, 0, 0, 1, 1, 2], [0], [0]>} : vector<8x16x16xf32>, vector<8x16x256xf32>, vector<8x16x256xf32> -> vector<8x16x256xf32>
      %cst_56 = arith.constant dense<0.000000e+00> : vector<16x256xf32>
      %106 = vector.multi_reduction <add>, %105, %cst_56 [0] : vector<8x16x256xf32> to vector<16x256xf32>
      %c0_57 = arith.constant 0 : index
      %c0_58 = arith.constant 0 : index
      %c0_59 = arith.constant 0 : index
      %107 = vector.load %arg13[%c0_57, %c0_58, %c0_59] : memref<3x1x256xf32, #tpu.memory_space<vmem>>, vector<1x1x256xf32>
      %108 = vector.shape_cast %107 : vector<1x1x256xf32> to vector<1x256xf32>
      %109 = vector.broadcast %108 : vector<1x256xf32> to vector<16x256xf32>
      %110 = arith.addf %106, %109 : vector<16x256xf32>
      %cst_60 = arith.constant 0.000000e+00 : f32
      %111 = vector.broadcast %cst_60 : f32 to vector<16x256xf32>
      %112 = arith.maximumf %110, %111 : vector<16x256xf32>
      %113 = vector.broadcast %58 : vector<16x1xf32> to vector<16x256xf32>
      %114 = arith.mulf %112, %113 : vector<16x256xf32>
      %115 = arith.truncf %114 : vector<16x256xf32> to vector<16x256xbf16>
      %c1_61 = arith.constant 1 : index
      %c0_62 = arith.constant 0 : index
      %c0_63 = arith.constant 0 : index
      %116 = vector.load %arg21[%c1_61, %c0_62, %c0_63] : memref<3x256x256xbf16, #tpu.memory_space<vmem>>, vector<1x256x256xbf16>
      %117 = vector.shape_cast %116 : vector<1x256x256xbf16> to vector<256x256xbf16>
      %cst_64 = arith.constant dense<0.000000e+00> : vector<16x256xf32>
      %118 = tpu.matmul %115, %117, %cst_64 {dimension_numbers = #tpu.dot_dimension_numbers<[1], [0], [0], [1], [0, 0, 1, 1], [], []>} : vector<16x256xbf16>, vector<256x256xbf16>, vector<16x256xf32> -> vector<16x256xf32>
      %c1_65 = arith.constant 1 : index
      %c0_66 = arith.constant 0 : index
      %c0_67 = arith.constant 0 : index
      %119 = vector.load %arg11[%c1_65, %c0_66, %c0_67] : memref<3x8x256xf32, #tpu.memory_space<vmem>>, vector<1x8x256xf32>
      %120 = vector.shape_cast %119 : vector<1x8x256xf32> to vector<8x256xf32>
      %cst_68 = arith.constant dense<0.000000e+00> : vector<8x16xf32>
      %121 = tpu.matmul %120, %118, %cst_68 {dimension_numbers = #tpu.dot_dimension_numbers<[1], [1], [0], [0], [0, 0, 1, 0], [], []>} : vector<8x256xf32>, vector<16x256xf32>, vector<8x16xf32> -> vector<8x16xf32>
      %c1_69 = arith.constant 1 : index
      %c0_70 = arith.constant 0 : index
      %c0_71 = arith.constant 0 : index
      %122 = vector.load %arg10[%c1_69, %c0_70, %c0_71] : memref<3x8x256xf32, #tpu.memory_space<vmem>>, vector<1x8x256xf32>
      %123 = vector.shape_cast %122 : vector<1x8x256xf32> to vector<8x256xf32>
      %cst_72 = arith.constant dense<0.000000e+00> : vector<8x16xf32>
      %124 = tpu.matmul %123, %118, %cst_72 {dimension_numbers = #tpu.dot_dimension_numbers<[1], [1], [0], [0], [0, 0, 1, 0], [], []>} : vector<8x256xf32>, vector<16x256xf32>, vector<8x16xf32> -> vector<8x16xf32>
      %125 = vector.shape_cast %121 : vector<8x16xf32> to vector<8x16x1xf32>
      %126 = vector.shape_cast %124 : vector<8x16xf32> to vector<8x1x16xf32>
      %127 = vector.broadcast %125 : vector<8x16x1xf32> to vector<8x16x16xf32>
      %128 = vector.broadcast %126 : vector<8x1x16xf32> to vector<8x16x16xf32>
      %129 = arith.addf %127, %128 : vector<8x16x16xf32>
      %cst_73 = arith.constant 0.000000e+00 : f32
      %130 = vector.broadcast %cst_73 : f32 to vector<8x16x16xf32>
      %131 = arith.cmpf ogt, %129, %130 : vector<8x16x16xf32>
      %cst_74 = arith.constant 2.000000e-01 : f32
      %132 = vector.broadcast %cst_74 : f32 to vector<8x16x16xf32>
      %133 = arith.mulf %132, %129 : vector<8x16x16xf32>
      %134 = arith.select %131, %129, %133 : vector<8x16x16xi1>, vector<8x16x16xf32>
      %cst_75 = arith.constant -1.000000e+30 : f32
      %135 = vector.shape_cast %50 : vector<1x16x16xi1> to vector<1x16x16xi1>
      %136 = vector.broadcast %135 : vector<1x16x16xi1> to vector<8x16x16xi1>
      %137 = vector.broadcast %cst_75 : f32 to vector<8x16x16xf32>
      %138 = arith.select %136, %134, %137 : vector<8x16x16xi1>, vector<8x16x16xf32>
      %cst_76 = arith.constant dense<0xFF800000> : vector<8x16xf32>
      %139 = vector.multi_reduction <maximumf>, %138, %cst_76 [2] : vector<8x16x16xf32> to vector<8x16xf32>
      %140 = vector.shape_cast %139 : vector<8x16xf32> to vector<8x16x1xf32>
      %141 = vector.broadcast %140 : vector<8x16x1xf32> to vector<8x16x16xf32>
      %142 = arith.subf %138, %141 : vector<8x16x16xf32>
      %143 = math.exp %142 : vector<8x16x16xf32>
      %144 = vector.broadcast %51 : vector<1x16x16xf32> to vector<8x16x16xf32>
      %145 = arith.mulf %143, %144 : vector<8x16x16xf32>
      %cst_77 = arith.constant dense<0.000000e+00> : vector<8x16xf32>
      %146 = vector.multi_reduction <add>, %145, %cst_77 [2] : vector<8x16x16xf32> to vector<8x16xf32>
      %147 = vector.shape_cast %146 : vector<8x16xf32> to vector<8x16x1xf32>
      %cst_78 = arith.constant 0.000000e+00 : f32
      %148 = vector.broadcast %cst_78 : f32 to vector<8x16x1xf32>
      %149 = arith.cmpf ogt, %147, %148 : vector<8x16x1xf32>
      %cst_79 = arith.constant 1.000000e+00 : f32
      %150 = vector.broadcast %cst_79 : f32 to vector<8x16x1xf32>
      %151 = arith.divf %150, %147 : vector<8x16x1xf32>
      %cst_80 = arith.constant 0.000000e+00 : f32
      %152 = vector.broadcast %cst_80 : f32 to vector<8x16x1xf32>
      %153 = arith.select %149, %151, %152 : vector<8x16x1xi1>, vector<8x16x1xf32>
      %154 = vector.broadcast %153 : vector<8x16x1xf32> to vector<8x16x16xf32>
      %155 = arith.mulf %145, %154 : vector<8x16x16xf32>
      %156 = vector.shape_cast %118 : vector<16x256xf32> to vector<1x16x256xf32>
      %c0_81 = arith.constant 0 : index
      %c0_82 = arith.constant 0 : index
      %c0_83 = arith.constant 0 : index
      %157 = vector.load %arg12[%c0_81, %c0_82, %c0_83] : memref<8x1x256xf32, #tpu.memory_space<vmem>>, vector<8x1x256xf32>
      %158 = vector.broadcast %156 : vector<1x16x256xf32> to vector<8x16x256xf32>
      %159 = vector.broadcast %157 : vector<8x1x256xf32> to vector<8x16x256xf32>
      %160 = arith.mulf %158, %159 : vector<8x16x256xf32>
      %cst_84 = arith.constant dense<0.000000e+00> : vector<8x16x256xf32>
      %161 = tpu.matmul %155, %160, %cst_84 {dimension_numbers = #tpu.dot_dimension_numbers<[2], [1], [1], [2], [0, 0, 0, 1, 1, 2], [0], [0]>} : vector<8x16x16xf32>, vector<8x16x256xf32>, vector<8x16x256xf32> -> vector<8x16x256xf32>
      %cst_85 = arith.constant dense<0.000000e+00> : vector<16x256xf32>
      %162 = vector.multi_reduction <add>, %161, %cst_85 [0] : vector<8x16x256xf32> to vector<16x256xf32>
      %c1_86 = arith.constant 1 : index
      %c0_87 = arith.constant 0 : index
      %c0_88 = arith.constant 0 : index
      %163 = vector.load %arg13[%c1_86, %c0_87, %c0_88] : memref<3x1x256xf32, #tpu.memory_space<vmem>>, vector<1x1x256xf32>
      %164 = vector.shape_cast %163 : vector<1x1x256xf32> to vector<1x256xf32>
      %165 = vector.broadcast %164 : vector<1x256xf32> to vector<16x256xf32>
      %166 = arith.addf %162, %165 : vector<16x256xf32>
      %cst_89 = arith.constant 0.000000e+00 : f32
      %167 = vector.broadcast %cst_89 : f32 to vector<16x256xf32>
      %168 = arith.maximumf %166, %167 : vector<16x256xf32>
      %169 = vector.broadcast %58 : vector<16x1xf32> to vector<16x256xf32>
      %170 = arith.mulf %168, %169 : vector<16x256xf32>
      %171 = arith.truncf %170 : vector<16x256xf32> to vector<16x256xbf16>
      %c2 = arith.constant 2 : index
      %c0_90 = arith.constant 0 : index
      %c0_91 = arith.constant 0 : index
      %172 = vector.load %arg21[%c2, %c0_90, %c0_91] : memref<3x256x256xbf16, #tpu.memory_space<vmem>>, vector<1x256x256xbf16>
      %173 = vector.shape_cast %172 : vector<1x256x256xbf16> to vector<256x256xbf16>
      %cst_92 = arith.constant dense<0.000000e+00> : vector<16x256xf32>
      %174 = tpu.matmul %171, %173, %cst_92 {dimension_numbers = #tpu.dot_dimension_numbers<[1], [0], [0], [1], [0, 0, 1, 1], [], []>} : vector<16x256xbf16>, vector<256x256xbf16>, vector<16x256xf32> -> vector<16x256xf32>
      %c2_93 = arith.constant 2 : index
      %c0_94 = arith.constant 0 : index
      %c0_95 = arith.constant 0 : index
      %175 = vector.load %arg11[%c2_93, %c0_94, %c0_95] : memref<3x8x256xf32, #tpu.memory_space<vmem>>, vector<1x8x256xf32>
      %176 = vector.shape_cast %175 : vector<1x8x256xf32> to vector<8x256xf32>
      %cst_96 = arith.constant dense<0.000000e+00> : vector<8x16xf32>
      %177 = tpu.matmul %176, %174, %cst_96 {dimension_numbers = #tpu.dot_dimension_numbers<[1], [1], [0], [0], [0, 0, 1, 0], [], []>} : vector<8x256xf32>, vector<16x256xf32>, vector<8x16xf32> -> vector<8x16xf32>
      %c2_97 = arith.constant 2 : index
      %c0_98 = arith.constant 0 : index
      %c0_99 = arith.constant 0 : index
      %178 = vector.load %arg10[%c2_97, %c0_98, %c0_99] : memref<3x8x256xf32, #tpu.memory_space<vmem>>, vector<1x8x256xf32>
      %179 = vector.shape_cast %178 : vector<1x8x256xf32> to vector<8x256xf32>
      %cst_100 = arith.constant dense<0.000000e+00> : vector<8x16xf32>
      %180 = tpu.matmul %179, %174, %cst_100 {dimension_numbers = #tpu.dot_dimension_numbers<[1], [1], [0], [0], [0, 0, 1, 0], [], []>} : vector<8x256xf32>, vector<16x256xf32>, vector<8x16xf32> -> vector<8x16xf32>
      %181 = vector.shape_cast %177 : vector<8x16xf32> to vector<8x16x1xf32>
      %182 = vector.shape_cast %180 : vector<8x16xf32> to vector<8x1x16xf32>
      %183 = vector.broadcast %181 : vector<8x16x1xf32> to vector<8x16x16xf32>
      %184 = vector.broadcast %182 : vector<8x1x16xf32> to vector<8x16x16xf32>
      %185 = arith.addf %183, %184 : vector<8x16x16xf32>
      %cst_101 = arith.constant 0.000000e+00 : f32
      %186 = vector.broadcast %cst_101 : f32 to vector<8x16x16xf32>
      %187 = arith.cmpf ogt, %185, %186 : vector<8x16x16xf32>
      %cst_102 = arith.constant 2.000000e-01 : f32
      %188 = vector.broadcast %cst_102 : f32 to vector<8x16x16xf32>
      %189 = arith.mulf %188, %185 : vector<8x16x16xf32>
      %190 = arith.select %187, %185, %189 : vector<8x16x16xi1>, vector<8x16x16xf32>
      %cst_103 = arith.constant -1.000000e+30 : f32
      %191 = vector.shape_cast %50 : vector<1x16x16xi1> to vector<1x16x16xi1>
      %192 = vector.broadcast %191 : vector<1x16x16xi1> to vector<8x16x16xi1>
      %193 = vector.broadcast %cst_103 : f32 to vector<8x16x16xf32>
      %194 = arith.select %192, %190, %193 : vector<8x16x16xi1>, vector<8x16x16xf32>
      %cst_104 = arith.constant dense<0xFF800000> : vector<8x16xf32>
      %195 = vector.multi_reduction <maximumf>, %194, %cst_104 [2] : vector<8x16x16xf32> to vector<8x16xf32>
      %196 = vector.shape_cast %195 : vector<8x16xf32> to vector<8x16x1xf32>
      %197 = vector.broadcast %196 : vector<8x16x1xf32> to vector<8x16x16xf32>
      %198 = arith.subf %194, %197 : vector<8x16x16xf32>
      %199 = math.exp %198 : vector<8x16x16xf32>
      %200 = vector.broadcast %51 : vector<1x16x16xf32> to vector<8x16x16xf32>
      %201 = arith.mulf %199, %200 : vector<8x16x16xf32>
      %cst_105 = arith.constant dense<0.000000e+00> : vector<8x16xf32>
      %202 = vector.multi_reduction <add>, %201, %cst_105 [2] : vector<8x16x16xf32> to vector<8x16xf32>
      %203 = vector.shape_cast %202 : vector<8x16xf32> to vector<8x16x1xf32>
      %cst_106 = arith.constant 0.000000e+00 : f32
      %204 = vector.broadcast %cst_106 : f32 to vector<8x16x1xf32>
      %205 = arith.cmpf ogt, %203, %204 : vector<8x16x1xf32>
      %cst_107 = arith.constant 1.000000e+00 : f32
      %206 = vector.broadcast %cst_107 : f32 to vector<8x16x1xf32>
      %207 = arith.divf %206, %203 : vector<8x16x1xf32>
      %cst_108 = arith.constant 0.000000e+00 : f32
      %208 = vector.broadcast %cst_108 : f32 to vector<8x16x1xf32>
      %209 = arith.select %205, %207, %208 : vector<8x16x1xi1>, vector<8x16x1xf32>
      %210 = vector.broadcast %209 : vector<8x16x1xf32> to vector<8x16x16xf32>
      %211 = arith.mulf %201, %210 : vector<8x16x16xf32>
      %212 = vector.shape_cast %174 : vector<16x256xf32> to vector<1x16x256xf32>
      %c0_109 = arith.constant 0 : index
      %c0_110 = arith.constant 0 : index
      %c0_111 = arith.constant 0 : index
      %213 = vector.load %arg12[%c0_109, %c0_110, %c0_111] : memref<8x1x256xf32, #tpu.memory_space<vmem>>, vector<8x1x256xf32>
      %214 = vector.broadcast %212 : vector<1x16x256xf32> to vector<8x16x256xf32>
      %215 = vector.broadcast %213 : vector<8x1x256xf32> to vector<8x16x256xf32>
      %216 = arith.mulf %214, %215 : vector<8x16x256xf32>
      %cst_112 = arith.constant dense<0.000000e+00> : vector<8x16x256xf32>
      %217 = tpu.matmul %211, %216, %cst_112 {dimension_numbers = #tpu.dot_dimension_numbers<[2], [1], [1], [2], [0, 0, 0, 1, 1, 2], [0], [0]>} : vector<8x16x16xf32>, vector<8x16x256xf32>, vector<8x16x256xf32> -> vector<8x16x256xf32>
      %cst_113 = arith.constant dense<0.000000e+00> : vector<16x256xf32>
      %218 = vector.multi_reduction <add>, %217, %cst_113 [0] : vector<8x16x256xf32> to vector<16x256xf32>
      %c2_114 = arith.constant 2 : index
      %c0_115 = arith.constant 0 : index
      %c0_116 = arith.constant 0 : index
      %219 = vector.load %arg13[%c2_114, %c0_115, %c0_116] : memref<3x1x256xf32, #tpu.memory_space<vmem>>, vector<1x1x256xf32>
      %220 = vector.shape_cast %219 : vector<1x1x256xf32> to vector<1x256xf32>
      %221 = vector.broadcast %220 : vector<1x256xf32> to vector<16x256xf32>
      %222 = arith.addf %218, %221 : vector<16x256xf32>
      %cst_117 = arith.constant 0.000000e+00 : f32
      %223 = vector.broadcast %cst_117 : f32 to vector<16x256xf32>
      %224 = arith.maximumf %222, %223 : vector<16x256xf32>
      %225 = vector.broadcast %58 : vector<16x1xf32> to vector<16x256xf32>
      %226 = arith.mulf %224, %225 : vector<16x256xf32>
      %227 = tpu.iota {dimensions = array<i32: 0>} : vector<2x16xi32>
      %c0_118 = arith.constant 0 : index
      %c0_119 = arith.constant 0 : index
      %228 = vector.load %arg8[%c0_118, %c0_119] : memref<1x16xi32, #tpu.memory_space<vmem>>, vector<1x16xi32>
      %229 = vector.broadcast %228 : vector<1x16xi32> to vector<2x16xi32>
      %230 = arith.cmpi eq, %227, %229 : vector<2x16xi32>
      %231 = arith.extui %230 : vector<2x16xi1> to vector<2x16xi32>
      %232 = arith.sitofp %231 : vector<2x16xi32> to vector<2x16xf32>
      %cst_120 = arith.constant dense<0.000000e+00> : vector<2xf32>
      %233 = vector.multi_reduction <add>, %232, %cst_120 [1] : vector<2x16xf32> to vector<2xf32>
      %234 = vector.shape_cast %233 : vector<2xf32> to vector<2x1xf32>
      %cst_121 = arith.constant dense<0.000000e+00> : vector<2x256xf32>
      %235 = tpu.matmul %232, %226, %cst_121 {dimension_numbers = #tpu.dot_dimension_numbers<[1], [0], [0], [1], [0, 0, 1, 1], [], []>} : vector<2x16xf32>, vector<16x256xf32>, vector<2x256xf32> -> vector<2x256xf32>
      %cst_122 = arith.constant 0.000000e+00 : f32
      %236 = vector.broadcast %cst_122 : f32 to vector<2x1xf32>
      %237 = arith.cmpf ogt, %234, %236 : vector<2x1xf32>
      %cst_123 = arith.constant 1.000000e+00 : f32
      %238 = vector.broadcast %cst_123 : f32 to vector<2x1xf32>
      %239 = arith.divf %238, %234 : vector<2x1xf32>
      %cst_124 = arith.constant 0.000000e+00 : f32
      %240 = vector.broadcast %cst_124 : f32 to vector<2x1xf32>
      %241 = arith.select %237, %239, %240 : vector<2x1xi1>, vector<2x1xf32>
      %242 = vector.broadcast %241 : vector<2x1xf32> to vector<2x256xf32>
      %243 = arith.mulf %235, %242 : vector<2x256xf32>
      %244 = arith.truncf %243 : vector<2x256xf32> to vector<2x256xbf16>
      %c0_125 = arith.constant 0 : index
      %c0_126 = arith.constant 0 : index
      %245 = vector.load %arg14[%c0_125, %c0_126] : memref<256x128xbf16, #tpu.memory_space<vmem>>, vector<256x128xbf16>
      %cst_127 = arith.constant dense<0.000000e+00> : vector<2x128xf32>
      %246 = tpu.matmul %244, %245, %cst_127 {dimension_numbers = #tpu.dot_dimension_numbers<[1], [0], [0], [1], [0, 0, 1, 1], [], []>} : vector<2x256xbf16>, vector<256x128xbf16>, vector<2x128xf32> -> vector<2x128xf32>
      %cst_128 = arith.constant 0.000000e+00 : f32
      %247 = vector.broadcast %cst_128 : f32 to vector<2x128xf32>
      %248 = arith.maximumf %246, %247 : vector<2x128xf32>
      %c0_129 = arith.constant 0 : index
      %c0_130 = arith.constant 0 : index
      %249 = vector.load %arg15[%c0_129, %c0_130] : memref<1x128xf32, #tpu.memory_space<vmem>>, vector<1x128xf32>
      %250 = vector.broadcast %249 : vector<1x128xf32> to vector<2x128xf32>
      %251 = arith.mulf %248, %250 : vector<2x128xf32>
      %c0_131 = arith.constant 0 : index
      %c0_132 = arith.constant 0 : index
      %252 = vector.load %arg16[%c0_131, %c0_132] : memref<1x128xf32, #tpu.memory_space<vmem>>, vector<1x128xf32>
      %253 = vector.broadcast %252 : vector<1x128xf32> to vector<2x128xf32>
      %254 = arith.addf %251, %253 : vector<2x128xf32>
      %255 = arith.truncf %254 : vector<2x128xf32> to vector<2x128xbf16>
      %c0_133 = arith.constant 0 : index
      %c0_134 = arith.constant 0 : index
      %256 = vector.load %arg17[%c0_133, %c0_134] : memref<128x8xbf16, #tpu.memory_space<vmem>>, vector<128x8xbf16>
      %cst_135 = arith.constant dense<0.000000e+00> : vector<2x8xf32>
      %257 = tpu.matmul %255, %256, %cst_135 {dimension_numbers = #tpu.dot_dimension_numbers<[1], [0], [0], [1], [0, 0, 1, 1], [], []>} : vector<2x128xbf16>, vector<128x8xbf16>, vector<2x8xf32> -> vector<2x8xf32>
      %c0_136 = arith.constant 0 : index
      %c0_137 = arith.constant 0 : index
      %258 = vector.load %arg18[%c0_136, %c0_137] : memref<1x8xf32, #tpu.memory_space<vmem>>, vector<1x8xf32>
      %259 = vector.broadcast %258 : vector<1x8xf32> to vector<2x8xf32>
      %260 = arith.addf %257, %259 : vector<2x8xf32>
      %c0_138 = arith.constant 0 : index
      %c0_139 = arith.constant 0 : index
      %261 = vector.load %arg19[%c0_138, %c0_139] : memref<2x8xf32, #tpu.memory_space<vmem>>, vector<2x8xf32>
      tpu.vector_store %arg19[%c0_138, %c0_139], %260 {strides = array<i32>} : memref<2x8xf32, #tpu.memory_space<vmem>>, vector<2x8xf32>,
    } else {
    }
    return
  }
  func.func @transform_0(%arg0: i32) -> (i32, i32) {
    %c0_i32 = arith.constant 0 : i32
    %c0_i32_0 = arith.constant 0 : i32
    return %c0_i32, %arg0 : i32, i32
  }
  func.func @transform_1(%arg0: i32) -> (i32, i32) {
    %c0_i32 = arith.constant 0 : i32
    %c0_i32_0 = arith.constant 0 : i32
    return %arg0, %c0_i32 : i32, i32
  }
  func.func @transform_2(%arg0: i32) -> (i32, i32) {
    %c0_i32 = arith.constant 0 : i32
    %c0_i32_0 = arith.constant 0 : i32
    %c0_i32_1 = arith.constant 0 : i32
    return %c0_i32, %c0_i32_0 : i32, i32
  }
  func.func @transform_3(%arg0: i32) -> (i32, i32) {
    %c0_i32 = arith.constant 0 : i32
    %c0_i32_0 = arith.constant 0 : i32
    %c0_i32_1 = arith.constant 0 : i32
    return %c0_i32, %c0_i32_0 : i32, i32
  }
  func.func @transform_4(%arg0: i32) -> (i32, i32) {
    %c0_i32 = arith.constant 0 : i32
    %c0_i32_0 = arith.constant 0 : i32
    %c0_i32_1 = arith.constant 0 : i32
    return %c0_i32, %c0_i32_0 : i32, i32
  }
  func.func @transform_5(%arg0: i32) -> (i32, i32) {
    %c0_i32 = arith.constant 0 : i32
    %c0_i32_0 = arith.constant 0 : i32
    %c0_i32_1 = arith.constant 0 : i32
    return %c0_i32, %c0_i32_0 : i32, i32
  }
  func.func @transform_6(%arg0: i32) -> (i32, i32) {
    %c0_i32 = arith.constant 0 : i32
    %c0_i32_0 = arith.constant 0 : i32
    %c0_i32_1 = arith.constant 0 : i32
    return %c0_i32, %c0_i32_0 : i32, i32
  }
  func.func @transform_7(%arg0: i32) -> (i32, i32) {
    %c0_i32 = arith.constant 0 : i32
    %c0_i32_0 = arith.constant 0 : i32
    %c0_i32_1 = arith.constant 0 : i32
    return %c0_i32, %c0_i32_0 : i32, i32
  }
  func.func @transform_9(%arg0: i32) -> (i32, i32, i32) {
    %c0_i32 = arith.constant 0 : i32
    %c0_i32_0 = arith.constant 0 : i32
    %c0_i32_1 = arith.constant 0 : i32
    %c0_i32_2 = arith.constant 0 : i32
    return %c0_i32, %c0_i32_0, %c0_i32_1 : i32, i32, i32
  }
  func.func @transform_10(%arg0: i32) -> (i32, i32, i32) {
    %c0_i32 = arith.constant 0 : i32
    %c0_i32_0 = arith.constant 0 : i32
    %c0_i32_1 = arith.constant 0 : i32
    %c0_i32_2 = arith.constant 0 : i32
    return %c0_i32, %c0_i32_0, %c0_i32_1 : i32, i32, i32
  }
  func.func @transform_11(%arg0: i32) -> (i32, i32, i32) {
    %c0_i32 = arith.constant 0 : i32
    %c0_i32_0 = arith.constant 0 : i32
    %c0_i32_1 = arith.constant 0 : i32
    %c0_i32_2 = arith.constant 0 : i32
    return %c0_i32, %c0_i32_0, %c0_i32_1 : i32, i32, i32
  }
  func.func @transform_12(%arg0: i32) -> (i32, i32, i32) {
    %c0_i32 = arith.constant 0 : i32
    %c0_i32_0 = arith.constant 0 : i32
    %c0_i32_1 = arith.constant 0 : i32
    %c0_i32_2 = arith.constant 0 : i32
    return %c0_i32, %c0_i32_0, %c0_i32_1 : i32, i32, i32
  }
  func.func @transform_13(%arg0: i32) -> (i32, i32) {
    %c0_i32 = arith.constant 0 : i32
    %c0_i32_0 = arith.constant 0 : i32
    %c0_i32_1 = arith.constant 0 : i32
    return %c0_i32, %c0_i32_0 : i32, i32
  }
  func.func @transform_14(%arg0: i32) -> (i32, i32) {
    %c0_i32 = arith.constant 0 : i32
    %c0_i32_0 = arith.constant 0 : i32
    %c0_i32_1 = arith.constant 0 : i32
    return %c0_i32, %c0_i32_0 : i32, i32
  }
  func.func @transform_15(%arg0: i32) -> (i32, i32) {
    %c0_i32 = arith.constant 0 : i32
    %c0_i32_0 = arith.constant 0 : i32
    %c0_i32_1 = arith.constant 0 : i32
    return %c0_i32, %c0_i32_0 : i32, i32
  }
  func.func @transform_16(%arg0: i32) -> (i32, i32) {
    %c0_i32 = arith.constant 0 : i32
    %c0_i32_0 = arith.constant 0 : i32
    %c0_i32_1 = arith.constant 0 : i32
    return %c0_i32, %c0_i32_0 : i32, i32
  }
  func.func @transform_17(%arg0: i32) -> (i32, i32) {
    %c0_i32 = arith.constant 0 : i32
    %c0_i32_0 = arith.constant 0 : i32
    %c0_i32_1 = arith.constant 0 : i32
    return %c0_i32, %c0_i32_0 : i32, i32
  }
  func.func @transform_18(%arg0: i32) -> (i32, i32) {
    %c0_i32 = arith.constant 0 : i32
    %c0_i32_0 = arith.constant 0 : i32
    %c0_i32_1 = arith.constant 0 : i32
    return %c0_i32, %c0_i32_0 : i32, i32
  }
}

</mosaic_0001>

<bundles_post_ra>
// kernel: tpu_custom_call.1
= control target key start
LH: loop header
LB: loop body
LE: loop exit
PB: predicated region body
PF: predicated region fallthrough
CT: control target
= control target key end

     0   :  { %s9713_s0 = inlined_call_operand.hbm [shape: f32[16,1024], index: 0, kind: input, shape index: {}]   ;;  %s9714_s1 = inlined_call_operand.hbm [shape: bf16[1024,256], index: 1, kind: input, shape index: {}]   ;;  %s9715_s2 = inlined_call_operand.vmem [shape: f32[1,256], index: 2, kind: input, shape index: {}]   ;;  %s9716_s3 = inlined_call_operand.hbm [shape: f32[1,256], index: 3, kind: input, shape index: {}]   ;;  %s9717_s4 = inlined_call_operand.vmem [shape: f32[16,2], index: 4, kind: input, shape index: {}]   ;;  %s9718_s5 = inlined_call_operand.hbm [shape: f32[2,16], index: 5, kind: input, shape index: {}]   ;;  %s9719_s6 = inlined_call_operand.vmem [shape: s32[16,1], index: 6, kind: input, shape index: {}]   ;;  %s9720_s7 = inlined_call_operand.hbm [shape: s32[1,16], index: 7, kind: input, shape index: {}]   ;;  %s9721_s8 = inlined_call_operand.hbm [shape: bf16[3,256,256], index: 8, kind: input, shape index: {}]   ;;  %s9722_s9 = inlined_call_operand.hbm [shape: f32[3,8,256], index: 9, kind: input, shape index: {}]   ;;  %s9723_s10 = inlined_call_operand.hbm [shape: f32[3,8,256], index: 10, kind: input, shape index: {}]   ;;  %s9724_s11 = inlined_call_operand.vmem [shape: f32[8,1,256], index: 11, kind: input, shape index: {}]   ;;  %s9725_s12 = inlined_call_operand.vmem [shape: f32[3,1,256], index: 12, kind: input, shape index: {}]   ;;  %s9726_s13 = inlined_call_operand.vmem [shape: bf16[256,128], index: 13, kind: input, shape index: {}]   ;;  %s9727_s14 = inlined_call_operand.hbm [shape: f32[1,128], index: 14, kind: input, shape index: {}]   ;;  %s9728_s15 = inlined_call_operand.vmem [shape: f32[1,128], index: 15, kind: input, shape index: {}]   ;;  %s9729_s16 = inlined_call_operand.vmem [shape: bf16[128,8], index: 16, kind: input, shape index: {}]   ;;  %s9730_s17 = inlined_call_operand.vmem [shape: f32[1,8], index: 17, kind: input, shape index: {}]   ;;  %s9731_s18 = inlined_call_operand.hbm [shape: f32[2,8], index: 18, kind: output, shape index: {}]  }
   0x1   :  { %9810 = sst [smem:[#allocation57_spill]] %s9713_s0 }
   0x2   :  { %9811 = sst [smem:[#allocation58_spill]] %s9714_s1 }
   0x3   :  { %9812 = sst [smem:[#allocation59_spill]] %s9715_s2 }
   0x4   :  { %9813 = sst [smem:[#allocation60_spill]] %s9716_s3 }
   0x5   :  { %9814 = sst [smem:[#allocation61_spill]] %s9718_s5 }
   0x6   :  { %9815 = sst [smem:[#allocation62_spill]] %s9720_s7 }
   0x7   :  { %9816 = sst [smem:[#allocation63_spill]] %s9722_s9 }
   0x8   :  { %9817 = sst [smem:[#allocation64_spill]] %s9723_s10 }
   0x9   :  { %9818 = sst [smem:[#allocation65_spill]] %s9724_s11 }
   0xa   :  { %9819 = sst [smem:[#allocation66_spill]] %s9725_s12 }
   0xb   :  { %9820 = sst [smem:[#allocation67_spill]] %s9726_s13 }
   0xc   :  { %9821 = sst [smem:[#allocation68_spill]] %s9727_s14 }
   0xd   :  { %9822 = sst [smem:[#allocation69_spill]] %s9728_s15 }
   0xe   :  { %9823 = sst [smem:[#allocation70_spill]] %s9729_s16 }
   0xf   :  { %9824 = sst [smem:[#allocation71_spill]] %s9730_s17 }
  0x10   :  { %9825 = sst [smem:[#allocation72_spill]] %s9731_s18 }
  0x11   :  { %23 = vsyncpa [#allocation6], 0 }
  0x12   :  { %25 = vsyncpa [#allocation6 + $0x1], 0 }
  0x13   :  { %26 = vsyncpa [#allocation9], 0 }
  0x14   :  { %28 = vsyncpa [#allocation9 + $0x1], 0 }
  0x15   :  { %29 = vsyncpa [#allocation12], 0 }
  0x16   :  { %30 = vsyncpa [#allocation15], 0 }
  0x17   :  { %31 = vsyncpa [#allocation18], 0 }
  0x18   :  { %32 = vsyncpa [#allocation7], 0  ;;  %s7763_s27 = smov 0   ;;  %s7765_s28 = smov 0  }
  0x19   :  { %s7767_s29 = smov 0   ;;  %s7769_s30 = smov 0  }
  0x1a LB: > { %s7638_s0 = smov [#allocation10]   ;;  %s7784_s1 = sadd.s32 4294967295, %s7636_s30   ;;  %s7636_s30 = sphi %s7769_s30, %s9978_s30   ;;  %s7632_s29 = sphi %s7767_s29, %s9977_s29   ;;  %s7628_s28 = sphi %s7765_s28, %s9976_s28   ;;  %s7624_s27 = sphi %s7763_s27, %s9975_s27  }
  0x1b   : > { %s447_s19 = sshll.u32 %s7638_s0, 4  ;;  %p6413_p0 = scmp.ge.s32.totalorder %s7636_s30, 1  ;;  %s448_s19 = int_to_ptr.vmem [resolvable:$true] %s447_s19 }
  0x1c   : > { %p9735_p1 = scmp.eq.s32.totalorder %s7784_s1, 0  ;;  %p431_p2 = scmp.lt.s32.totalorder %s7636_s30, 3 }
  0x1d   : > { %s7639_s21 = smov [#allocation11]   ;;  %s7640_s2 = smov [#allocation14]  }
  0x1e   : > { %p7790_p4 = pnand %p6413_p0, %p431_p2  ;;  %s461_s22 = sshll.u32 %s7639_s21, 4  ;;  %s7796_s22 = int_to_ptr.vmem [resolvable:$true] %s461_s22 }
  0x1f   : > { %s485_s23 = sshll.u32 %s7640_s2, 4  ;;  %s9828_s3 = sld [smem:[#allocation60_spill]]  ;;  %s7804_s23 = int_to_ptr.vmem [resolvable:$true] %s485_s23 }
  0x20   : > { %s9826_s20 = scalar_select %p7790_p4, 1, 0 }
  0x21   : > { %p6895_p5 = pneg %p7790_p4 }
  0x23   : > { %p7800_p6 = pnand %p6895_p5, %p9735_p1 }
  0x25   : > { %s7322_s0 = scalar_lea.hbm %s9828_s3, 32  ;;  %p7814_p8 = pneg %p7800_p6 }
  0x26   : > { %p7323_p7 = scmp.ne.s32.totalorder %s9828_s3, %s7322_s0  ;;  %p7329_p11 = scmp.lt.u32.totalorder %s7322_s0, %s9828_s3 }
  0x28   : > { %p7325_p9 = pnand %p7814_p8, %p7323_p7 }
  0x2a   : > { %p7326_p10 = pneg %p7325_p9 }
  0x2c   : > { %p7331_p12 = pnand %p7329_p11, %p7326_p10 }
  0x2e   : > { %7334 = shalt.err (!%p7331_p12)
}
  0x2f   : > { %s7335_s25 = scalar_lea.vmem %s448_s19, 32  ;;  %p7343_p5 = scmp.lt.s32.totalorder %s448_s19, %s448_s19 }
  0x30   : > { %p7336_p13 = scmp.ne.s32.totalorder %s448_s19, %s7335_s25  ;;  %p7344_p3 = scmp.lt.s32.totalorder %s7335_s25, %s7335_s25 }
  0x32   : > { %p7338_p0 = pnand %p7336_p13, %p7814_p8  ;;  %p7345_p1 = por %p7344_p3, %p7343_p5 }
  0x34   : > { %p7339_p2 = pneg %p7338_p0 }
  0x36   : > { %p7346_p4 = pnand %p7345_p1, %p7339_p2 }
  0x38   : > { %7349 = shalt.err (!%p7346_p4)
}
  0x39   : > { %6898 = dma.hbm_to_vmem [thread:$0]  (!%p7800_p6), %s9828_s3, 32, %s448_s19, [#allocation9]  }
  0x3a   : > { %s9830_s5 = sld [smem:[#allocation61_spill]] }
  0x40   : > { %s7350_s0 = scalar_lea.hbm %s9830_s5, 32 }
  0x41   : > { %p7351_p7 = scmp.ne.s32.totalorder %s9830_s5, %s7350_s0  ;;  %p7357_p1 = scmp.lt.u32.totalorder %s7350_s0, %s9830_s5 }
  0x43   : > { %p7353_p9 = pnand %p7351_p7, %p7814_p8 }
  0x45   : > { %p7354_p3 = pneg %p7353_p9 }
  0x47   : > { %p7359_p4 = pnand %p7357_p1, %p7354_p3 }
  0x49   : > { %7362 = shalt.err (!%p7359_p4)
}
  0x4a   : > { %s7363_s19 = scalar_lea.vmem %s7796_s22, 32  ;;  %p7371_p13 = scmp.lt.s32.totalorder %s7796_s22, %s7796_s22 }
  0x4b   : > { %p7364_p10 = scmp.ne.s32.totalorder %s7796_s22, %s7363_s19  ;;  %p7372_p0 = scmp.lt.s32.totalorder %s7363_s19, %s7363_s19 }
  0x4d   : > { %p7366_p11 = pnand %p7364_p10, %p7814_p8  ;;  %p7373_p2 = por %p7372_p0, %p7371_p13 }
  0x4f   : > { %p7367_p12 = pneg %p7366_p11 }
  0x51   : > { %p7374_p5 = pnand %p7373_p2, %p7367_p12 }
  0x53   : > { %7377 = shalt.err (!%p7374_p5)
}
  0x54   : > { %6901 = dma.hbm_to_vmem [thread:$0]  (!%p7800_p6), %s9830_s5, 32, %s7796_s22, [#allocation12]  }
  0x55   : > { %s9831_s9 = sld [smem:[#allocation63_spill]] }
  0x5b   : > { %s7378_s15 = scalar_lea.hbm %s9831_s9, 768 }
  0x5c   : > { %p7379_p7 = scmp.ne.s32.totalorder %s9831_s9, %s7378_s15  ;;  %p7385_p1 = scmp.lt.u32.totalorder %s7378_s15, %s9831_s9 }
  0x5e   : > { %p7381_p9 = pnand %p7379_p7, %p7814_p8 }
  0x60   : > { %p7382_p3 = pneg %p7381_p9 }
  0x62   : > { %p7387_p4 = pnand %p7385_p1, %p7382_p3 }
  0x64   : > { %7390 = shalt.err (!%p7387_p4)
}
  0x65   : > { %s7391_s22 = scalar_lea.vmem %s7804_s23, 768  ;;  %p7399_p13 = scmp.lt.s32.totalorder %s7804_s23, %s7804_s23 }
  0x66   : > { %p7392_p10 = scmp.ne.s32.totalorder %s7804_s23, %s7391_s22  ;;  %p7400_p0 = scmp.lt.s32.totalorder %s7391_s22, %s7391_s22 }
  0x68   : > { %p7394_p11 = pnand %p7392_p10, %p7814_p8  ;;  %p7401_p2 = por %p7400_p0, %p7399_p13 }
  0x6a   : > { %p7395_p12 = pneg %p7394_p11 }
  0x6c   : > { %p7402_p5 = pnand %p7401_p2, %p7395_p12 }
  0x6e   : > { %7405 = shalt.err (!%p7402_p5)
}
  0x6f   : > { %s7641_s19 = smov 256   ;;  %s7642_s13 = smov 16  }
  0x70   : > { %6907 = dma.hbm_to_vmem [thread:$0]  (!%p7800_p6), %s9831_s9, 768, %s7804_s23, [#allocation15], %s7641_s19, %s7641_s19, %s7642_s13  }
  0x71   : > { %s7643_s18 = smov [#allocation13]   ;;  %s7644_s26 = smov [#allocation16]  }
  0x72   : > { %s475_s15 = sshll.u32 %s7643_s18, 4  ;;  %s498_s0 = sshll.u32 %s7644_s26, 4  ;;  %s476_s15 = int_to_ptr.vmem [resolvable:$true] %s475_s15  ;;  %s499_s0 = int_to_ptr.vmem [resolvable:$true] %s498_s0 }
  0x73   : > { %s9832_s7 = sld [smem:[#allocation62_spill]] }
  0x79   : > { %s7406_s22 = scalar_lea.hbm %s9832_s7, 16 }
  0x7a   : > { %p7407_p7 = scmp.ne.s32.totalorder %s9832_s7, %s7406_s22  ;;  %p7413_p1 = scmp.lt.u32.totalorder %s7406_s22, %s9832_s7 }
  0x7c   : > { %p7409_p9 = pnand %p7407_p7, %p7814_p8 }
  0x7e   : > { %p7410_p3 = pneg %p7409_p9 }
  0x80   : > { %p7415_p4 = pnand %p7413_p1, %p7410_p3 }
  0x82   : > { %7418 = shalt.err (!%p7415_p4)
}
  0x83   : > { %s7419_s23 = scalar_lea.vmem %s476_s15, 16  ;;  %s7426_s16 = scalar_lea.vmem %s476_s15, 32 }
  0x84   : > { %p7420_p10 = scmp.ne.s32.totalorder %s476_s15, %s7419_s23  ;;  %p7427_p13 = scmp.lt.s32.totalorder %s476_s15, %s476_s15 }
  0x85   : > { %p7428_p0 = scmp.lt.s32.totalorder %s7426_s16, %s7419_s23 }
  0x86   : > { %p7422_p11 = pnand %p7420_p10, %p7814_p8 }
  0x87   : > { %p7429_p2 = por %p7428_p0, %p7427_p13 }
  0x88   : > { %p7423_p12 = pneg %p7422_p11 }
  0x8a   : > { %p7430_p5 = pnand %p7429_p2, %p7423_p12 }
  0x8c   : > { %7433 = shalt.err (!%p7430_p5)
}
  0x8d   : > { %6904 = dma.hbm_to_vmem [thread:$0]  (!%p7800_p6), %s9832_s7, 16, %s476_s15, [#allocation12]  }
  0x8e   : > { %s9833_s10 = sld [smem:[#allocation64_spill]] }
  0x94   : > { %s7434_s17 = scalar_lea.hbm %s9833_s10, 768 }
  0x95   : > { %p7435_p7 = scmp.ne.s32.totalorder %s9833_s10, %s7434_s17  ;;  %p7441_p1 = scmp.lt.u32.totalorder %s7434_s17, %s9833_s10 }
  0x97   : > { %p7437_p9 = pnand %p7435_p7, %p7814_p8 }
  0x99   : > { %p7438_p3 = pneg %p7437_p9 }
  0x9b   : > { %p7443_p4 = pnand %p7441_p1, %p7438_p3 }
  0x9d   : > { %7446 = shalt.err (!%p7443_p4)
}
  0x9e   : > { %s7447_s22 = scalar_lea.vmem %s499_s0, 768  ;;  %p7455_p13 = scmp.lt.s32.totalorder %s499_s0, %s499_s0 }
  0x9f   : > { %p7448_p10 = scmp.ne.s32.totalorder %s499_s0, %s7447_s22  ;;  %p7456_p0 = scmp.lt.s32.totalorder %s7447_s22, %s7447_s22 }
  0xa1   : > { %p7450_p11 = pnand %p7448_p10, %p7814_p8  ;;  %p7457_p2 = por %p7456_p0, %p7455_p13 }
  0xa3   : > { %p7451_p12 = pneg %p7450_p11 }
  0xa5   : > { %p7458_p5 = pnand %p7457_p2, %p7451_p12 }
  0xa7   : > { %7461 = shalt.err (!%p7458_p5)
}
  0xa8   : > { %6910 = dma.hbm_to_vmem [thread:$0]  (!%p7800_p6), %s9833_s10, 768, %s499_s0, [#allocation15], %s7641_s19, %s7641_s19, %s7642_s13  }
  0xa9   : > { %s7645_s16 = smov [#allocation17]   ;;  %s9834_s14 = sld [smem:[#allocation68_spill]] }
  0xaa   : > { %s521_s3 = sshll.u32 %s7645_s16, 4  ;;  %s522_s3 = int_to_ptr.vmem [resolvable:$true] %s521_s3 }
  0xaf   : > { %s7462_s12 = scalar_lea.hbm %s9834_s14, 16 }
  0xb0   : > { %p7463_p7 = scmp.ne.s32.totalorder %s9834_s14, %s7462_s12  ;;  %p7469_p1 = scmp.lt.u32.totalorder %s7462_s12, %s9834_s14 }
  0xb2   : > { %p7465_p9 = pnand %p7463_p7, %p7814_p8 }
  0xb4   : > { %p7466_p3 = pneg %p7465_p9 }
  0xb6   : > { %p7471_p4 = pnand %p7469_p1, %p7466_p3 }
  0xb8   : > { %7474 = shalt.err (!%p7471_p4)
}
  0xb9   : > { %s7475_s19 = scalar_lea.vmem %s522_s3, 16  ;;  %s7482_s13 = scalar_lea.vmem %s522_s3, 32 }
  0xba   : > { %p7476_p10 = scmp.ne.s32.totalorder %s522_s3, %s7475_s19  ;;  %p7483_p13 = scmp.lt.s32.totalorder %s522_s3, %s522_s3 }
  0xbb   : > { %p7484_p0 = scmp.lt.s32.totalorder %s7482_s13, %s7475_s19 }
  0xbc   : > { %p7478_p11 = pnand %p7476_p10, %p7814_p8 }
  0xbd   : > { %p7485_p2 = por %p7484_p0, %p7483_p13 }
  0xbe   : > { %p7479_p12 = pneg %p7478_p11 }
  0xc0   : > { %p7486_p5 = pnand %p7485_p2, %p7479_p12 }
  0xc2   : > { %7489 = shalt.err (!%p7486_p5)
}
  0xc3   : > { %6913 = dma.hbm_to_vmem [thread:$0]  (!%p7800_p6), %s9834_s14, 16, %s522_s3, [#allocation18]  }
  0xc4   : > { %s7937_s21 = sadd.s32 1, %s7636_s30   ;;  %s45_s24 = sadd.s32 1, %s7632_s29 }
  0xc5   : > { %s42_s22 = ssub.s32 %s7636_s30, %s7937_s21  ;;  %p52_p8 = scmp.ne.s32.totalorder %s7632_s29, %s7628_s28 }
  0xc6   : > { %p43_p7 = scmp.eq.s32.totalorder %s42_s22, 0  ;;  %p53_p9 = scmp.eq.s32.totalorder %s7636_s30, 0 }
  0xc7   : > { %p58_p3 = scmp.ne.s32.totalorder %s7628_s28, %s7624_s27  ;;  %p6927_p1 = scmp.lt.s32.totalorder %s7636_s30, 2 }
  0xc8   : > { %s7949_s15 = scalar_select %p43_p7, %s7632_s29, %s45_s24  }
  0xc9   : > { %p54_p4 = por %p53_p9, %p52_p8  ;;  %p9835_p10 = scmp.eq.s32.totalorder %s7784_s1, 0 }
  0xca   : > { %s7958_s16 = sand.u32 1, %s7632_s29   ;;  %s6597_s3 = sshll.u32 %s7636_s30, 9 }
  0xcb   : > { %p7953_p11 = por %p9835_p10, %p58_p3  ;;  %s6421_s5 = sshll.u32 %s7958_s16, 6 }
  0xcc   : > { %s9837_s17 = sld [smem:[#allocation57_spill]]  ;;  %s545_s27 = scalar_lea.vmem [#allocation5], %s6421_s5 }
  0xcd   : > { %s552_s26 = sshll.u32 %s545_s27, 4  ;;  %p7967_p6 = pnand %p6927_p1, %p54_p4  ;;  %s7971_s26 = int_to_ptr.vmem [resolvable:$true] %s552_s26 }
  0xce   : > { %s542_s13 = scalar_lea.sflag [#allocation6], %s7958_s16 }
  0xcf   : > { %p7492_p13 = pneg %p7967_p6 }
  0xd2   : > { %s7965_s18 = scalar_lea.hbm %s9837_s17, %s6597_s3  ;;  %s7495_s22 = scalar_lea.hbm %s9837_s17, 2048 }
  0xd3   : > { %s7490_s0 = scalar_lea.hbm %s7965_s18, 1024  ;;  %p7496_p5 = scmp.lt.u32.totalorder %s7965_s18, %s9837_s17 }
  0xd4   : > { %p7491_p12 = scmp.ne.s32.totalorder %s7965_s18, %s7490_s0  ;;  %p7497_p8 = scmp.lt.u32.totalorder %s7495_s22, %s7490_s0 }
  0xd5   : > { %p7499_p9 = scmp.lt.u32.totalorder %s7490_s0, %s7965_s18 }
  0xd6   : > { %p7493_p0 = pnand %p7492_p13, %p7491_p12  ;;  %p7498_p7 = por %p7497_p8, %p7496_p5 }
  0xd8   : > { %p7494_p2 = pneg %p7493_p0  ;;  %p7500_p3 = por %p7499_p9, %p7498_p7 }
  0xda   : > { %p7501_p1 = pnand %p7500_p3, %p7494_p2 }
  0xdc   : > { %7504 = shalt.err (!%p7501_p1)
}
  0xdd   : > { %s7505_s11 = scalar_lea.vmem %s7971_s26, 1024  ;;  %s7646_s12 = smov [#allocation5]  }
  0xde   : > { %p7506_p4 = scmp.ne.s32.totalorder %s7971_s26, %s7505_s11  ;;  %s7510_s27 = sshll.u32 %s7646_s12, 4  ;;  %s7511_s27 = int_to_ptr.vmem [resolvable:$false] %s7510_s27 }
  0xdf   : > { %s7512_s25 = scalar_lea.vmem %s7511_s27, 2048  ;;  %p7513_p0 = scmp.lt.s32.totalorder %s7971_s26, %s7511_s27 }
  0xe0   : > { %p7508_p10 = pnand %p7506_p4, %p7492_p13  ;;  %p7514_p5 = scmp.lt.s32.totalorder %s7512_s25, %s7505_s11 }
  0xe2   : > { %p7509_p12 = pneg %p7508_p10  ;;  %p7515_p8 = por %p7514_p5, %p7513_p0 }
  0xe4   : > { %p7516_p7 = pnand %p7515_p8, %p7509_p12 }
  0xe6   : > { %7519 = shalt.err (!%p7516_p7)
}
  0xe7   : > { %s7647_s0 = smov 1024   ;;  %s7648_s24 = smov 512  }
  0xe8   : > { %s7649_s22 = smov 32   ;;  %s6424_s3 = sshll.u32 %s7958_s16, 9 }
  0xe9   : > { %6917 = dma.hbm_to_vmem [thread:$0]  (!%p7967_p6), %s7965_s18, 1024, %s7971_s26, %s542_s13, %s7647_s0, %s7648_s24, %s7649_s22  }
  0xea   : > { %s6599_s5 = sshll.u32 %s7636_s30, 13  ;;  %s9839_s27 = sld [smem:[#allocation58_spill]] }
  0xeb   : > { %s566_s7 = scalar_lea.vmem [#allocation8], %s6424_s3  ;;  %s9841_s10 = sand.u32 1, %s7636_s30  }
  0xec   : > { %s574_s9 = sshll.u32 %s566_s7, 4  ;;  %s8013_s14 = scalar_lea.sflag [#allocation9], %s9841_s10  ;;  %s8009_s9 = int_to_ptr.vmem [resolvable:$true] %s574_s9 }
  0xf0   : > { %s9840_s25 = smov %s9839_s27  ;;  %s8007_s19 = scalar_lea.hbm %s9839_s27, %s6599_s5 }
  0xf1   : > { %s7520_s17 = scalar_lea.hbm %s8007_s19, 8192  ;;  %s7525_s26 = scalar_lea.hbm %s9840_s25, 16384 }
  0xf2   : > { %p7521_p2 = scmp.ne.s32.totalorder %s8007_s19, %s7520_s17  ;;  %p7526_p1 = scmp.lt.u32.totalorder %s8007_s19, %s9840_s25 }
  0xf3   : > { %p7527_p4 = scmp.lt.u32.totalorder %s7525_s26, %s7520_s17  ;;  %p7529_p12 = scmp.lt.u32.totalorder %s7520_s17, %s8007_s19 }
  0xf4   : > { %p7523_p9 = pnand %p7521_p2, %p7492_p13 }
  0xf5   : > { %p7528_p10 = por %p7527_p4, %p7526_p1 }
  0xf6   : > { %p7524_p3 = pneg %p7523_p9 }
  0xf7   : > { %p7530_p0 = por %p7529_p12, %p7528_p10 }
  0xf9   : > { %p7531_p5 = pnand %p7530_p0, %p7524_p3 }
  0xfb   : > { %7534 = shalt.err (!%p7531_p5)
}
  0xfc   : > { %s7535_s7 = scalar_lea.vmem %s8009_s9, 8192  ;;  %s7650_s10 = smov [#allocation8]  }
  0xfd   : > { %p7536_p8 = scmp.ne.s32.totalorder %s8009_s9, %s7535_s7  ;;  %s7540_s30 = sshll.u32 %s7650_s10, 4  ;;  %s7541_s30 = int_to_ptr.vmem [resolvable:$false] %s7540_s30 }
  0xfe   : > { %s7542_s24 = scalar_lea.vmem %s7541_s30, 16384  ;;  %p7543_p9 = scmp.lt.s32.totalorder %s8009_s9, %s7541_s30 }
  0xff   : > { %p7538_p7 = pnand %p7536_p8, %p7492_p13  ;;  %p7544_p1 = scmp.lt.s32.totalorder %s7542_s24, %s7535_s7 }
 0x101   : > { %p7539_p2 = pneg %p7538_p7  ;;  %p7545_p4 = por %p7544_p1, %p7543_p9 }
 0x103   : > { %p7546_p10 = pnand %p7545_p4, %p7539_p2 }
 0x105   : > { %7549 = shalt.err (!%p7546_p10)
}
 0x106   : > { %s7651_s17 = smov 128   ;;  %s7652_s22 = smov 8  }
 0x107   : > { %6920 = dma.hbm_to_vmem [thread:$0]  (!%p7967_p6), %s8007_s19, 8192, %s8009_s9, %s8013_s14, %s7651_s17, %s7651_s17, %s7652_s22  }
 0x108   : > { %p9842_p13 = scmp.ne.s32.totalorder %s9826_s20, 0 }
 0x109   : > { %s588_s3 = sand.u32 (!%p9842_p13), 1, %s7628_s28  }
 0x10a   : > { %586 = sbr.rel (%p9842_p13) target bundleno = 5133 (0x140d), region = 88  ;;  %s6429_s5 = sshll.u32 (!%p9842_p13), %s588_s3, 6 }
 0x10b   : > { %s589_s11 = scalar_lea.sflag (!%p9842_p13), [#allocation6], %s588_s3  ;;  %s8042_s12 = scalar_lea.vmem (!%p9842_p13), [#allocation5], %s6429_s5 }
 0x111   : > { %7593 = dma.done.wait (%p7953_p11), %s589_s11, 1024  }
 0x112   : > { %7595 = vsyncadd (%p7953_p11), %s589_s11, 4294966272  ;;  %s597_s27 = sand.u32 1, %s7784_s1   ;;  %s6430_s2 = sshll.u32 %s588_s3, 9 }
 0x113   : > { %s598_s9 = scalar_lea.sflag [#allocation9], %s597_s27  ;;  %s8049_s14 = scalar_lea.vmem [#allocation8], %s6430_s2 }
 0x114   : > { %7597 = dma.done.wait (%p7953_p11), %s598_s9, 8192  }
 0x115   : > { %7599 = vsyncadd (%p7953_p11), %s598_s9, 4294959104  ;;  %p9843_p6 = scmp.eq.s32.totalorder %s7784_s1, 0 }
 0x117   : > { %7601 = dma.done.wait (%p9843_p6), [#allocation9], 32   ;;  %p9844_p3 = pmov %p9843_p6 }
 0x119   : > { %7603 = vsyncadd (%p9844_p3), [#allocation9], 4294967264  ;;  %p9845_p12 = pmov %p9844_p3 }
 0x11a   : > { %p9846_p0 = pmov %p9844_p3 }
 0x11b   : > { %7605 = dma.done.wait (%p9845_p12), [#allocation12], 48  }
 0x11c   : > { %7607 = vsyncadd (%p9846_p0), [#allocation12], 4294967248  ;;  %p9847_p5 = pmov %p9846_p0 }
 0x11d   : > { %p9848_p8 = pmov %p9846_p0 }
 0x11e   : > { %7609 = dma.done.wait (%p9847_p5), [#allocation15], 1536  }
 0x11f   : > { %7611 = vsyncadd (%p9848_p8), [#allocation15], 4294965760  ;;  %p9849_p11 = pmov %p9846_p0 }
 0x120   : > { %p9850_p7 = pmov %p9846_p0 }
 0x121   : > { %7613 = dma.done.wait (%p9849_p11), [#allocation18], 16  }
 0x122   : > { %7615 = vsyncadd (%p9850_p7), [#allocation18], 4294967280  ;;  %p9851_p2 = scmp.ne.s32.totalorder %s7784_s1, 0 }
 0x124   : > { %682 = sbr.rel (%p9851_p2) target bundleno = 311 (0x137), region = 124 }
 0x12b   : > { %s691_s20 = sld [smem:[#allocation0]]   ;;  %v7653_v0 = vmov 0.0   ;;  %s7654_s23 = smov [#allocation3]  }
 0x12c   : > { %683 = vst [vmem:[#allocation2] sm:$0xff] %v7653_v0  ;;  %684 = vst [vmem:[#allocation2 + $0x8] sm:$0xff] %v7653_v0  ;;  %s699_s19 = sshll.u32 %s7654_s23, 4  ;;  %s7655_s16 = smov 256   ;;  %s700_s19 = int_to_ptr.vmem [resolvable:$true] %s699_s19 }
 0x12d   : > { %685 = vst [vmem:[#allocation2 + $0x10] sm:$0xff] %v7653_v0  ;;  %686 = vst [vmem:[#allocation2 + $0x18] sm:$0xff] %v7653_v0  ;;  %703 = sst [smem:[#allocation21]] %s7655_s16  ;;  %s7656_s18 = smov 2  }
 0x12e   : > { %705 = sst [smem:[#allocation21 + $0x1]] %s7655_s16  ;;  %s7657_s26 = smov 64  }
 0x12f   : > { %707 = sst [smem:[#allocation21 + $0x2]] %s7656_s18  ;;  %s7658_s0 = smov 128  }
 0x130   : > { %709 = sst [smem:[#allocation21 + $0x3]] %s7657_s26  ;;  %s7659_s10 = smov 4  }
 0x131   : > { %s6438_s13 = sshll.u32 %s691_s20, 26  ;;  %711 = sst [smem:[#allocation21 + $0x4]] %s7658_s0 }
 0x132   : > { %s6439_s7 = sadd.s32 134217728, %s6438_s13  ;;  %713 = sst [smem:[#allocation21 + $0x5]] %s7656_s18 }
 0x133   : > { %715 = sst [smem:[#allocation21 + $0x6]] %s7658_s0  ;;  %s7660_s30 = smov [#allocation4]  }
 0x134   : > { %717 = sst [smem:[#allocation21 + $0x7]] %s7657_s26  ;;  %s7661_s24 = smov [#allocation20]  }
 0x135   : > { %719 = sst [smem:[#allocation21 + $0x8]] %s7659_s10 }
 0x136   : > { %721 = dma.general %s9721_s8, 12288, %s700_s19, %s7660_s30, %s7661_s24, [#allocation21], %s6439_s7, 0  }
 0x137 PF: > { %v6996_v1 = vld [vmem:[%s8049_s14 + $0x4] ss:$8 sps:$4 sm:$0xff]   ;;  %v7000_v3 = vld [vmem:[%s8049_s14] ss:$8 sps:$4 sm:$0xff]   ;;  %v7002_v5 = vld [vmem:[%s8049_s14 + $0x14] ss:$8 sps:$4 sm:$0xff]  }
 0x138   : > { %v6998_v2 = vld [vmem:[%s8049_s14 + $0x104] ss:$8 sps:$4 sm:$0xff]   ;;  %1122 = vmatprep.subr.bf16.mxu1 %v6996_v1  ;;  %v7001_v4 = vld [vmem:[%s8049_s14 + $0x100] ss:$8 sps:$4 sm:$0xff]   ;;  %v7004_v6 = vld [vmem:[%s8049_s14 + $0x114] ss:$8 sps:$4 sm:$0xff]  }
 0x139   : > { %1165 = vmatprep.subr.bf16.mxu0 %v6998_v2  ;;  %1123 = vmatpush1.bf16.msra.mxu1 %v7000_v3  ;;  %v7006_v7 = vld [vmem:[%s8049_s14 + $0x10] ss:$8 sps:$4 sm:$0xff]   ;;  %v7008_v9 = vld [vmem:[%s8049_s14 + $0x24] ss:$8 sps:$4 sm:$0xff]   ;;  %v7012_v11 = vld [vmem:[%s8049_s14 + $0x20] ss:$8 sps:$4 sm:$0xff]  }
 0x13a   : > { %1166 = vmatpush1.bf16.msra.mxu0 %v7001_v4  ;;  %1124 = vmatprep.subr.bf16.mxu1 %v7002_v5  ;;  %v7007_v8 = vld [vmem:[%s8049_s14 + $0x110] ss:$8 sps:$4 sm:$0xff]   ;;  %v7010_v10 = vld [vmem:[%s8049_s14 + $0x124] ss:$8 sps:$4 sm:$0xff]   ;;  %v7013_v12 = vld [vmem:[%s8049_s14 + $0x120] ss:$8 sps:$4 sm:$0xff]  }
 0x13b   : > { %1167 = vmatprep.subr.bf16.mxu0 %v7004_v6  ;;  %v7014_v13 = vld [vmem:[%s8049_s14 + $0x34] ss:$8 sps:$4 sm:$0xff]   ;;  %v7018_v15 = vld [vmem:[%s8049_s14 + $0x30] ss:$8 sps:$4 sm:$0xff]   ;;  %v7020_v17 = vld [vmem:[%s8049_s14 + $0x44] ss:$8 sps:$4 sm:$0xff]  }
 0x13c   : > { %v7016_v14 = vld [vmem:[%s8049_s14 + $0x134] ss:$8 sps:$4 sm:$0xff]   ;;  %v7019_v16 = vld [vmem:[%s8049_s14 + $0x130] ss:$8 sps:$4 sm:$0xff]   ;;  %v7022_v18 = vld [vmem:[%s8049_s14 + $0x144] ss:$8 sps:$4 sm:$0xff]  }
 0x13d   : > { %1125 = vmatpush1.bf16.msra.mxu1 %v7006_v7  ;;  %v7024_v19 = vld [vmem:[%s8049_s14 + $0x40] ss:$8 sps:$4 sm:$0xff]   ;;  %v7026_v21 = vld [vmem:[%s8049_s14 + $0x54] ss:$8 sps:$4 sm:$0xff]   ;;  %v7030_v23 = vld [vmem:[%s8049_s14 + $0x50] ss:$8 sps:$4 sm:$0xff]  }
 0x13e   : > { %1168 = vmatpush1.bf16.msra.mxu0 %v7007_v8  ;;  %1126 = vmatprep.subr.bf16.mxu1 %v7008_v9  ;;  %v7025_v20 = vld [vmem:[%s8049_s14 + $0x140] ss:$8 sps:$4 sm:$0xff]   ;;  %v7028_v22 = vld [vmem:[%s8049_s14 + $0x154] ss:$8 sps:$4 sm:$0xff]   ;;  %v7031_v24 = vld [vmem:[%s8049_s14 + $0x150] ss:$8 sps:$4 sm:$0xff]  }
 0x13f   : > { %1169 = vmatprep.subr.bf16.mxu0 %v7010_v10  ;;  %v7032_v25 = vld [vmem:[%s8049_s14 + $0x64] ss:$8 sps:$4 sm:$0xff]   ;;  %v7036_v27 = vld [vmem:[%s8049_s14 + $0x60] ss:$8 sps:$4 sm:$0xff]   ;;  %v7038_v29 = vld [vmem:[%s8049_s14 + $0x74] ss:$8 sps:$4 sm:$0xff]  }
 0x140   : > { %v7034_v26 = vld [vmem:[%s8049_s14 + $0x164] ss:$8 sps:$4 sm:$0xff]   ;;  %v7037_v28 = vld [vmem:[%s8049_s14 + $0x160] ss:$8 sps:$4 sm:$0xff]   ;;  %v7040_v30 = vld [vmem:[%s8049_s14 + $0x174] ss:$8 sps:$4 sm:$0xff]  }
 0x141   : > { %1127 = vmatpush1.bf16.msra.mxu1 %v7012_v11  ;;  %v7042_v31 = vld [vmem:[%s8049_s14 + $0x70] ss:$8 sps:$4 sm:$0xff]   ;;  %v7044_v33 = vld [vmem:[%s8049_s14 + $0x84] ss:$8 sps:$4 sm:$0xff]   ;;  %v7048_v35 = vld [vmem:[%s8049_s14 + $0x80] ss:$8 sps:$4 sm:$0xff]  }
 0x142   : > { %1170 = vmatpush1.bf16.msra.mxu0 %v7013_v12  ;;  %1128 = vmatprep.subr.bf16.mxu1 %v7014_v13  ;;  %v7043_v32 = vld [vmem:[%s8049_s14 + $0x170] ss:$8 sps:$4 sm:$0xff]   ;;  %v7046_v34 = vld [vmem:[%s8049_s14 + $0x184] ss:$8 sps:$4 sm:$0xff]   ;;  %v7049_v36 = vld [vmem:[%s8049_s14 + $0x180] ss:$8 sps:$4 sm:$0xff]  }
 0x143   : > { %1171 = vmatprep.subr.bf16.mxu0 %v7016_v14  ;;  %v7050_v37 = vld [vmem:[%s8049_s14 + $0x94] ss:$8 sps:$4 sm:$0xff]   ;;  %v7054_v39 = vld [vmem:[%s8049_s14 + $0x90] ss:$8 sps:$4 sm:$0xff]   ;;  %v7056_v41 = vld [vmem:[%s8049_s14 + $0xa4] ss:$8 sps:$4 sm:$0xff]  }
 0x144   : > { %v7052_v38 = vld [vmem:[%s8049_s14 + $0x194] ss:$8 sps:$4 sm:$0xff]   ;;  %v7055_v40 = vld [vmem:[%s8049_s14 + $0x190] ss:$8 sps:$4 sm:$0xff]   ;;  %v7058_v42 = vld [vmem:[%s8049_s14 + $0x1a4] ss:$8 sps:$4 sm:$0xff]  }
 0x145   : > { %1129 = vmatpush1.bf16.msra.mxu1 %v7018_v15  ;;  %v7060_v43 = vld [vmem:[%s8049_s14 + $0xa0] ss:$8 sps:$4 sm:$0xff]   ;;  %v7062_v45 = vld [vmem:[%s8049_s14 + $0xb4] ss:$8 sps:$4 sm:$0xff]   ;;  %v7066_v51 = vld [vmem:[%s8049_s14 + $0xb0] ss:$8 sps:$4 sm:$0xff]  }
 0x146   : > { %1172 = vmatpush1.bf16.msra.mxu0 %v7019_v16  ;;  %1130 = vmatprep.subr.bf16.mxu1 %v7020_v17  ;;  %v7061_v44 = vld [vmem:[%s8049_s14 + $0x1a0] ss:$8 sps:$4 sm:$0xff]   ;;  %v7064_v46 = vld [vmem:[%s8049_s14 + $0x1b4] ss:$8 sps:$4 sm:$0xff]   ;;  %v7067_v52 = vld [vmem:[%s8049_s14 + $0x1b0] ss:$8 sps:$4 sm:$0xff]  }
 0x147   : > { %1173 = vmatprep.subr.bf16.mxu0 %v7022_v18  ;;  %v727_v47 = vld [vmem:[%s8042_s12 + $0x8] sm:$0xff]  ;;  %v729_v49 = vld [vmem:[%s8042_s12 + $0x18] sm:$0xff]  ;;  %v726_v7 = vld [vmem:[%s8042_s12] sm:$0xff]  ;;  %p6504_p9 = scmp.ne.s32.totalorder %s7784_s1, 1 }
 0x148   : > { %v731_v48 = vld [vmem:[%s8042_s12 + $0x28] sm:$0xff]  ;;  %v733_v50 = vld [vmem:[%s8042_s12 + $0x38] sm:$0xff]  ;;  %v730_v8 = vld [vmem:[%s8042_s12 + $0x20] sm:$0xff] }
 0x149   : > { %1131 = vmatpush1.bf16.msra.mxu1 %v7024_v19  ;;  %v735_v53 = vpack.c.bf16 %v731_v48, %v727_v47  ;;  %v737_v54 = vpack.c.bf16 %v733_v50, %v729_v49  ;;  %v7068_v55 = vld [vmem:[%s8049_s14 + $0xc4] ss:$8 sps:$4 sm:$0xff]   ;;  %v7072_v57 = vld [vmem:[%s8049_s14 + $0xc0] ss:$8 sps:$4 sm:$0xff]   ;;  %v7074_v59 = vld [vmem:[%s8049_s14 + $0xd4] ss:$8 sps:$4 sm:$0xff]   ;;  %v734_v11 = vpack.c.bf16 %v730_v8, %v726_v7 }
 0x14a   : > { %1174 = vmatpush1.bf16.msra.mxu0 %v7025_v20  ;;  %1132 = vmatprep.subr.bf16.mxu1 %v7026_v21  ;;  %v7070_v56 = vld [vmem:[%s8049_s14 + $0x1c4] ss:$8 sps:$4 sm:$0xff]   ;;  %v7073_v58 = vld [vmem:[%s8049_s14 + $0x1c0] ss:$8 sps:$4 sm:$0xff]   ;;  %v7076_v60 = vld [vmem:[%s8049_s14 + $0x1d4] ss:$8 sps:$4 sm:$0xff]  }
 0x14b   : > { %1175 = vmatprep.subr.bf16.mxu0 %v7028_v22  ;;  %1154 = vmatprep.mubr.bf16.mxu1 %v735_v53  ;;  %v7078_v61 = vld [vmem:[%s8049_s14 + $0xd0] ss:$8 sps:$4 sm:$0xff]   ;;  %v7080_v63 = vld [vmem:[%s8049_s14 + $0xe4] ss:$8 sps:$4 sm:$0xff]   ;;  %v7084_v1 = vld [vmem:[%s8049_s14 + $0xe0] ss:$8 sps:$4 sm:$0xff]  }
 0x14c   : > { %1197 = vmatprep.mubr.bf16.mxu0 %v737_v54  ;;  %v7079_v62 = vld [vmem:[%s8049_s14 + $0x1d0] ss:$8 sps:$4 sm:$0xff]   ;;  %v7082_v0 = vld [vmem:[%s8049_s14 + $0x1e4] ss:$8 sps:$4 sm:$0xff]   ;;  %v7085_v2 = vld [vmem:[%s8049_s14 + $0x1e0] ss:$8 sps:$4 sm:$0xff]  }
 0x14d   : > { %1133 = vmatpush1.bf16.msra.mxu1 %v7030_v23  ;;  %v7086_v3 = vld [vmem:[%s8049_s14 + $0xf4] ss:$8 sps:$4 sm:$0xff]   ;;  %v7090_v5 = vld [vmem:[%s8049_s14 + $0xf0] ss:$8 sps:$4 sm:$0xff]   ;;  %v722_v14 = vld [vmem:[#allocation2] sm:$0xff] }
 0x14e   : > { %1176 = vmatpush1.bf16.msra.mxu0 %v7031_v24  ;;  %1134 = vmatprep.subr.bf16.mxu1 %v7032_v25  ;;  %v7088_v4 = vld [vmem:[%s8049_s14 + $0x1f4] ss:$8 sps:$4 sm:$0xff]   ;;  %v7091_v6 = vld [vmem:[%s8049_s14 + $0x1f0] ss:$8 sps:$4 sm:$0xff]   ;;  %v723_v18 = vld [vmem:[#allocation2 + $0x8] sm:$0xff] }
 0x14f   : > { %1177 = vmatprep.subr.bf16.mxu0 %v7034_v26  ;;  %v728_v9 = vld [vmem:[%s8042_s12 + $0x10] sm:$0xff] }
 0x150   : > { %v732_v10 = vld [vmem:[%s8042_s12 + $0x30] sm:$0xff] }
 0x151   : > { %1135 = vmatpush1.bf16.msra.mxu1 %v7036_v27  ;;  %v736_v12 = vpack.c.bf16 %v732_v10, %v728_v9  ;;  %v724_v22 = vld [vmem:[#allocation2 + $0x10] sm:$0xff]  ;;  %v725_v27 = vld [vmem:[#allocation2 + $0x18] sm:$0xff] }
 0x152   : > { %1178 = vmatpush1.bf16.msra.mxu0 %v7037_v28  ;;  %1136 = vmatprep.subr.bf16.mxu1 %v7038_v29 }
 0x153   : > { %1179 = vmatprep.subr.bf16.mxu0 %v7040_v30 }
 0x155   : > { %1137 = vmatpush1.bf16.msra.mxu1 %v7042_v31 }
 0x156   : > { %1180 = vmatpush1.bf16.msra.mxu0 %v7043_v32  ;;  %1138 = vmatprep.subr.bf16.mxu1 %v7044_v33 }
 0x157   : > { %1181 = vmatprep.subr.bf16.mxu0 %v7046_v34 }
 0x159   : > { %1139 = vmatpush1.bf16.msra.mxu1 %v7048_v35 }
 0x15a   : > { %1182 = vmatpush1.bf16.msra.mxu0 %v7049_v36  ;;  %1140 = vmatprep.subr.bf16.mxu1 %v7050_v37 }
 0x15b   : > { %1183 = vmatprep.subr.bf16.mxu0 %v7052_v38 }
 0x15d   : > { %1141 = vmatpush1.bf16.msra.mxu1 %v7054_v39 }
 0x15e   : > { %1184 = vmatpush1.bf16.msra.mxu0 %v7055_v40  ;;  %1142 = vmatprep.subr.bf16.mxu1 %v7056_v41 }
 0x15f   : > { %1185 = vmatprep.subr.bf16.mxu0 %v7058_v42 }
 0x161   : > { %1143 = vmatpush1.bf16.msra.mxu1 %v7060_v43 }
 0x162   : > { %1186 = vmatpush1.bf16.msra.mxu0 %v7061_v44  ;;  %1144 = vmatprep.subr.bf16.mxu1 %v7062_v45 }
 0x163   : > { %1187 = vmatprep.subr.bf16.mxu0 %v7064_v46 }
 0x165   : > { %1145 = vmatpush1.bf16.msra.mxu1 %v7066_v51 }
 0x166   : > { %1188 = vmatpush1.bf16.msra.mxu0 %v7067_v52  ;;  %1146 = vmatprep.subr.bf16.mxu1 %v7068_v55 }
 0x167   : > { %1189 = vmatprep.subr.bf16.mxu0 %v7070_v56 }
 0x169   : > { %1147 = vmatpush1.bf16.msra.mxu1 %v7072_v57 }
 0x16a   : > { %1190 = vmatpush1.bf16.msra.mxu0 %v7073_v58  ;;  %1148 = vmatprep.subr.bf16.mxu1 %v7074_v59 }
 0x16b   : > { %1191 = vmatprep.subr.bf16.mxu0 %v7076_v60 }
 0x16d   : > { %1149 = vmatpush1.bf16.msra.mxu1 %v7078_v61 }
 0x16e   : > { %1192 = vmatpush1.bf16.msra.mxu0 %v7079_v62  ;;  %1150 = vmatprep.subr.bf16.mxu1 %v7080_v63 }
 0x16f   : > { %1193 = vmatprep.subr.bf16.mxu0 %v7082_v0 }
 0x171   : > { %1151 = vmatpush1.bf16.msra.mxu1 %v7084_v1 }
 0x172   : > { %1194 = vmatpush1.bf16.msra.mxu0 %v7085_v2  ;;  %1152 = vmatprep.subr.bf16.mxu1 %v7086_v3 }
 0x173   : > { %1195 = vmatprep.subr.bf16.mxu0 %v7088_v4 }
 0x175   : > { %1153 = vmatpush1.bf16.msra.mxu1 %v7090_v5 }
 0x176   : > { %1196 = vmatpush1.bf16.msra.mxu0 %v7091_v6 }
 0x178   : > { %1155 = vmatmul.mubr.bf16.vlgmr.msra.gmra.mrb[0].mxu1 %v734_v11 }
 0x179   : > { %1198 = vmatmul.mubr.bf16.vlgmr.msra.gmra.mrb[0].mxu0 %v736_v12 }
 0x24b   : > { %v1156_v13 = vpop.f32.mrb[0].mxu1 }
 0x24c   : > { %v1199_v15 = vpop.f32.mrb[0].mxu0  ;;  %v1158_v17 = vpop.f32.mrb[1].mxu1 }
 0x24d   : > { %v1200_v16 = vadd.f32 %v1199_v15, %v1156_v13  ;;  %v1201_v19 = vpop.f32.mrb[1].mxu0  ;;  %v1160_v21 = vpop.f32.mrb[2].mxu1 }
 0x24e   : > { %v1202_v20 = vadd.f32 %v1201_v19, %v1158_v17  ;;  %v1203_v23 = vpop.f32.mrb[2].mxu0  ;;  %v1162_v26 = vpop.f32.mrb[3].mxu1  ;;  %1219 = sbr.rel (%p6504_p9) target bundleno = 5102 (0x13ee), region = 128 }
 0x24f   : > { %v1208_v24 = vadd.f32 %v1200_v16, %v722_v14  ;;  %v1204_v25 = vadd.f32 %v1203_v23, %v1160_v21  ;;  %v1205_v28 = vpop.f32.mrb[3].mxu0 }
 0x250   : > { %v1209_v29 = vadd.f32 %v1202_v20, %v723_v18  ;;  %v1206_v30 = vadd.f32 %v1205_v28, %v1162_v26 }
 0x251   : > { %1212 = vst [vmem:[#allocation2] sm:$0xff] %v1208_v24  ;;  %v1210_v31 = vadd.f32 %v1204_v25, %v724_v22 }
 0x252   : > { %1213 = vst [vmem:[#allocation2 + $0x8] sm:$0xff] %v1209_v29  ;;  %v1211_v32 = vadd.f32 %v1206_v30, %v725_v27 }
 0x253   : > { %1214 = vst [vmem:[#allocation2 + $0x10] sm:$0xff] %v1210_v31 }
 0x254   : > { %1215 = vst [vmem:[#allocation2 + $0x18] sm:$0xff] %v1211_v32 }
 0x255   : > { %v1310_v33 = vld [vmem:[%s9719_s6] sm:$0xff]  ;;  %v7662_v34 = vmov 0   ;;  %v1311_v35 = vld [vmem:[%s9719_s6 + $0x8] sm:$0xff]  ;;  %v7663_v37 = vmov 1   ;;  %vm1337_vm0 = vcmask 130048   ;;  %v9742_v41 = vmov 0.0  }
 0x256   : > { %7092 = vset.pattern.permute.xlu0 %v7662_v34  ;;  %7093 = vset.pattern.permute.xlu1 %v7662_v34  ;;  %v1268_v36 = vld [vmem:[%s9717_s4] sm:$0xff]  ;;  %v1269_v38 = vld [vmem:[%s9717_s4 + $0x8] sm:$0xff]  ;;  %v9852_v56 = vmov 0  ;;  %v1238_v58 = vlaneseq  ;;  %s9857_s19 = sld [smem:[#allocation59_spill]] }
 0x257   : > { %1314 = vperm.xlu0 %7092, %v1310_v33   ;;  %v8161_v39 = vld [vmem:[#allocation13] ss:$0 sm:$0xff]  ;;  %v6505_v48 = vld [vmem:[#allocation11] ss:$0 sm:$0xff]  ;;  %v6506_v49 = vld [vmem:[#allocation11 + $0x1] ss:$0 sm:$0xff] }
 0x258   : > { %v8188_v59 = vshrl.u32 %v1238_v58, 7  ;;  %v1220_v60 = vld [vmem:[#allocation2] sm:$0xff] }
 0x259   : > { %v1221_v61 = vld [vmem:[#allocation2 + $0x8] sm:$0xff]  ;;  %v1228_v2 = vmul.f32 0.01, %v1220_v60  ;;  %vm1224_vm5 = vcmp.gt.f32.partialorder %v1220_v60, 0.0  ;;  %v1252_v9 = vld [vmem:[#allocation10] sm:$0x3] }
 0x25a   : > { %9856 = vst [vmem:[#allocation32_spill] sm:$0xff] %v8188_v59  ;;  %v1222_v62 = vld [vmem:[#allocation2 + $0x10] sm:$0xff]  ;;  %v8191_v63 = vsub.s32 0, %v8188_v59  ;;  %v8194_v0 = vsub.s32 1, %v8188_v59  ;;  %v1229_v3 = vmul.f32 0.01, %v1221_v61 }
 0x25b   : > { %1317 = vperm.xlu0 %7092, %v1311_v35   ;;  %v1223_v1 = vld [vmem:[#allocation2 + $0x18] sm:$0xff]  ;;  %vm1225_vm6 = vcmp.gt.f32.partialorder %v1221_v61, 0.0  ;;  %vm1226_vm7 = vcmp.gt.f32.partialorder %v1222_v62, 0.0  ;;  %v1230_v5 = vmul.f32 0.01, %v1222_v62  ;;  %v1232_v7 = vsel %vm1224_vm5, %v1220_v60, %v1228_v2 }
 0x25c   : > { %vm1227_vm8 = vcmp.gt.f32.partialorder %v1223_v1, 0.0  ;;  %v1236_v4 = vld [vmem:[%s9857_s19] sm:$0x3]  ;;  %v1231_v6 = vmul.f32 0.01, %v1223_v1  ;;  %v1233_v8 = vsel %vm1225_vm6, %v1221_v61, %v1229_v3  ;;  %v1257_v12 = vrot.slane %v1252_v9, %v8191_v63 }
 0x25d   : > { %v1241_v10 = vrot.slane %v1236_v4, %v8191_v63  ;;  %v1245_v11 = vrot.slane %v1236_v4, %v8194_v0  ;;  %v1261_v13 = vrot.slane %v1252_v9, %v8194_v0  ;;  %v1234_v14 = vsel %vm1226_vm7, %v1222_v62, %v1230_v5 }
 0x25e   : > { %v1235_v15 = vsel %vm1227_vm8, %v1223_v1, %v1231_v6 }
 0x25f   : > { %1273 = vperm.xlu0 %7092, %v1268_v36   ;;  %v1248_v16 = vmul.f32 %v1241_v10, %v1232_v7  ;;  %v1249_v17 = vmul.f32 %v1245_v11, %v1233_v8  ;;  %v1250_v18 = vmul.f32 %v1241_v10, %v1234_v14  ;;  %v1251_v19 = vmul.f32 %v1245_v11, %v1235_v15 }
 0x261   : > { %v8203_v20 = vadd.f32 %v1257_v12, %v1248_v16  ;;  %v1265_v21 = vadd.f32 %v1261_v13, %v1249_v17  ;;  %v8205_v22 = vadd.f32 %v1257_v12, %v1250_v18  ;;  %v1267_v23 = vadd.f32 %v1261_v13, %v1251_v19 }
 0x263   : > { %7094 = vset.pattern.permute.xlu0 %v7663_v37 }
 0x264   : > { %1293 = vperm.xlu0 %7094, %v1268_v36  }
 0x268   : > { %1297 = vperm.xlu0 %7094, %v1269_v38  }
 0x26c   : > { %7095 = vset.pattern.permute.xlu0 %v7662_v34 }
 0x2d6   : > { %v1315_v40 = vpop.permute.xlu0 %1314 }
 0x2d7   : > { %vm1323_vm1 = vcmp.eq.s32.totalorder %v1315_v40, %v8161_v39 }
 0x2d8   : > { %v6510_v42 = vsel %vm1323_vm1, 1.0, %v9742_v41 }
 0x2d9   : > { %v1338_v43 = vsel %vm1337_vm0, %v6510_v42, 0.0  ;;  %v9858_v42 = vmov 0 }
 0x2da   : > { %1339 = vadd.xlane.f32.xlu1 %v1338_v43  ;;  %v8168_v44 = vpop.permute.xlu0 %1317 }
 0x2db   : > { %vm1324_vm2 = vcmp.eq.s32.totalorder %v8168_v44, %v8161_v39 }
 0x2dc   : > { %v6511_v45 = vsel %vm1324_vm2, 1.0, %v9742_v41 }
 0x2dd   : > { %v1341_v46 = vsel %vm1337_vm0, %v6511_v45, 0.0 }
 0x2de   : > { %1342 = vadd.xlane.f32.xlu1 %v1341_v46  ;;  %v1274_v47 = vpop.permute.xlu0 %1273 }
 0x2df   : > { %v1285_v50 = vsub.f32 %v1274_v47, %v6505_v48 }
 0x2e1   : > { %v1287_v53 = vmul.f32 %v1285_v50, %v1285_v50 }
 0x2e3   : > { %v1294_v51 = vpop.permute.xlu0 %1293 }
 0x2e4   : > { %v1304_v52 = vsub.f32 %v1294_v51, %v6506_v49 }
 0x2e6   : > { %v1306_v54 = vmul.f32 %v1304_v52, %v1304_v52 }
 0x2e7   : > { %v1298_v25 = vpop.permute.xlu0 %1297 }
 0x2e8   : > { %v1308_v55 = vadd.f32 %v1306_v54, %v1287_v53  ;;  %v1305_v27 = vsub.f32 %v1298_v25, %v6506_v49 }
 0x2ea   : > { %vm1325_vm3 = vcmp.le.f32.partialorder %v1308_v55, 16.0  ;;  %v1307_v29 = vmul.f32 %v1305_v27, %v1305_v27 }
 0x2eb   : > { %vm8179_vm4 = vmand %vm1325_vm3, %vm1323_vm1 }
 0x2ec   : > { %v9853_v56 = vsel %vm8179_vm4, 4294967295, %v9852_v56  ;;  %v8186_v57 = vsel %vm8179_vm4, 1.0, %v9742_v41 }
 0x2ed   : > { %9854 = vst [vmem:[#allocation30_spill] sm:$0xff] %v9853_v56  ;;  %9855 = vst [vmem:[#allocation31_spill] sm:$0xff] %v8186_v57 }
 0x2ef   : > { %1278 = vperm.xlu1 %7093, %v1269_v38  }
 0x367   : > { %v1340_v24 = vpop.xlane.xlu1 %1339 }
 0x368   : > { %7096 = vrsqrt.f32 %v1340_v24  ;;  %vm1346_vm9 = vcmp.eq.f32.partialorder %v1340_v24, inf  ;;  %v1349_v34 = vand.u32 2147483648, %v1340_v24  ;;  %vm1348_vm10 = vcmp.eq.f32.partialorder %v1340_v24, 0.0 }
 0x36b   : > { %v1343_v26 = vpop.xlane.xlu1 %1342 }
 0x36c   : > { %7098 = vrsqrt.f32 %v1343_v26  ;;  %vm1353_vm13 = vcmp.eq.f32.partialorder %v1343_v26, inf  ;;  %v1356_v43 = vand.u32 2147483648, %v1343_v26  ;;  %vm1355_vm14 = vcmp.eq.f32.partialorder %v1343_v26, 0.0 }
 0x36f   : > { %v1279_v28 = vpop.permute.xlu1 %1278 }
 0x370   : > { %v1286_v30 = vsub.f32 %v1279_v28, %v6505_v48 }
 0x372   : > { %v7097_v31 = vpop.eup %7096  ;;  %v1288_v32 = vmul.f32 %v1286_v30, %v1286_v30 }
 0x373   : > { %v1345_v33 = vmul.f32 %v7097_v31, %v1340_v24 }
 0x374   : > { %v1309_v35 = vadd.f32 %v1307_v29, %v1288_v32 }
 0x375   : > { %v1347_v36 = vsel %vm1346_vm9, %v1340_v24, %v1345_v33 }
 0x376   : > { %v7099_v37 = vpop.eup %7098  ;;  %v1350_v38 = vsel %vm1348_vm10, %v1349_v34, %v1347_v36  ;;  %vm1326_vm11 = vcmp.le.f32.partialorder %v1309_v35, 16.0 }
 0x377   : > { %7100 = vrcp.f32 %v1350_v38  ;;  %v1352_v40 = vmul.f32 %v7099_v37, %v1343_v26  ;;  %vm8210_vm12 = vmand %vm1326_vm11, %vm1324_vm2 }
 0x378   : > { %v9859_v42 = vsel %vm8210_vm12, 4294967295, %v9858_v42  ;;  %v8217_v45 = vsel %vm8210_vm12, 1.0, %v9742_v41 }
 0x379   : > { %9860 = vst [vmem:[#allocation33_spill] sm:$0xff] %v9859_v42  ;;  %v1354_v46 = vsel %vm1353_vm13, %v1343_v26, %v1352_v40 }
 0x37a   : > { %v1357_v47 = vsel %vm1355_vm14, %v1356_v43, %v1354_v46 }
 0x37b   : > { %7102 = vrcp.f32 %v1357_v47 }
 0x381   : > { %v8219_v48 = vpop.eup %7100 }
 0x385   : > { %v8221_v49 = vpop.eup %7102 }
 0x386   : > { %9861 = vst [vmem:[#allocation34_spill] sm:$0xff] %v8221_v49 }
 0x387   : > { %7616 = dma.done.wait [#allocation4], 12288 }
 0x388   : > { %7617 = vsyncadd [#allocation4], 4294955008  ;;  %v1368_v39 = vpack.c.bf16 %v1267_v23, %v1265_v21  ;;  %v1370_v44 = vld [vmem:[#allocation3 + $0x8] sm:$0xff]  ;;  %v1369_v50 = vld [vmem:[#allocation3] sm:$0xff]  ;;  %v1367_v24 = vpack.c.bf16 %v8205_v22, %v8203_v20  ;;  %s9862_s26 = sld [smem:[#allocation65_spill]]  ;;  %s9897_s20 = sld [smem:[#allocation66_spill]] }
 0x389   : > { %v1372_v51 = vld [vmem:[#allocation3 + $0x18] sm:$0xff]  ;;  %1401 = vmatprep.subr.bf16.mxu0 %v1370_v44  ;;  %v1371_v52 = vld [vmem:[#allocation3 + $0x10] sm:$0xff]  ;;  %v1374_v53 = vld [vmem:[#allocation3 + $0x28] sm:$0xff]  ;;  %s9970_s7 = sld [smem:[#allocation67_spill]]  ;;  %s9971_s23 = sld [smem:[#allocation70_spill]] }
 0x38a   : > { %1433 = vmatprep.mubr.bf16.mxu0 %v1368_v39  ;;  %1402 = vmatpush1.bf16.msra.mxu0 %v1369_v50  ;;  %v1373_v54 = vld [vmem:[#allocation3 + $0x20] sm:$0xff]  ;;  %v1376_v55 = vld [vmem:[#allocation3 + $0x38] sm:$0xff]  ;;  %v1375_v58 = vld [vmem:[#allocation3 + $0x30] sm:$0xff]  ;;  %s9972_s9 = sld [smem:[#allocation69_spill]]  ;;  %s9973_s16 = sld [smem:[#allocation71_spill]] }
 0x38b   : > { %1403 = vmatprep.subr.bf16.mxu0 %v1372_v51  ;;  %v1378_v60 = vld [vmem:[#allocation3 + $0x48] sm:$0xff]  ;;  %v1377_v61 = vld [vmem:[#allocation3 + $0x40] sm:$0xff]  ;;  %v1380_v62 = vld [vmem:[#allocation3 + $0x58] sm:$0xff] }
 0x38c   : > { %v1379_v1 = vld [vmem:[#allocation3 + $0x50] sm:$0xff]  ;;  %v1382_v2 = vld [vmem:[#allocation3 + $0x68] sm:$0xff]  ;;  %v1381_v3 = vld [vmem:[#allocation3 + $0x60] sm:$0xff] }
 0x38d   : > { %v1384_v4 = vld [vmem:[#allocation3 + $0x78] sm:$0xff]  ;;  %v1383_v5 = vld [vmem:[#allocation3 + $0x70] sm:$0xff]  ;;  %v1386_v6 = vld [vmem:[#allocation3 + $0x88] sm:$0xff] }
 0x38e   : > { %1404 = vmatpush1.bf16.msra.mxu0 %v1371_v52  ;;  %v1385_v7 = vld [vmem:[#allocation3 + $0x80] sm:$0xff]  ;;  %v1388_v8 = vld [vmem:[#allocation3 + $0x98] sm:$0xff]  ;;  %v1387_v9 = vld [vmem:[#allocation3 + $0x90] sm:$0xff] }
 0x38f   : > { %1405 = vmatprep.subr.bf16.mxu0 %v1374_v53  ;;  %v1390_v10 = vld [vmem:[#allocation3 + $0xa8] sm:$0xff]  ;;  %v1389_v11 = vld [vmem:[#allocation3 + $0xa0] sm:$0xff]  ;;  %v1392_v12 = vld [vmem:[#allocation3 + $0xb8] sm:$0xff] }
 0x390   : > { %v1391_v13 = vld [vmem:[#allocation3 + $0xb0] sm:$0xff]  ;;  %v1394_v14 = vld [vmem:[#allocation3 + $0xc8] sm:$0xff]  ;;  %v1393_v15 = vld [vmem:[#allocation3 + $0xc0] sm:$0xff] }
 0x391   : > { %v1396_v16 = vld [vmem:[#allocation3 + $0xd8] sm:$0xff]  ;;  %v1395_v17 = vld [vmem:[#allocation3 + $0xd0] sm:$0xff]  ;;  %v1398_v18 = vld [vmem:[#allocation3 + $0xe8] sm:$0xff] }
 0x392   : > { %1406 = vmatpush1.bf16.msra.mxu0 %v1373_v54  ;;  %v1397_v19 = vld [vmem:[#allocation3 + $0xe0] sm:$0xff]  ;;  %v1400_v21 = vld [vmem:[#allocation3 + $0xf8] sm:$0xff]  ;;  %v1399_v23 = vld [vmem:[#allocation3 + $0xf0] sm:$0xff] }
 0x393   : > { %1407 = vmatprep.subr.bf16.mxu0 %v1376_v55  ;;  %v1445_v25 = vld [vmem:[#allocation16 + $0x8] sm:$0xff]  ;;  %v1517_v26 = vld [vmem:[#allocation14 + $0x8] sm:$0xff]  ;;  %v2091_v20 = vld [vmem:[%s9862_s26 + $0x6] sm:$0x3] }
 0x394   : > { %1582 = vmatprep.mubr.f32.mxu1 %v1517_v26  ;;  %v2088_v27 = vld [vmem:[%s9862_s26] sm:$0x3]  ;;  %v2089_v28 = vld [vmem:[%s9862_s26 + $0x2] sm:$0x3]  ;;  %v2090_v29 = vld [vmem:[%s9862_s26 + $0x4] sm:$0x3]  ;;  %v8253_v34 = vrot.slane %v2091_v20, %v8191_v63  ;;  %v8271_v43 = vrot.slane %v2091_v20, %v8194_v0 }
 0x395   : > { %v2092_v22 = vld [vmem:[%s9862_s26 + $0x8] sm:$0x3]  ;;  %v2093_v30 = vld [vmem:[%s9862_s26 + $0xa] sm:$0x3]  ;;  %v8244_v31 = vrot.slane %v2088_v27, %v8191_v63  ;;  %v8247_v32 = vrot.slane %v2089_v28, %v8191_v63  ;;  %v8250_v33 = vrot.slane %v2090_v29, %v8191_v63  ;;  %v2094_v35 = vld [vmem:[%s9862_s26 + $0xc] sm:$0x3]  ;;  %v8262_v37 = vrot.slane %v2088_v27, %v8194_v0 }
 0x396   : > { %1408 = vmatpush1.bf16.msra.mxu0 %v1375_v58  ;;  %9865 = vst [vmem:[#allocation37_spill] sm:$0xff] %v8253_v34  ;;  %v2095_v36 = vld [vmem:[%s9862_s26 + $0xe] sm:$0x3]  ;;  %v8265_v38 = vrot.slane %v2089_v28, %v8194_v0  ;;  %v8268_v40 = vrot.slane %v2090_v29, %v8194_v0  ;;  %9869 = vst [vmem:[#allocation41_spill] sm:$0xff] %v8271_v43  ;;  %v8274_v46 = vrot.slane %v2092_v22, %v8191_v63 }
 0x397   : > { %1409 = vmatprep.subr.bf16.mxu0 %v1378_v60  ;;  %9863 = vst [vmem:[#allocation35_spill] sm:$0xff] %v8247_v32  ;;  %9864 = vst [vmem:[#allocation36_spill] sm:$0xff] %v8250_v33  ;;  %v8277_v47 = vrot.slane %v2092_v22, %v8194_v0  ;;  %v8280_v39 = vrot.slane %v2093_v30, %v8191_v63  ;;  %v8283_v44 = vrot.slane %v2093_v30, %v8194_v0 }
 0x398   : > { %9866 = vst [vmem:[#allocation38_spill] sm:$0xff] %v8262_v37  ;;  %9867 = vst [vmem:[#allocation39_spill] sm:$0xff] %v8265_v38  ;;  %v8286_v51 = vrot.slane %v2094_v35, %v8191_v63  ;;  %v8289_v52 = vrot.slane %v2094_v35, %v8194_v0  ;;  %v8292_v53 = vrot.slane %v2095_v36, %v8191_v63 }
 0x399   : > { %9868 = vst [vmem:[#allocation40_spill] sm:$0xff] %v8268_v40  ;;  %9870 = vst [vmem:[#allocation42_spill] sm:$0xff] %v8274_v46  ;;  %v8295_v54 = vrot.slane %v2095_v36, %v8194_v0 }
 0x39a   : > { %1410 = vmatpush1.bf16.msra.mxu0 %v1377_v61  ;;  %9871 = vst [vmem:[#allocation43_spill] sm:$0xff] %v8277_v47  ;;  %9872 = vst [vmem:[#allocation44_spill] sm:$0xff] %v8280_v39 }
 0x39b   : > { %1411 = vmatprep.subr.bf16.mxu0 %v1380_v62  ;;  %9873 = vst [vmem:[#allocation45_spill] sm:$0xff] %v8283_v44  ;;  %9874 = vst [vmem:[#allocation46_spill] sm:$0xff] %v8286_v51 }
 0x39c   : > { %9875 = vst [vmem:[#allocation47_spill] sm:$0xff] %v8289_v52  ;;  %9876 = vst [vmem:[#allocation48_spill] sm:$0xff] %v8292_v53 }
 0x39d   : > { %9877 = vst [vmem:[#allocation49_spill] sm:$0xff] %v8295_v54 }
 0x39e   : > { %1412 = vmatpush1.bf16.msra.mxu0 %v1379_v1 }
 0x39f   : > { %1413 = vmatprep.subr.bf16.mxu0 %v1382_v2 }
 0x3a2   : > { %1414 = vmatpush1.bf16.msra.mxu0 %v1381_v3 }
 0x3a3   : > { %1415 = vmatprep.subr.bf16.mxu0 %v1384_v4 }
 0x3a6   : > { %1416 = vmatpush1.bf16.msra.mxu0 %v1383_v5 }
 0x3a7   : > { %1417 = vmatprep.subr.bf16.mxu0 %v1386_v6 }
 0x3aa   : > { %1418 = vmatpush1.bf16.msra.mxu0 %v1385_v7 }
 0x3ab   : > { %1419 = vmatprep.subr.bf16.mxu0 %v1388_v8 }
 0x3ae   : > { %1420 = vmatpush1.bf16.msra.mxu0 %v1387_v9 }
 0x3af   : > { %1421 = vmatprep.subr.bf16.mxu0 %v1390_v10 }
 0x3b2   : > { %1422 = vmatpush1.bf16.msra.mxu0 %v1389_v11 }
 0x3b3   : > { %1423 = vmatprep.subr.bf16.mxu0 %v1392_v12 }
 0x3b6   : > { %1424 = vmatpush1.bf16.msra.mxu0 %v1391_v13 }
 0x3b7   : > { %1425 = vmatprep.subr.bf16.mxu0 %v1394_v14 }
 0x3ba   : > { %1426 = vmatpush1.bf16.msra.mxu0 %v1393_v15 }
 0x3bb   : > { %1427 = vmatprep.subr.bf16.mxu0 %v1396_v16 }
 0x3be   : > { %1428 = vmatpush1.bf16.msra.mxu0 %v1395_v17 }
 0x3bf   : > { %1429 = vmatprep.subr.bf16.mxu0 %v1398_v18 }
 0x3c2   : > { %1430 = vmatpush1.bf16.msra.mxu0 %v1397_v19 }
 0x3c3   : > { %1431 = vmatprep.subr.bf16.mxu0 %v1400_v21 }
 0x3c6   : > { %1432 = vmatpush1.bf16.msra.mxu0 %v1399_v23 }
 0x3c9   : > { %1434 = vmatmul.mubr.bf16.vlgmr.msra.gmra.mrb[0].mxu0 %v1367_v24 }
 0x3ca   : > { %1510 = vmatprep.mubr.f32.mxu0 %v1445_v25 }
 0x49c   : > { %v1435_v50 = vpop.f32.mrb[0].mxu0 }
 0x49d   : > { %v1437_v55 = vpop.f32.mrb[1].mxu0  ;;  %v2184_v58 = vmul.f32 %v8244_v31, %v1435_v50  ;;  %v2188_v60 = vmul.f32 %v8247_v32, %v1435_v50  ;;  %v8300_v61 = vmul.f32 %v8250_v33, %v1435_v50  ;;  %v8303_v62 = vmul.f32 %v8253_v34, %v1435_v50 }
 0x49e   : > { %v1439_v1 = vpop.f32.mrb[2].mxu0  ;;  %v2185_v2 = vmul.f32 %v8262_v37, %v1437_v55  ;;  %v2189_v3 = vmul.f32 %v8265_v38, %v1437_v55  ;;  %v2193_v4 = vmul.f32 %v8268_v40, %v1437_v55  ;;  %v8309_v5 = vmul.f32 %v8271_v43, %v1437_v55 }
 0x49f   : > { %v1441_v6 = vpop.f32.mrb[3].mxu0  ;;  %v6653_v7 = vpack.c.bf16 %v1439_v1, %v1435_v50  ;;  %v2186_v8 = vmul.f32 %v8244_v31, %v1439_v1  ;;  %v2190_v9 = vmul.f32 %v8247_v32, %v1439_v1  ;;  %v8314_v10 = vmul.f32 %v8250_v33, %v1439_v1 }
 0x4a0   : > { %v6651_v11 = vpack.c.bf16 %v1441_v6, %v1437_v55  ;;  %v2187_v12 = vmul.f32 %v8262_v37, %v1441_v6  ;;  %v2191_v13 = vmul.f32 %v8265_v38, %v1441_v6  ;;  %v2195_v14 = vmul.f32 %v8268_v40, %v1441_v6 }
 0x4a1   : > { %v6661_v15 = vpack.c.bf16 %v2186_v8, %v2184_v58  ;;  %v6665_v16 = vpack.c.bf16 %v2190_v9, %v2188_v60  ;;  %v8322_v18 = vmul.f32 %v8271_v43, %v1441_v6  ;;  %v8327_v25 = vmul.f32 %v8253_v34, %v1439_v1 }
 0x4a2   : > { %6652 = vmatprep.subr.bf16.mxu0 %v6651_v11  ;;  %6656 = vmatprep.subr.bf16.mxu1 %v6651_v11  ;;  %v6659_v19 = vpack.c.bf16 %v2187_v12, %v2185_v2  ;;  %v6663_v21 = vpack.c.bf16 %v2191_v13, %v2189_v3  ;;  %v6667_v23 = vpack.c.bf16 %v2195_v14, %v2193_v4  ;;  %v1444_v3 = vld [vmem:[#allocation16] sm:$0xff]  ;;  %v1516_v4 = vld [vmem:[#allocation14] sm:$0xff]  ;;  %v8415_v12 = vsub.s32 6, %v8188_v59 }
 0x4a3   : > { %6654 = vmatpush1.bf16.xpose.msra.mxu0 %v6653_v7  ;;  %6658 = vmatpush1.bf16.xpose.msra.mxu1 %v6653_v7  ;;  %v8330_v26 = vmul.f32 %v8277_v47, %v1437_v55  ;;  %v8333_v27 = vmul.f32 %v8277_v47, %v1441_v6  ;;  %v8336_v28 = vmul.f32 %v8274_v46, %v1435_v50 }
 0x4a4   : > { %6660 = vmatprep.subr.bf16.mxu0 %v6659_v19  ;;  %6664 = vmatprep.subr.bf16.mxu1 %v6663_v21  ;;  %v8339_v29 = vmul.f32 %v8274_v46, %v1439_v1  ;;  %v8344_v22 = vmul.f32 %v8283_v44, %v1437_v55  ;;  %v8347_v30 = vmul.f32 %v8283_v44, %v1441_v6  ;;  %v8411_v19 = vsub.s32 5, %v8188_v59 }
 0x4a5   : > { %v8350_v35 = vmul.f32 %v8280_v39, %v1435_v50  ;;  %v8357_v60 = vmul.f32 %v8280_v39, %v1439_v1  ;;  %v8360_v2 = vmul.f32 %v8289_v52, %v1437_v55  ;;  %v8365_v8 = vmul.f32 %v8289_v52, %v1441_v6  ;;  %9882 = vst [vmem:[#allocation54_spill] sm:$0xff] %v8415_v12 }
 0x4a6   : > { %v8368_v9 = vmul.f32 %v8286_v51, %v1435_v50  ;;  %v8371_v11 = vmul.f32 %v8286_v51, %v1439_v1  ;;  %v8376_v13 = vmul.f32 %v8295_v54, %v1437_v55  ;;  %v8379_v14 = vmul.f32 %v8295_v54, %v1441_v6  ;;  %9881 = vst [vmem:[#allocation53_spill] sm:$0xff] %v8411_v19 }
 0x4a7   : > { %v8386_v7 = vmul.f32 %v8292_v53, %v1435_v50  ;;  %v8389_v58 = vmul.f32 %v8292_v53, %v1439_v1  ;;  %v8398_v50 = vsub.s32 2, %v8188_v59  ;;  %v8407_v6 = vsub.s32 4, %v8188_v59 }
 0x4a9   : > { %9878 = vst [vmem:[#allocation50_spill] sm:$0xff] %v8398_v50  ;;  %9880 = vst [vmem:[#allocation52_spill] sm:$0xff] %v8407_v6 }
 0x4aa   : > { %1511 = vmatmul.mubr.f32.vlgmr.msra.gmra.mrb[4].mxu0 %v1444_v3  ;;  %1583 = vmatmul.mubr.f32.vlgmr.msra.gmra.mrb[0].mxu1 %v1516_v4 }
 0x4ab   : > { %6662 = vmatpush1.bf16.msra.mxu0 %v6661_v15  ;;  %6666 = vmatpush1.bf16.msra.mxu1 %v6665_v16  ;;  %v8403_v16 = vsub.s32 3, %v8188_v59 }
 0x4ac   : > { %6668 = vmatprep.subr.bf16.mxu1 %v6667_v23  ;;  %2369 = vmatprep.mubr.f32.mxu1 %v9742_v41 }
 0x4ad   : > { %2286 = vmatprep.mubr.f32.mxu0 %v9742_v41  ;;  %9879 = vst [vmem:[#allocation51_spill] sm:$0xff] %v8403_v16 }
 0x57d   : > { %v1512_v1 = vpop.f32.mrb[4].mxu0  ;;  %v1584_v21 = vpop.f32.mrb[0].mxu1 }
 0x57e   : > { %v1514_v3 = vpop.f32.mrb[5].mxu0  ;;  %v1613_v4 = vrot.slane %v1512_v1, %v8398_v50  ;;  %v1602_v55 = vrot.slane %v1512_v1, %v8194_v0  ;;  %v1586_v15 = vpop.f32.mrb[1].mxu1  ;;  %v1624_v23 = vrot.slane %v1512_v1, %v8403_v16  ;;  %v1591_v36 = vrot.slane %v1512_v1, %v8191_v63 }
 0x57f   : > { %v1635_v3 = vrot.slane %v1512_v1, %v8407_v6  ;;  %v1646_v15 = vrot.slane %v1512_v1, %v8411_v19 }
 0x580   : > { %1615 = vbcast.lane.b32.xlu1 %v1613_v4, 256  ;;  %1604 = vbcast.lane.b32.xlu0 %v1602_v55, 256 }
 0x584   : > { %1619 = vbcast.lane.b32.xlu1 %v1613_v4, 264  ;;  %1608 = vbcast.lane.b32.xlu0 %v1602_v55, 264  ;;  %v1657_v55 = vrot.slane %v1512_v1, %v8415_v12  ;;  %v8419_v4 = vsub.s32 7, %v8188_v59 }
 0x586   : > { %9883 = vst [vmem:[#allocation55_spill] sm:$0xff] %v8419_v4 }
 0x588   : > { %1630 = vbcast.lane.b32.xlu1 %v1624_v23, 264  ;;  %1626 = vbcast.lane.b32.xlu0 %v1624_v23, 256  ;;  %v1668_v23 = vrot.slane %v1512_v1, %v8419_v4 }
 0x58c   : > { %1641 = vbcast.lane.b32.xlu1 %v1635_v3, 264  ;;  %1637 = vbcast.lane.b32.xlu0 %v1635_v3, 256  ;;  %v7665_v3 = vmov 1966171168  }
 0x58d   : > { %v1679_v20 = vunpack.c.l.s4 %v7665_v3  ;;  %v1677_v3 = vcombine.high %v1584_v21, %v1584_v21 }
 0x58f   : > { %v1680_v24 = vunpack.c.0.s8 %v1679_v20 }
 0x590   : > { %1652 = vbcast.lane.b32.xlu1 %v1646_v15, 264  ;;  %1648 = vbcast.lane.b32.xlu0 %v1646_v15, 256 }
 0x591   : > { %v8424_v15 = vsub.s32 %v1680_v24, %v8188_v59 }
 0x593   : > { %9884 = vst [vmem:[#allocation56_spill] sm:$0xff] %v8424_v15  ;;  %v1684_v41 = vrot.slane %v1584_v21, %v8424_v15  ;;  %v1691_v19 = vrot.slane %v1677_v3, %v8424_v15 }
 0x594   : > { %1663 = vbcast.lane.b32.xlu1 %v1657_v55, 264  ;;  %1659 = vbcast.lane.b32.xlu0 %v1657_v55, 256 }
 0x595   : > { %v1692_v17 = vcombine.high %v1684_v41, %v1684_v41  ;;  %v8428_v12 = vrot.slane %v1684_v41, %v8424_v15  ;;  %v1693_v52 = vcombine.high %v1691_v19, %v1691_v19 }
 0x597   : > { %v1722_v55 = vcombine.high %v8428_v12, %v8428_v12  ;;  %v1714_v1 = vrot.slane %v1692_v17, %v8424_v15 }
 0x598   : > { %1670 = vbcast.lane.b32.xlu1 %v1668_v23, 256  ;;  %1593 = vbcast.lane.b32.xlu0 %v1591_v36, 256 }
 0x599   : > { %v1724_v6 = vcombine.high %v1714_v1, %v1714_v1 }
 0x59b   : > { %v1741_v3 = vrot.slane %v1724_v6, %v8191_v63 }
 0x59c   : > { %1674 = vbcast.lane.b32.xlu1 %v1668_v23, 264  ;;  %1597 = vbcast.lane.b32.xlu0 %v1591_v36, 264  ;;  %v1737_v23 = vrot.slane %v1722_v55, %v8191_v63  ;;  %v1733_v36 = vrot.slane %v1714_v1, %v8191_v63 }
 0x5f2   : > { %v1616_v20 = vpop.permute.xlu1 %1615  ;;  %v1605_v4 = vpop.permute.xlu0 %1604 }
 0x5f3   : > { %v1770_v24 = vadd.f32 %v1737_v23, %v1616_v20  ;;  %v1768_v59 = vadd.f32 %v1733_v36, %v1605_v4  ;;  %v1707_v4 = vrot.slane %v1691_v19, %v8424_v15 }
 0x5f5   : > { %vm1784_vm15 = vcmp.gt.f32.partialorder %v1768_v59, 0.0  ;;  %v1800_v41 = vmul.f32 0.2, %v1768_v59  ;;  %vm1786_vm1 = vcmp.gt.f32.partialorder %v1770_v24, 0.0  ;;  %v1802_v16 = vmul.f32 0.2, %v1770_v24 }
 0x5f6   : > { %v1620_v50 = vpop.permute.xlu1 %1619  ;;  %v1609_v53 = vpop.permute.xlu0 %1608  ;;  %v1745_v19 = vrot.slane %v1707_v4, %v8191_v63 }
 0x5f7   : > { %v1771_v54 = vadd.f32 %v1737_v23, %v1620_v50  ;;  %v1769_v17 = vadd.f32 %v1733_v36, %v1609_v53  ;;  %v1816_v51 = vsel %vm1784_vm15, %v1768_v59, %v1800_v41  ;;  %v1818_v55 = vsel %vm1786_vm1, %v1770_v24, %v1802_v16 }
 0x5f8   : > { %v8438_v21 = vsel %vm8179_vm4, %v1816_v51, -1e+30  ;;  %v8446_v59 = vsel %vm8179_vm4, %v1818_v55, -1e+30  ;;  %v1721_v23 = vrot.slane %v1693_v52, %v8424_v15 }
 0x5f9   : > { %v1854_v1 = vsel %vm1337_vm0, %v8438_v21, -inf  ;;  %vm1785_vm2 = vcmp.gt.f32.partialorder %v1769_v17, 0.0  ;;  %v1801_v20 = vmul.f32 0.2, %v1769_v17  ;;  %vm1787_vm3 = vcmp.gt.f32.partialorder %v1771_v54, 0.0 }
 0x5fa   : > { %v1631_v39 = vpop.permute.xlu1 %1630  ;;  %v1627_v44 = vpop.permute.xlu0 %1626  ;;  %1855 = vmax.xlane.f32.xlu0 %v1854_v1  ;;  %v1803_v53 = vmul.f32 0.2, %v1771_v54  ;;  %v1860_v41 = vsel %vm1337_vm0, %v8446_v59, -inf }
 0x5fb   : > { %v1773_v51 = vadd.f32 %v1741_v3, %v1631_v39  ;;  %v1772_v50 = vadd.f32 %v1741_v3, %v1627_v44  ;;  %v1817_v16 = vsel %vm1785_vm2, %v1769_v17, %v1801_v20  ;;  %v1749_v20 = vrot.slane %v1721_v23, %v8191_v63 }
 0x5fc   : > { %v8451_v6 = vsel %vm8210_vm12, %v1817_v16, -1e+30  ;;  %v1819_v36 = vsel %vm1787_vm3, %v1771_v54, %v1803_v53  ;;  %v1723_v16 = vcombine.high %v1707_v4, %v1707_v4 }
 0x5fd   : > { %v1857_v24 = vsel %vm1337_vm0, %v8451_v6, -inf  ;;  %vm1788_vm5 = vcmp.gt.f32.partialorder %v1772_v50, 0.0  ;;  %v1804_v55 = vmul.f32 0.2, %v1772_v50  ;;  %v8460_v17 = vsel %vm8210_vm12, %v1819_v36, -1e+30 }
 0x5fe   : > { %v1642_v39 = vpop.permute.xlu1 %1641  ;;  %1858 = vmax.xlane.f32.xlu1 %v1857_v24  ;;  %v1638_v44 = vpop.permute.xlu0 %1637  ;;  %1861 = vmax.xlane.f32.xlu0 %v1860_v41  ;;  %vm1789_vm6 = vcmp.gt.f32.partialorder %v1773_v51, 0.0  ;;  %v1805_v3 = vmul.f32 0.2, %v1773_v51  ;;  %v1863_v36 = vsel %vm1337_vm0, %v8460_v17, -inf }
 0x5ff   : > { %v1775_v52 = vadd.f32 %v1745_v19, %v1642_v39  ;;  %v1774_v54 = vadd.f32 %v1745_v19, %v1638_v44  ;;  %v1820_v1 = vsel %vm1788_vm5, %v1772_v50, %v1804_v55  ;;  %v1753_v44 = vrot.slane %v1723_v16, %v8191_v63 }
 0x600   : > { %v8465_v53 = vsel %vm8179_vm4, %v1820_v1, -1e+30  ;;  %v1821_v15 = vsel %vm1789_vm6, %v1773_v51, %v1805_v3  ;;  %v1725_v1 = vcombine.high %v1721_v23, %v1721_v23 }
 0x601   : > { %v1866_v24 = vsel %vm1337_vm0, %v8465_v53, -inf  ;;  %vm1790_vm7 = vcmp.gt.f32.partialorder %v1774_v54, 0.0  ;;  %v1806_v41 = vmul.f32 0.2, %v1774_v54  ;;  %v8473_v50 = vsel %vm8210_vm12, %v1821_v15, -1e+30 }
 0x602   : > { %v1653_v46 = vpop.permute.xlu1 %1652  ;;  %1867 = vmax.xlane.f32.xlu1 %v1866_v24  ;;  %v1649_v19 = vpop.permute.xlu0 %1648  ;;  %1864 = vmax.xlane.f32.xlu0 %v1863_v36  ;;  %vm1791_vm8 = vcmp.gt.f32.partialorder %v1775_v52, 0.0  ;;  %v1807_v55 = vmul.f32 0.2, %v1775_v52  ;;  %v1869_v15 = vsel %vm1337_vm0, %v8473_v50, -inf }
 0x603   : > { %v1777_v4 = vadd.f32 %v1749_v20, %v1653_v46  ;;  %v1776_v51 = vadd.f32 %v1749_v20, %v1649_v19  ;;  %v1822_v39 = vsel %vm1790_vm7, %v1774_v54, %v1806_v41  ;;  %v1757_v41 = vrot.slane %v1725_v1, %v8191_v63 }
 0x604   : > { %v8478_v3 = vsel %vm8179_vm4, %v1822_v39, -1e+30  ;;  %v1823_v47 = vsel %vm1791_vm8, %v1775_v52, %v1807_v55  ;;  %v1729_v55 = vrot.slane %v8428_v12, %v8191_v63 }
 0x605   : > { %v1872_v24 = vsel %vm1337_vm0, %v8478_v3, -inf  ;;  %vm1792_vm9 = vcmp.gt.f32.partialorder %v1776_v51, 0.0  ;;  %v1808_v36 = vmul.f32 0.2, %v1776_v51  ;;  %v8486_v54 = vsel %vm8210_vm12, %v1823_v47, -1e+30 }
 0x606   : > { %v1664_v43 = vpop.permute.xlu1 %1663  ;;  %1873 = vmax.xlane.f32.xlu1 %v1872_v24  ;;  %v1660_v46 = vpop.permute.xlu0 %1659  ;;  %1870 = vmax.xlane.f32.xlu0 %v1869_v15  ;;  %vm1793_vm10 = vcmp.gt.f32.partialorder %v1777_v4, 0.0  ;;  %v1809_v20 = vmul.f32 0.2, %v1777_v4  ;;  %v1875_v47 = vsel %vm1337_vm0, %v8486_v54, -inf }
 0x607   : > { %v1779_v23 = vadd.f32 %v1753_v44, %v1664_v43  ;;  %v1778_v52 = vadd.f32 %v1753_v44, %v1660_v46  ;;  %v1824_v16 = vsel %vm1792_vm9, %v1776_v51, %v1808_v36 }
 0x608   : > { %v8491_v19 = vsel %vm8179_vm4, %v1824_v16, -1e+30  ;;  %v1825_v39 = vsel %vm1793_vm10, %v1777_v4, %v1809_v20 }
 0x609   : > { %v1878_v24 = vsel %vm1337_vm0, %v8491_v19, -inf  ;;  %vm1794_vm11 = vcmp.gt.f32.partialorder %v1778_v52, 0.0  ;;  %v1810_v43 = vmul.f32 0.2, %v1778_v52  ;;  %v8501_v1 = vsel %vm8210_vm12, %v1825_v39, -1e+30 }
 0x60a   : > { %v1671_v44 = vpop.permute.xlu1 %1670  ;;  %1879 = vmax.xlane.f32.xlu1 %v1878_v24  ;;  %1876 = vmax.xlane.f32.xlu0 %v1875_v47  ;;  %v1594_v51 = vpop.permute.xlu0 %1593  ;;  %vm1795_vm13 = vcmp.gt.f32.partialorder %v1779_v23, 0.0  ;;  %v1811_v15 = vmul.f32 0.2, %v1779_v23  ;;  %v1881_v24 = vsel %vm1337_vm0, %v8501_v1, -inf }
 0x60b   : > { %v1780_v12 = vadd.f32 %v1757_v41, %v1671_v44  ;;  %v1766_v4 = vadd.f32 %v1729_v55, %v1594_v51  ;;  %v1826_v36 = vsel %vm1794_vm11, %v1778_v52, %v1810_v43 }
 0x60c   : > { %v8505_v46 = vsel %vm8179_vm4, %v1826_v36, -1e+30  ;;  %v1827_v20 = vsel %vm1795_vm13, %v1779_v23, %v1811_v15 }
 0x60d   : > { %v1884_v16 = vsel %vm1337_vm0, %v8505_v46, -inf  ;;  %vm1782_vm14 = vcmp.gt.f32.partialorder %v1766_v4, 0.0  ;;  %v1798_v47 = vmul.f32 0.2, %v1766_v4  ;;  %v8513_v52 = vsel %vm8210_vm12, %v1827_v20, -1e+30 }
 0x60e   : > { %v1675_v39 = vpop.permute.xlu1 %1674  ;;  %1885 = vmax.xlane.f32.xlu1 %v1884_v16  ;;  %1882 = vmax.xlane.f32.xlu0 %v1881_v24  ;;  %v1598_v40 = vpop.permute.xlu0 %1597  ;;  %vm1796_vm15 = vcmp.gt.f32.partialorder %v1780_v12, 0.0  ;;  %v1812_v43 = vmul.f32 0.2, %v1780_v12  ;;  %v1887_v38 = vsel %vm1337_vm0, %v8513_v52, -inf }
 0x60f   : > { %v1781_v44 = vadd.f32 %v1757_v41, %v1675_v39  ;;  %v1767_v23 = vadd.f32 %v1729_v55, %v1598_v40  ;;  %v1814_v51 = vsel %vm1782_vm14, %v1766_v4, %v1798_v47 }
 0x610   : > { %v8517_v15 = vsel %vm8179_vm4, %v1814_v51, -1e+30  ;;  %v1828_v36 = vsel %vm1796_vm15, %v1780_v12, %v1812_v43 }
 0x611   : > { %v1848_v16 = vsel %vm1337_vm0, %v8517_v15, -inf  ;;  %vm1783_vm1 = vcmp.gt.f32.partialorder %v1767_v23, 0.0  ;;  %v1799_v24 = vmul.f32 0.2, %v1767_v23  ;;  %v8525_v41 = vsel %vm8179_vm4, %v1828_v36, -1e+30 }
 0x612   : > { %1888 = vmax.xlane.f32.xlu0 %v1887_v38  ;;  %1849 = vmax.xlane.f32.xlu1 %v1848_v16  ;;  %vm1797_vm2 = vcmp.gt.f32.partialorder %v1781_v44, 0.0  ;;  %v1813_v40 = vmul.f32 0.2, %v1781_v44  ;;  %v1890_v20 = vsel %vm1337_vm0, %v8525_v41, -inf }
 0x613   : > { %v1815_v55 = vsel %vm1783_vm1, %v1767_v23, %v1799_v24 }
 0x614   : > { %v8529_v12 = vsel %vm8210_vm12, %v1815_v55, -1e+30  ;;  %v1829_v4 = vsel %vm1797_vm2, %v1781_v44, %v1813_v40 }
 0x615   : > { %v1851_v47 = vsel %vm1337_vm0, %v8529_v12, -inf  ;;  %v8537_v38 = vsel %vm8210_vm12, %v1829_v4, -1e+30 }
 0x616   : > { %1891 = vmax.xlane.f32.xlu0 %v1890_v20  ;;  %1852 = vmax.xlane.f32.xlu1 %v1851_v47  ;;  %v1893_v39 = vsel %vm1337_vm0, %v8537_v38, -inf }
 0x61a   : > { %1894 = vmax.xlane.f32.xlu0 %v1893_v39 }
 0x687   : > { %v1856_v43 = vpop.xlane.xlu0 %1855 }
 0x688   : > { %v1898_v23 = vsub.f32 %v8438_v21, %v1856_v43 }
 0x68a   : > { %v1916_v44 = vmul.f32 1.442695, %v1898_v23 }
 0x68b   : > { %v1859_v51 = vpop.xlane.xlu1 %1858  ;;  %v1862_v36 = vpop.xlane.xlu0 %1861 }
 0x68c   : > { %7128 = vpow2.f32 %v1916_v44  ;;  %v1899_v16 = vsub.f32 %v8451_v6, %v1859_v51  ;;  %v1900_v24 = vsub.f32 %v8446_v59, %v1862_v36 }
 0x68e   : > { %v1918_v40 = vmul.f32 1.442695, %v1899_v16  ;;  %v1920_v55 = vmul.f32 1.442695, %v1900_v24 }
 0x68f   : > { %v1868_v20 = vpop.xlane.xlu1 %1867  ;;  %v1865_v4 = vpop.xlane.xlu0 %1864 }
 0x690   : > { %7130 = vpow2.f32 %v1918_v40  ;;  %v1902_v47 = vsub.f32 %v8465_v53, %v1868_v20  ;;  %v1901_v39 = vsub.f32 %v8460_v17, %v1865_v4 }
 0x691   : > { %7132 = vpow2.f32 %v1920_v55 }
 0x692   : > { %v1924_v56 = vmul.f32 1.442695, %v1902_v47  ;;  %v1922_v21 = vmul.f32 1.442695, %v1901_v39 }
 0x693   : > { %v1874_v43 = vpop.xlane.xlu1 %1873  ;;  %v1871_v23 = vpop.xlane.xlu0 %1870 }
 0x694   : > { %7134 = vpow2.f32 %v1924_v56  ;;  %v1904_v44 = vsub.f32 %v8478_v3, %v1874_v43  ;;  %v1903_v6 = vsub.f32 %v8473_v50, %v1871_v23 }
 0x695   : > { %7136 = vpow2.f32 %v1922_v21 }
 0x696   : > { %v7129_v59 = vpop.eup %7128  ;;  %v1928_v51 = vmul.f32 1.442695, %v1904_v44  ;;  %v1926_v36 = vmul.f32 1.442695, %v1903_v6 }
 0x697   : > { %v1880_v16 = vpop.xlane.xlu1 %1879  ;;  %v1877_v24 = vpop.xlane.xlu0 %1876  ;;  %v8549_v53 = vmul.f32 %v7129_v59, %v8186_v57 }
 0x698   : > { %7138 = vpow2.f32 %v1928_v51  ;;  %v1906_v17 = vsub.f32 %v8491_v19, %v1880_v16  ;;  %v1905_v40 = vsub.f32 %v8486_v54, %v1877_v24 }
 0x699   : > { %7140 = vpow2.f32 %v1926_v36  ;;  %v1966_v56 = vsel %vm1337_vm0, %v8549_v53, 0.0 }
 0x69a   : > { %v7131_v3 = vpop.eup %7130  ;;  %v1932_v50 = vmul.f32 1.442695, %v1906_v17  ;;  %v1930_v55 = vmul.f32 1.442695, %v1905_v40  ;;  %1967 = vadd.xlane.f32.xlu1 %v1966_v56 }
 0x69b   : > { %v7133_v20 = vpop.eup %7132  ;;  %v1886_v4 = vpop.xlane.xlu1 %1885  ;;  %v8556_v39 = vmul.f32 %v7131_v3, %v8217_v45 }
 0x69c   : > { %v1883_v47 = vpop.xlane.xlu0 %1882  ;;  %7142 = vpow2.f32 %v1932_v50  ;;  %v1908_v21 = vsub.f32 %v8505_v46, %v1886_v4  ;;  %v8561_v54 = vmul.f32 %v7133_v20, %v8186_v57 }
 0x69d   : > { %v1907_v19 = vsub.f32 %v8501_v1, %v1883_v47  ;;  %7144 = vpow2.f32 %v1930_v55  ;;  %v1969_v43 = vsel %vm1337_vm0, %v8556_v39, 0.0 }
 0x69e   : > { %v7135_v23 = vpop.eup %7134  ;;  %v1936_v44 = vmul.f32 1.442695, %v1908_v21  ;;  %1970 = vadd.xlane.f32.xlu0 %v1969_v43  ;;  %v1972_v59 = vsel %vm1337_vm0, %v8561_v54, 0.0 }
 0x69f   : > { %v1934_v6 = vmul.f32 1.442695, %v1907_v19  ;;  %v7137_v51 = vpop.eup %7136  ;;  %1973 = vadd.xlane.f32.xlu1 %v1972_v59  ;;  %v1850_v36 = vpop.xlane.xlu1 %1849  ;;  %v8568_v1 = vmul.f32 %v7135_v23, %v8186_v57 }
 0x6a0   : > { %v1889_v46 = vpop.xlane.xlu0 %1888  ;;  %7146 = vpow2.f32 %v1936_v44  ;;  %v1896_v16 = vsub.f32 %v8517_v15, %v1850_v36  ;;  %v8573_v17 = vmul.f32 %v7137_v51, %v8217_v45 }
 0x6a1   : > { %v1909_v24 = vsub.f32 %v8513_v52, %v1889_v46  ;;  %7148 = vpow2.f32 %v1934_v6  ;;  %v1978_v40 = vsel %vm1337_vm0, %v8568_v1, 0.0 }
 0x6a2   : > { %v7139_v56 = vpop.eup %7138  ;;  %v1912_v3 = vmul.f32 1.442695, %v1896_v16  ;;  %v1975_v55 = vsel %vm1337_vm0, %v8573_v17, 0.0 }
 0x6a3   : > { %v1938_v50 = vmul.f32 1.442695, %v1909_v24  ;;  %v7141_v20 = vpop.eup %7140  ;;  %1979 = vadd.xlane.f32.xlu1 %v1978_v40  ;;  %1976 = vadd.xlane.f32.xlu0 %v1975_v55  ;;  %v1853_v4 = vpop.xlane.xlu1 %1852  ;;  %v8580_v52 = vmul.f32 %v7139_v56, %v8186_v57 }
 0x6a4   : > { %v1892_v15 = vpop.xlane.xlu0 %1891  ;;  %7150 = vpow2.f32 %v1912_v3  ;;  %v1897_v47 = vsub.f32 %v8529_v12, %v1853_v4  ;;  %v8585_v19 = vmul.f32 %v7141_v20, %v8217_v45 }
 0x6a5   : > { %v1910_v21 = vsub.f32 %v8525_v41, %v1892_v15  ;;  %7152 = vpow2.f32 %v1938_v50  ;;  %v1984_v43 = vsel %vm1337_vm0, %v8580_v52, 0.0 }
 0x6a6   : > { %v7143_v23 = vpop.eup %7142  ;;  %v1914_v44 = vmul.f32 1.442695, %v1897_v47  ;;  %v1981_v59 = vsel %vm1337_vm0, %v8585_v19, 0.0 }
 0x6a7   : > { %v1940_v6 = vmul.f32 1.442695, %v1910_v21  ;;  %v7145_v51 = vpop.eup %7144  ;;  %1985 = vadd.xlane.f32.xlu1 %v1984_v43  ;;  %1982 = vadd.xlane.f32.xlu0 %v1981_v59  ;;  %v8592_v12 = vmul.f32 %v7143_v23, %v8186_v57 }
 0x6a8   : > { %v1895_v36 = vpop.xlane.xlu0 %1894  ;;  %7154 = vpow2.f32 %v1914_v44  ;;  %v8596_v46 = vmul.f32 %v7145_v51, %v8217_v45 }
 0x6a9   : > { %v1911_v41 = vsub.f32 %v8537_v38, %v1895_v36  ;;  %7156 = vpow2.f32 %v1940_v6  ;;  %v1990_v16 = vsel %vm1337_vm0, %v8592_v12, 0.0 }
 0x6aa   : > { %v7147_v24 = vpop.eup %7146  ;;  %v1987_v56 = vsel %vm1337_vm0, %v8596_v46, 0.0 }
 0x6ab   : > { %v1942_v40 = vmul.f32 1.442695, %v1911_v41  ;;  %v7149_v3 = vpop.eup %7148  ;;  %1991 = vadd.xlane.f32.xlu1 %v1990_v16  ;;  %1988 = vadd.xlane.f32.xlu0 %v1987_v56  ;;  %v8603_v50 = vmul.f32 %v7147_v24, %v8186_v57  ;;  %v2936_v56 = vld [vmem:[#allocation3 + $0x108] sm:$0xff] }
 0x6ac   : > { %v8606_v38 = vmul.f32 %v7149_v3, %v8217_v45  ;;  %2967 = vmatprep.subr.bf16.mxu0 %v2936_v56  ;;  %v9885_v56 = vpack.c.bf16 %v8314_v10, %v8300_v61 }
 0x6ad   : > { %7158 = vpow2.f32 %v1942_v40  ;;  %v1996_v55 = vsel %vm1337_vm0, %v8603_v50, 0.0 }
 0x6ae   : > { %v7151_v20 = vpop.eup %7150  ;;  %v1993_v4 = vsel %vm1337_vm0, %v8606_v38, 0.0 }
 0x6af   : > { %v7153_v15 = vpop.eup %7152  ;;  %1997 = vadd.xlane.f32.xlu1 %v1996_v55  ;;  %1994 = vadd.xlane.f32.xlu0 %v1993_v4  ;;  %v8613_v47 = vmul.f32 %v7151_v20, %v8186_v57 }
 0x6b0   : > { %v8616_v21 = vmul.f32 %v7153_v15, %v8217_v45 }
 0x6b1   : > { %v1960_v43 = vsel %vm1337_vm0, %v8613_v47, 0.0 }
 0x6b2   : > { %v7155_v23 = vpop.eup %7154  ;;  %v1999_v44 = vsel %vm1337_vm0, %v8616_v21, 0.0 }
 0x6b3   : > { %v7157_v6 = vpop.eup %7156  ;;  %1961 = vadd.xlane.f32.xlu1 %v1960_v43  ;;  %2000 = vadd.xlane.f32.xlu0 %v1999_v44  ;;  %v8623_v59 = vmul.f32 %v7155_v23, %v8217_v45 }
 0x6b4   : > { %v8626_v51 = vmul.f32 %v7157_v6, %v8186_v57  ;;  %v9886_v57 = vmov 0.0  }
 0x6b5   : > { %v1963_v36 = vsel %vm1337_vm0, %v8623_v59, 0.0 }
 0x6b6   : > { %v2002_v16 = vsel %vm1337_vm0, %v8626_v51, 0.0 }
 0x6b7   : > { %v7159_v41 = vpop.eup %7158  ;;  %1964 = vadd.xlane.f32.xlu1 %v1963_v36  ;;  %2003 = vadd.xlane.f32.xlu0 %v2002_v16 }
 0x6b8   : > { %v8633_v24 = vmul.f32 %v7159_v41, %v8217_v45 }
 0x6ba   : > { %v2005_v40 = vsel %vm1337_vm0, %v8633_v24, 0.0 }
 0x6bb   : > { %2006 = vadd.xlane.f32.xlu0 %v2005_v40 }
 0x727   : > { %v1968_v3 = vpop.xlane.xlu1 %1967 }
 0x728   : > { %7160 = vrcp.f32 %v1968_v3  ;;  %vm2010_vm3 = vcmp.gt.f32.partialorder %v1968_v3, 0.0 }
 0x72b   : > { %v1971_v55 = vpop.xlane.xlu0 %1970 }
 0x72c   : > { %v1974_v20 = vpop.xlane.xlu1 %1973  ;;  %7162 = vrcp.f32 %v1971_v55  ;;  %vm2011_vm5 = vcmp.gt.f32.partialorder %v1971_v55, 0.0 }
 0x72d   : > { %7164 = vrcp.f32 %v1974_v20  ;;  %vm2012_vm6 = vcmp.gt.f32.partialorder %v1974_v20, 0.0 }
 0x730   : > { %v1980_v4 = vpop.xlane.xlu1 %1979  ;;  %v1977_v15 = vpop.xlane.xlu0 %1976 }
 0x731   : > { %7166 = vrcp.f32 %v1977_v15  ;;  %vm2013_vm7 = vcmp.gt.f32.partialorder %v1977_v15, 0.0  ;;  %vm2014_vm8 = vcmp.gt.f32.partialorder %v1980_v4, 0.0 }
 0x732   : > { %v7161_v43 = vpop.eup %7160  ;;  %7168 = vrcp.f32 %v1980_v4 }
 0x733   : > { %v2058_v23 = vsel %vm2010_vm3, %v7161_v43, 0.0 }
 0x734   : > { %v2074_v44 = vmul.f32 %v2058_v23, %v8549_v53  ;;  %v1986_v6 = vpop.xlane.xlu1 %1985  ;;  %v1983_v36 = vpop.xlane.xlu0 %1982  ;;  %v9887_v53 = vpack.c.bf16 %v8322_v18, %v8309_v5  ;;  %v9888_v18 = vpack.c.bf16 %v8327_v25, %v8303_v62 }
 0x735   : > { %7170 = vrcp.f32 %v1983_v36  ;;  %vm2015_vm9 = vcmp.gt.f32.partialorder %v1983_v36, 0.0  ;;  %vm2016_vm10 = vcmp.gt.f32.partialorder %v1986_v6, 0.0 }
 0x736   : > { %v7163_v41 = vpop.eup %7162  ;;  %6514 = vmatmul.mubr.msk.f32.vlgmr.msra.gmra.mrb[2].mxu1 %vm1337_vm0, %v2074_v44  ;;  %7172 = vrcp.f32 %v1986_v6  ;;  %v2935_v6 = vld [vmem:[#allocation3 + $0x100] sm:$0xff] }
 0x737   : > { %v7165_v16 = vpop.eup %7164  ;;  %v2059_v40 = vsel %vm2011_vm5, %v7163_v41, 0.0  ;;  %6670 = vmatpush1.bf16.msra.mxu1 %v9885_v56  ;;  %2375 = vmatprep.mubr.f32.mxu1 %v9886_v57 }
 0x738   : > { %6672 = vmatprep.subr.bf16.mxu1 %v9887_v53  ;;  %v8646_v3 = vpop.xlane.xlu1 %1991  ;;  %v2075_v55 = vmul.f32 %v2059_v40, %v8556_v39  ;;  %v2060_v43 = vsel %vm2012_vm6, %v7165_v16, 0.0  ;;  %v1989_v44 = vpop.xlane.xlu0 %1988 }
 0x739   : > { %v2076_v61 = vmul.f32 %v2060_v43, %v8561_v54  ;;  %7174 = vrcp.f32 %v1989_v44  ;;  %v9889_v54 = vpack.c.bf16 %v8333_v27, %v8330_v26  ;;  %v9890_v27 = vpack.c.bf16 %v8339_v29, %v8336_v28 }
 0x73a   : > { %6515 = vmatmul.mubr.msk.f32.gmra.mrb[4].mxu1 %vm1337_vm0, %v2075_v55  ;;  %vm2017_vm13 = vcmp.gt.f32.partialorder %v1989_v44, 0.0  ;;  %vm2018_vm15 = vcmp.gt.f32.partialorder %v8646_v3, 0.0 }
 0x73b   : > { %2452 = vmatprep.mubr.f32.mxu1 %v9886_v57  ;;  %v7167_v23 = vpop.eup %7166 }
 0x73c   : > { %v8652_v10 = vpop.xlane.xlu1 %1997  ;;  %v2061_v20 = vsel %vm2013_vm7, %v7167_v23, 0.0  ;;  %v7169_v5 = vpop.eup %7168 }
 0x73d   : > { %v2077_v15 = vmul.f32 %v2061_v20, %v8573_v17  ;;  %v2062_v41 = vsel %vm2014_vm8, %v7169_v5, 0.0  ;;  %v1995_v40 = vpop.xlane.xlu0 %1994  ;;  %vm2020_vm2 = vcmp.gt.f32.partialorder %v8652_v10, 0.0 }
 0x73e   : > { %6516 = vmatmul.mubr.msk.f32.vlgmr.msra.gmra.mrb[2].mxu1 %vm1337_vm0, %v2076_v61  ;;  %v2078_v62 = vmul.f32 %v2062_v41, %v8568_v1  ;;  %v9891_v1 = vpack.c.bf16 %v8347_v30, %v8344_v22  ;;  %v9892_v61 = vpack.c.bf16 %v8357_v60, %v8350_v35  ;;  %vm2019_vm1 = vcmp.gt.f32.partialorder %v1995_v40, 0.0 }
 0x73f   : > { %6674 = vmatpush1.bf16.msra.mxu1 %v9888_v18  ;;  %2458 = vmatprep.mubr.f32.mxu1 %v9886_v57  ;;  %v7171_v16 = vpop.eup %7170 }
 0x740   : > { %v1962_v39 = vpop.xlane.xlu1 %1961  ;;  %6676 = vmatprep.subr.bf16.mxu1 %v9889_v54  ;;  %v2063_v4 = vsel %vm2015_vm9, %v7171_v16, 0.0  ;;  %v7173_v26 = vpop.eup %7172  ;;  %v9894_v54 = vpack.c.bf16 %v8371_v11, %v8368_v9  ;;  %v2941_v9 = vld [vmem:[#allocation3 + $0x130] sm:$0xff]  ;;  %v2944_v11 = vld [vmem:[#allocation3 + $0x148] sm:$0xff] }
 0x741   : > { %7176 = vrcp.f32 %v1962_v39  ;;  %v2079_v17 = vmul.f32 %v2063_v4, %v8585_v19  ;;  %v2064_v36 = vsel %vm2016_vm10, %v7173_v26, 0.0  ;;  %v8676_v56 = vpop.xlane.xlu0 %2000  ;;  %vm2008_vm11 = vcmp.gt.f32.partialorder %v1962_v39, 0.0 }
 0x742   : > { %6517 = vmatmul.mubr.msk.f32.gmra.mrb[4].mxu1 %vm1337_vm0, %v2077_v15  ;;  %7178 = vrcp.f32 %v8646_v3  ;;  %v2080_v28 = vmul.f32 %v2064_v36, %v8580_v52  ;;  %v2938_v52 = vld [vmem:[#allocation3 + $0x118] sm:$0xff]  ;;  %v2937_v3 = vld [vmem:[#allocation3 + $0x110] sm:$0xff]  ;;  %vm2021_vm3 = vcmp.gt.f32.partialorder %v8676_v56, 0.0 }
 0x743   : > { %2535 = vmatprep.mubr.f32.mxu1 %v9886_v57  ;;  %v7175_v53 = vpop.eup %7174  ;;  %v2942_v15 = vld [vmem:[#allocation3 + $0x138] sm:$0xff] }
 0x744   : > { %v1965_v25 = vpop.xlane.xlu1 %1964  ;;  %v2065_v22 = vsel %vm2017_vm13, %v7175_v53, 0.0  ;;  %v2950_v36 = vld [vmem:[#allocation3 + $0x178] sm:$0xff]  ;;  %v2952_v53 = vld [vmem:[#allocation3 + $0x188] sm:$0xff] }
 0x745   : > { %7180 = vrcp.f32 %v1965_v25  ;;  %vm2009_vm14 = vcmp.gt.f32.partialorder %v1965_v25, 0.0  ;;  %v2004_v23 = vpop.xlane.xlu0 %2003  ;;  %v2081_v44 = vmul.f32 %v2065_v22, %v8596_v46  ;;  %v2946_v25 = vld [vmem:[#allocation3 + $0x158] sm:$0xff] }
 0x746   : > { %6518 = vmatmul.mubr.msk.f32.vlgmr.msra.gmra.mrb[2].mxu1 %vm1337_vm0, %v2078_v62  ;;  %7182 = vrcp.f32 %v1995_v40  ;;  %vm2022_vm5 = vcmp.gt.f32.partialorder %v2004_v23, 0.0  ;;  %v2958_v22 = vld [vmem:[#allocation3 + $0x1b8] sm:$0xff] }
 0x747   : > { %6678 = vmatpush1.bf16.msra.mxu1 %v9890_v27  ;;  %2541 = vmatprep.mubr.f32.mxu1 %v9886_v57  ;;  %7184 = vrcp.f32 %v8652_v10  ;;  %v2945_v27 = vld [vmem:[#allocation3 + $0x150] sm:$0xff] }
 0x748   : > { %6680 = vmatprep.subr.bf16.mxu1 %v9891_v1  ;;  %7186 = vrcp.f32 %v8676_v56  ;;  %v2949_v56 = vld [vmem:[#allocation3 + $0x170] sm:$0xff] }
 0x749   : > { %7188 = vrcp.f32 %v2004_v23  ;;  %v2007_v18 = vpop.xlane.xlu0 %2006  ;;  %v2961_v23 = vld [vmem:[#allocation3 + $0x1d0] sm:$0xff] }
 0x74a   : > { %6519 = vmatmul.mubr.msk.f32.gmra.mrb[4].mxu1 %vm1337_vm0, %v2079_v17  ;;  %7190 = vrcp.f32 %v2007_v18  ;;  %vm2023_vm6 = vcmp.gt.f32.partialorder %v2007_v18, 0.0  ;;  %v2947_v17 = vld [vmem:[#allocation3 + $0x160] sm:$0xff] }
 0x74b   : > { %v7177_v55 = vpop.eup %7176  ;;  %2618 = vmatprep.mubr.f32.mxu1 %v9886_v57 }
 0x74c   : > { %v2056_v29 = vsel %vm2008_vm11, %v7177_v55, 0.0  ;;  %v7179_v19 = vpop.eup %7178  ;;  %v2954_v55 = vld [vmem:[#allocation3 + $0x198] sm:$0xff] }
 0x74d   : > { %v2072_v30 = vmul.f32 %v2056_v29, %v8613_v47  ;;  %v9893_v47 = vpack.c.bf16 %v8365_v8, %v8360_v2  ;;  %v2066_v5 = vsel %vm2018_vm15, %v7179_v19, 0.0  ;;  %v2940_v2 = vld [vmem:[#allocation3 + $0x128] sm:$0xff] }
 0x74e   : > { %6520 = vmatmul.mubr.msk.f32.vlgmr.msra.gmra.mrb[2].mxu1 %vm1337_vm0, %v2080_v28  ;;  %v2082_v8 = vmul.f32 %v2066_v5, %v8592_v12  ;;  %v9895_v12 = vpack.c.bf16 %v8379_v14, %v8376_v13  ;;  %v2943_v14 = vld [vmem:[#allocation3 + $0x140] sm:$0xff]  ;;  %v2953_v28 = vld [vmem:[#allocation3 + $0x190] sm:$0xff]  ;;  %v2956_v29 = vld [vmem:[#allocation3 + $0x1a8] sm:$0xff] }
 0x74f   : > { %v7181_v43 = vpop.eup %7180  ;;  %6512 = vmatmul.mubr.msk.f32.vlgmr.msra.gmra.mrb[6].mxu0 %vm1337_vm0, %v2072_v30  ;;  %6682 = vmatpush1.bf16.msra.mxu1 %v9892_v61  ;;  %v2957_v30 = vld [vmem:[#allocation3 + $0x1b0] sm:$0xff]  ;;  %v2960_v19 = vld [vmem:[#allocation3 + $0x1c8] sm:$0xff] }
 0x750   : > { %v2057_v20 = vsel %vm2009_vm14, %v7181_v43, 0.0  ;;  %6684 = vmatprep.subr.bf16.mxu1 %v9893_v47  ;;  %2292 = vmatprep.mubr.f32.mxu0 %v9886_v57  ;;  %v7183_v60 = vpop.eup %7182  ;;  %v2962_v43 = vld [vmem:[#allocation3 + $0x1d8] sm:$0xff]  ;;  %v2964_v61 = vld [vmem:[#allocation3 + $0x1e8] sm:$0xff]  ;;  %v2965_v47 = vld [vmem:[#allocation3 + $0x1f0] sm:$0xff] }
 0x751   : > { %2624 = vmatprep.mubr.f32.mxu1 %v9886_v57  ;;  %v2073_v35 = vmul.f32 %v2057_v20, %v8623_v59  ;;  %2968 = vmatpush1.bf16.msra.mxu0 %v2935_v6  ;;  %v2067_v46 = vsel %vm2019_vm1, %v7183_v60, 0.0  ;;  %v7185_v39 = vpop.eup %7184  ;;  %v2939_v59 = vld [vmem:[#allocation3 + $0x120] sm:$0xff]  ;;  %v2966_v20 = vld [vmem:[#allocation3 + $0x1f8] sm:$0xff] }
 0x752   : > { %6521 = vmatmul.mubr.msk.f32.gmra.mrb[4].mxu1 %vm1337_vm0, %v2081_v44  ;;  %2969 = vmatprep.subr.bf16.mxu0 %v2938_v52  ;;  %v2083_v41 = vmul.f32 %v2067_v46, %v8606_v38  ;;  %v2068_v16 = vsel %vm2020_vm2, %v7185_v39, 0.0  ;;  %v7187_v40 = vpop.eup %7186  ;;  %v9896_v38 = vpack.c.bf16 %v8389_v58, %v8386_v7  ;;  %v2959_v6 = vld [vmem:[#allocation3 + $0x1c0] sm:$0xff] }
 0x753   : > { %6513 = vmatmul.mubr.msk.f32.gmra.mrb[8].mxu0 %vm1337_vm0, %v2073_v35  ;;  %2701 = vmatprep.mubr.f32.mxu1 %v9886_v57  ;;  %v2084_v62 = vmul.f32 %v2068_v16, %v8603_v50  ;;  %v2069_v10 = vsel %vm2021_vm3, %v7187_v40, 0.0  ;;  %v7189_v13 = vpop.eup %7188  ;;  %v2963_v52 = vld [vmem:[#allocation3 + $0x1e0] sm:$0xff] }
 0x754   : > { %v2085_v4 = vmul.f32 %v2069_v10, %v8616_v21  ;;  %v2070_v50 = vsel %vm2022_vm5, %v7189_v13, 0.0  ;;  %v7191_v26 = vpop.eup %7190  ;;  %v2948_v21 = vld [vmem:[#allocation3 + $0x168] sm:$0xff] }
 0x755   : > { %2970 = vmatpush1.bf16.msra.mxu0 %v2937_v3  ;;  %v2086_v1 = vmul.f32 %v2070_v50, %v8626_v51  ;;  %v2071_v58 = vsel %vm2023_vm6, %v7191_v26, 0.0  ;;  %v2951_v51 = vld [vmem:[#allocation3 + $0x180] sm:$0xff] }
 0x756   : > { %6522 = vmatmul.mubr.msk.f32.vlgmr.msra.gmra.mrb[2].mxu1 %vm1337_vm0, %v2082_v8  ;;  %2971 = vmatprep.subr.bf16.mxu0 %v2940_v2  ;;  %v2087_v7 = vmul.f32 %v2071_v58, %v8633_v24  ;;  %v2955_v24 = vld [vmem:[#allocation3 + $0x1a0] sm:$0xff] }
 0x757   : > { %6686 = vmatpush1.bf16.msra.mxu1 %v9894_v54  ;;  %2707 = vmatprep.mubr.f32.mxu1 %v9886_v57  ;;  %v2908_v3 = vld [vmem:[%s9897_s20] sm:$0x3] }
 0x758   : > { %6688 = vmatprep.subr.bf16.mxu1 %v9895_v12  ;;  %v2913_v2 = vrot.slane %v2908_v3, %v8191_v63  ;;  %v2917_v46 = vrot.slane %v2908_v3, %v8194_v0 }
 0x759   : > { %2972 = vmatpush1.bf16.msra.mxu0 %v2939_v59 }
 0x75a   : > { %6523 = vmatmul.mubr.msk.f32.gmra.mrb[4].mxu1 %vm1337_vm0, %v2083_v41  ;;  %2973 = vmatprep.subr.bf16.mxu0 %v2942_v15 }
 0x75b   : > { %2784 = vmatprep.mubr.f32.mxu1 %v9886_v57 }
 0x75d   : > { %2974 = vmatpush1.bf16.msra.mxu0 %v2941_v9 }
 0x75e   : > { %6524 = vmatmul.mubr.msk.f32.vlgmr.msra.gmra.mrb[2].mxu1 %vm1337_vm0, %v2084_v62  ;;  %2975 = vmatprep.subr.bf16.mxu0 %v2944_v11 }
 0x75f   : > { %6690 = vmatpush1.bf16.msra.mxu1 %v9896_v38  ;;  %2790 = vmatprep.mubr.f32.mxu1 %v9886_v57 }
 0x761   : > { %2976 = vmatpush1.bf16.msra.mxu0 %v2943_v14 }
 0x762   : > { %6525 = vmatmul.mubr.msk.f32.gmra.mrb[4].mxu1 %vm1337_vm0, %v2085_v4  ;;  %2977 = vmatprep.subr.bf16.mxu0 %v2946_v25 }
 0x763   : > { %2867 = vmatprep.mubr.f32.mxu1 %v9886_v57 }
 0x765   : > { %2978 = vmatpush1.bf16.msra.mxu0 %v2945_v27 }
 0x766   : > { %6526 = vmatmul.mubr.msk.f32.vlgmr.msra.gmra.mrb[2].mxu1 %vm1337_vm0, %v2086_v1  ;;  %2979 = vmatprep.subr.bf16.mxu0 %v2948_v21  ;;  %v3012_v1 = vld [vmem:[#allocation16 + $0x18] sm:$0xff] }
 0x767   : > { %2873 = vmatprep.mubr.f32.mxu1 %v9886_v57 }
 0x769   : > { %2980 = vmatpush1.bf16.msra.mxu0 %v2947_v17 }
 0x76a   : > { %6527 = vmatmul.mubr.msk.f32.gmra.mrb[4].mxu1 %vm1337_vm0, %v2087_v7  ;;  %2981 = vmatprep.subr.bf16.mxu0 %v2950_v36 }
 0x76b   : > { %3077 = vmatprep.mubr.f32.mxu1 %v3012_v1  ;;  %v9906_v1 = vld [vmem:[#allocation46_spill] sm:$0xff] }
 0x76d   : > { %2982 = vmatpush1.bf16.msra.mxu0 %v2949_v56 }
 0x76e   : > { %2983 = vmatprep.subr.bf16.mxu0 %v2952_v53 }
 0x771   : > { %2984 = vmatpush1.bf16.msra.mxu0 %v2951_v51 }
 0x772   : > { %2985 = vmatprep.subr.bf16.mxu0 %v2954_v55  ;;  %v9898_v55 = vld [vmem:[#allocation39_spill] sm:$0xff] }
 0x775   : > { %2986 = vmatpush1.bf16.msra.mxu0 %v2953_v28 }
 0x776   : > { %2987 = vmatprep.subr.bf16.mxu0 %v2956_v29  ;;  %v9899_v29 = vld [vmem:[#allocation40_spill] sm:$0xff] }
 0x779   : > { %2988 = vmatpush1.bf16.msra.mxu0 %v2955_v24 }
 0x77a   : > { %2989 = vmatprep.subr.bf16.mxu0 %v2958_v22  ;;  %v9900_v22 = vld [vmem:[#allocation41_spill] sm:$0xff] }
 0x77d   : > { %2990 = vmatpush1.bf16.msra.mxu0 %v2957_v30 }
 0x77e   : > { %2991 = vmatprep.subr.bf16.mxu0 %v2960_v19 }
 0x781   : > { %2992 = vmatpush1.bf16.msra.mxu0 %v2959_v6 }
 0x782   : > { %2993 = vmatprep.subr.bf16.mxu0 %v2962_v43 }
 0x785   : > { %2994 = vmatpush1.bf16.msra.mxu0 %v2961_v23 }
 0x786   : > { %2995 = vmatprep.subr.bf16.mxu0 %v2964_v61 }
 0x789   : > { %2996 = vmatpush1.bf16.msra.mxu0 %v2963_v52 }
 0x78a   : > { %2997 = vmatprep.subr.bf16.mxu0 %v2966_v20 }
 0x78d   : > { %2998 = vmatpush1.bf16.msra.mxu0 %v2965_v47 }
 0x822   : > { %v2288_v44 = vpop.f32.mrb[6].mxu0 }
 0x823   : > { %v2290_v5 = vpop.f32.mrb[7].mxu0 }
 0x826   : > { %v2294_v35 = vpop.f32.mrb[8].mxu0 }
 0x827   : > { %v2296_v60 = vpop.f32.mrb[9].mxu0 }
 0x839   : > { %v2869_v8 = vpop.f32.mrb[2].mxu1 }
 0x83a   : > { %v6779_v18 = vadd.f32 %v2869_v8, %v2288_v44  ;;  %v2871_v39 = vpop.f32.mrb[3].mxu1 }
 0x83b   : > { %v6780_v59 = vadd.f32 %v2871_v39, %v2290_v5 }
 0x83c   : > { %v2920_v54 = vadd.f32 %v6779_v18, %v2913_v2 }
 0x83d   : > { %v2921_v15 = vadd.f32 %v6780_v59, %v2917_v46  ;;  %v2875_v12 = vpop.f32.mrb[4].mxu1  ;;  %v9901_v59 = vld [vmem:[#allocation43_spill] sm:$0xff] }
 0x83e   : > { %v6781_v41 = vadd.f32 %v2875_v12, %v2294_v35  ;;  %v2877_v16 = vpop.f32.mrb[5].mxu1  ;;  %v2924_v9 = vmax.f32 %v2920_v54, 0.0  ;;  %v9902_v12 = vld [vmem:[#allocation42_spill] sm:$0xff]  ;;  %v9914_v35 = vld [vmem:[#allocation55_spill] sm:$0xff] }
 0x83f   : > { %v6782_v40 = vadd.f32 %v2877_v16, %v2296_v60  ;;  %v2925_v62 = vmax.f32 %v2921_v15, 0.0 }
 0x840   : > { %v2922_v11 = vadd.f32 %v6781_v41, %v2913_v2  ;;  %v2928_v38 = vmul.f32 %v8219_v48, %v2924_v9  ;;  %v9903_v9 = vld [vmem:[#allocation45_spill] sm:$0xff] }
 0x841   : > { %v2923_v10 = vadd.f32 %v6782_v40, %v2917_v46  ;;  %v2929_v4 = vmul.f32 %v8219_v48, %v2925_v62 }
 0x842   : > { %v2926_v13 = vmax.f32 %v2922_v11, 0.0 }
 0x843   : > { %v2927_v14 = vmax.f32 %v2923_v10, 0.0  ;;  %v9908_v10 = vld [vmem:[#allocation48_spill] sm:$0xff] }
 0x844   : > { %v2930_v25 = vmul.f32 %v8221_v49, %v2926_v13  ;;  %v9904_v13 = vld [vmem:[#allocation44_spill] sm:$0xff] }
 0x845   : > { %v2931_v50 = vmul.f32 %v8221_v49, %v2927_v14 }
 0x846   : > { %v2932_v26 = vpack.c.bf16 %v2930_v25, %v2928_v38  ;;  %v9905_v25 = vld [vmem:[#allocation47_spill] sm:$0xff] }
 0x847   : > { %v2933_v27 = vpack.c.bf16 %v2931_v50, %v2929_v4  ;;  %v3084_v50 = vld [vmem:[#allocation14 + $0x10] sm:$0xff] }
 0x849   : > { %2999 = vmatprep.mubr.bf16.mxu0 %v2933_v27 }
 0x84a   : > { %3000 = vmatmul.mubr.bf16.vlgmr.msra.gmra.mrb[12].mxu0 %v2932_v26  ;;  %v3085_v26 = vld [vmem:[#allocation14 + $0x18] sm:$0xff] }
 0x91d   : > { %v3001_v58 = vpop.f32.mrb[12].mxu0 }
 0x91e   : > { %v3003_v7 = vpop.f32.mrb[13].mxu0  ;;  %v8738_v21 = vmul.f32 %v3001_v58, %v8244_v31  ;;  %v8741_v17 = vmul.f32 %v3001_v58, %v8247_v32  ;;  %v8744_v36 = vmul.f32 %v3001_v58, %v8250_v33  ;;  %v8747_v56 = vmul.f32 %v3001_v58, %v8253_v34 }
 0x91f   : > { %v3005_v53 = vpop.f32.mrb[14].mxu0  ;;  %v3655_v51 = vmul.f32 %v3003_v7, %v8262_v37  ;;  %v3659_v28 = vmul.f32 %v3003_v7, %v9898_v55  ;;  %v8752_v24 = vmul.f32 %v3003_v7, %v9899_v29  ;;  %v8755_v30 = vmul.f32 %v3003_v7, %v9900_v22 }
 0x920   : > { %v3007_v19 = vpop.f32.mrb[15].mxu0  ;;  %v6693_v6 = vpack.c.bf16 %v3005_v53, %v3001_v58  ;;  %v3656_v43 = vmul.f32 %v3005_v53, %v8244_v31  ;;  %v8759_v23 = vmul.f32 %v3005_v53, %v8247_v32  ;;  %v8762_v61 = vmul.f32 %v3005_v53, %v8250_v33 }
 0x921   : > { %v6691_v52 = vpack.c.bf16 %v3007_v19, %v3003_v7  ;;  %v3657_v20 = vmul.f32 %v3007_v19, %v8262_v37  ;;  %v3661_v47 = vmul.f32 %v3007_v19, %v9898_v55  ;;  %v8767_v44 = vmul.f32 %v3007_v19, %v9899_v29 }
 0x922   : > { %v6701_v5 = vpack.c.bf16 %v3656_v43, %v8738_v21  ;;  %v8775_v3 = vmul.f32 %v3007_v19, %v9900_v22  ;;  %v8780_v18 = vmul.f32 %v3005_v53, %v8253_v34  ;;  %v8785_v54 = vmul.f32 %v3003_v7, %v9901_v59 }
 0x923   : > { %6692 = vmatprep.subr.bf16.mxu1 %v6691_v52  ;;  %v6699_v2 = vpack.c.bf16 %v3657_v20, %v3655_v51  ;;  %v6703_v8 = vpack.c.bf16 %v3661_v47, %v3659_v28  ;;  %v8788_v15 = vmul.f32 %v3007_v19, %v9901_v59  ;;  %v8791_v41 = vmul.f32 %v3001_v58, %v9902_v12  ;;  %v3011_v51 = vld [vmem:[#allocation16 + $0x10] sm:$0xff] }
 0x924   : > { %6694 = vmatpush1.bf16.xpose.msra.mxu1 %v6693_v6  ;;  %v8796_v40 = vmul.f32 %v3005_v53, %v9902_v12  ;;  %v8799_v11 = vmul.f32 %v3003_v7, %v9903_v9  ;;  %v8802_v62 = vmul.f32 %v3007_v19, %v9903_v9  ;;  %v8807_v14 = vmul.f32 %v3001_v58, %v9904_v13 }
 0x925   : > { %6696 = vmatprep.subr.bf16.mxu1 %v6691_v52  ;;  %v8810_v38 = vmul.f32 %v3005_v53, %v9904_v13  ;;  %v8813_v4 = vmul.f32 %v3003_v7, %v9905_v25  ;;  %v8820_v27 = vmul.f32 %v3007_v19, %v9905_v25  ;;  %v8823_v21 = vmul.f32 %v3001_v58, %v9906_v1  ;;  %v9907_v52 = vld [vmem:[#allocation49_spill] sm:$0xff] }
 0x926   : > { %v8828_v43 = vmul.f32 %v3005_v53, %v9906_v1  ;;  %v8831_v20 = vmul.f32 %v3003_v7, %v9907_v52  ;;  %v8834_v47 = vmul.f32 %v3007_v19, %v9907_v52  ;;  %v8839_v16 = vmul.f32 %v3001_v58, %v9908_v10  ;;  %v9909_v7 = vld [vmem:[#allocation50_spill] sm:$0xff] }
 0x927   : > { %v8842_v39 = vmul.f32 %v3005_v53, %v9908_v10 }
 0x92b   : > { %3078 = vmatmul.mubr.f32.vlgmr.msra.gmra.mrb[6].mxu1 %v3011_v51 }
 0x92c   : > { %6698 = vmatpush1.bf16.xpose.msra.mxu1 %v6693_v6  ;;  %3150 = vmatprep.mubr.f32.mxu1 %v3085_v26 }
 0x92d   : > { %6700 = vmatprep.subr.bf16.mxu1 %v6699_v2  ;;  %v9910_v2 = vld [vmem:[#allocation51_spill] sm:$0xff] }
 0x933   : > { %3151 = vmatmul.mubr.f32.vlgmr.msra.gmra.mrb[8].mxu1 %v3084_v50 }
 0x934   : > { %6702 = vmatpush1.bf16.msra.mxu1 %v6701_v5  ;;  %3756 = vmatprep.mubr.f32.mxu1 %v9886_v57  ;;  %v9911_v5 = vld [vmem:[#allocation52_spill] sm:$0xff] }
 0x935   : > { %6704 = vmatprep.subr.bf16.mxu1 %v6703_v8 }
 0x9fe   : > { %v3079_v58 = vpop.f32.mrb[6].mxu1 }
 0x9ff   : > { %v3081_v53 = vpop.f32.mrb[7].mxu1  ;;  %v3159_v28 = vrot.slane %v3079_v58, %v8191_v63  ;;  %v3181_v51 = vrot.slane %v3079_v58, %v9909_v7  ;;  %v3170_v60 = vrot.slane %v3079_v58, %v8194_v0  ;;  %v3192_v26 = vrot.slane %v3079_v58, %v9910_v2 }
 0xa00   : > { %v3203_v8 = vrot.slane %v3079_v58, %v9911_v5  ;;  %v9912_v53 = vld [vmem:[#allocation53_spill] sm:$0xff]  ;;  %v3236_v7 = vrot.slane %v3079_v58, %v9914_v35 }
 0xa01   : > { %3165 = vbcast.lane.b32.xlu0 %v3159_v28, 264  ;;  %3161 = vbcast.lane.b32.xlu1 %v3159_v28, 256  ;;  %v3214_v19 = vrot.slane %v3079_v58, %v9912_v53  ;;  %v9913_v28 = vld [vmem:[#allocation54_spill] sm:$0xff] }
 0xa02   : > { %v3225_v46 = vrot.slane %v3079_v58, %v9913_v28 }
 0xa05   : > { %3183 = vbcast.lane.b32.xlu0 %v3181_v51, 256  ;;  %3172 = vbcast.lane.b32.xlu1 %v3170_v60, 256 }
 0xa06   : > { %v3152_v6 = vpop.f32.mrb[8].mxu1 }
 0xa07   : > { %v3154_v50 = vpop.f32.mrb[9].mxu1 }
 0xa08   : > { %v9915_v50 = vld [vmem:[#allocation56_spill] sm:$0xff] }
 0xa09   : > { %3194 = vbcast.lane.b32.xlu0 %v3192_v26, 256  ;;  %3176 = vbcast.lane.b32.xlu1 %v3170_v60, 264  ;;  %v3252_v60 = vrot.slane %v3152_v6, %v9915_v50 }
 0xa0b   : > { %v3268_v5 = vrot.slane %v3252_v60, %v9915_v50  ;;  %v3260_v2 = vcombine.high %v3252_v60, %v3252_v60 }
 0xa0d   : > { %3205 = vbcast.lane.b32.xlu0 %v3203_v8, 256  ;;  %3187 = vbcast.lane.b32.xlu1 %v3181_v51, 264  ;;  %v3245_v51 = vcombine.high %v3152_v6, %v3152_v6  ;;  %v3297_v53 = vrot.slane %v3268_v5, %v8191_v63  ;;  %v3290_v10 = vcombine.high %v3268_v5, %v3268_v5 }
 0xa0f   : > { %v3259_v28 = vrot.slane %v3245_v51, %v9915_v50 }
 0xa11   : > { %3216 = vbcast.lane.b32.xlu0 %v3214_v19, 256  ;;  %3198 = vbcast.lane.b32.xlu1 %v3192_v26, 264  ;;  %v3282_v26 = vrot.slane %v3260_v2, %v9915_v50  ;;  %v3261_v6 = vcombine.high %v3259_v28, %v3259_v28 }
 0xa13   : > { %v3289_v29 = vrot.slane %v3261_v6, %v9915_v50 }
 0xa15   : > { %3227 = vbcast.lane.b32.xlu0 %v3225_v46, 256  ;;  %3209 = vbcast.lane.b32.xlu1 %v3203_v8, 264  ;;  %v3317_v6 = vrot.slane %v3289_v29, %v8191_v63  ;;  %v3293_v34 = vcombine.high %v3289_v29, %v3289_v29 }
 0xa17   : > { %v3325_v29 = vrot.slane %v3293_v34, %v8191_v63 }
 0xa19   : > { %3238 = vbcast.lane.b32.xlu0 %v3236_v7, 256  ;;  %3220 = vbcast.lane.b32.xlu1 %v3214_v19, 264  ;;  %v3292_v19 = vcombine.high %v3282_v26, %v3282_v26 }
 0xa1b   : > { %v3309_v12 = vrot.slane %v3292_v19, %v8191_v63 }
 0xa1d   : > { %3231 = vbcast.lane.b32.xlu1 %v3225_v46, 264  ;;  %v3305_v46 = vrot.slane %v3290_v10, %v8191_v63 }
 0xa21   : > { %3242 = vbcast.lane.b32.xlu1 %v3236_v7, 264  ;;  %v3301_v7 = vrot.slane %v3282_v26, %v8191_v63  ;;  %v3275_v26 = vrot.slane %v3259_v28, %v9915_v50 }
 0xa23   : > { %v3313_v28 = vrot.slane %v3275_v26, %v8191_v63  ;;  %v3291_v55 = vcombine.high %v3275_v26, %v3275_v26 }
 0xa25   : > { %v3321_v26 = vrot.slane %v3291_v55, %v8191_v63 }
 0xa73   : > { %v3166_v8 = vpop.permute.xlu0 %3165  ;;  %v3162_v52 = vpop.permute.xlu1 %3161 }
 0xa74   : > { %v3335_v58 = vadd.f32 %v3297_v53, %v3166_v8  ;;  %v3334_v35 = vadd.f32 %v3297_v53, %v3162_v52 }
 0xa76   : > { %v3367_v1 = vmul.f32 0.2, %v3335_v58  ;;  %v3366_v25 = vmul.f32 0.2, %v3334_v35  ;;  %vm3351_vm7 = vcmp.gt.f32.partialorder %v3335_v58, 0.0  ;;  %vm3350_vm8 = vcmp.gt.f32.partialorder %v3334_v35, 0.0 }
 0xa77   : > { %v3184_v60 = vpop.permute.xlu0 %3183  ;;  %v3173_v5 = vpop.permute.xlu1 %3172 }
 0xa78   : > { %v3338_v13 = vadd.f32 %v3305_v46, %v3184_v60  ;;  %v3336_v2 = vadd.f32 %v3301_v7, %v3173_v5  ;;  %v3383_v9 = vsel %vm3351_vm7, %v3335_v58, %v3367_v1  ;;  %v3382_v51 = vsel %vm3350_vm8, %v3334_v35, %v3366_v25 }
 0xa79   : > { %v8869_v52 = vsel %vm8210_vm12, %v3383_v9, -1e+30  ;;  %v8873_v53 = vsel %vm8179_vm4, %v3382_v51, -1e+30 }
 0xa7a   : > { %v3370_v8 = vmul.f32 0.2, %v3338_v13  ;;  %v3368_v59 = vmul.f32 0.2, %v3336_v2  ;;  %v3417_v60 = vsel %vm1337_vm0, %v8869_v52, -inf  ;;  %v3414_v35 = vsel %vm1337_vm0, %v8873_v53, -inf }
 0xa7b   : > { %v3195_v25 = vpop.permute.xlu0 %3194  ;;  %v3177_v1 = vpop.permute.xlu1 %3176  ;;  %3418 = vmax.xlane.f32.xlu1 %v3417_v60  ;;  %3415 = vmax.xlane.f32.xlu0 %v3414_v35  ;;  %vm3354_vm9 = vcmp.gt.f32.partialorder %v3338_v13, 0.0  ;;  %vm3352_vm10 = vcmp.gt.f32.partialorder %v3336_v2, 0.0 }
 0xa7c   : > { %v3340_v9 = vadd.f32 %v3309_v12, %v3195_v25  ;;  %v3337_v58 = vadd.f32 %v3301_v7, %v3177_v1  ;;  %v3386_v19 = vsel %vm3354_vm9, %v3338_v13, %v3370_v8  ;;  %v3384_v5 = vsel %vm3352_vm10, %v3336_v2, %v3368_v59 }
 0xa7d   : > { %v8883_v51 = vsel %vm8179_vm4, %v3386_v19, -1e+30  ;;  %v8887_v22 = vsel %vm8179_vm4, %v3384_v5, -1e+30 }
 0xa7e   : > { %v3372_v60 = vmul.f32 0.2, %v3340_v9  ;;  %v3369_v35 = vmul.f32 0.2, %v3337_v58  ;;  %v3426_v25 = vsel %vm1337_vm0, %v8883_v51, -inf  ;;  %v3420_v59 = vsel %vm1337_vm0, %v8887_v22, -inf }
 0xa7f   : > { %v3206_v13 = vpop.permute.xlu0 %3205  ;;  %v3188_v7 = vpop.permute.xlu1 %3187  ;;  %3427 = vmax.xlane.f32.xlu1 %v3426_v25  ;;  %3421 = vmax.xlane.f32.xlu0 %v3420_v59  ;;  %vm3353_vm11 = vcmp.gt.f32.partialorder %v3337_v58, 0.0  ;;  %vm3356_vm13 = vcmp.gt.f32.partialorder %v3340_v9, 0.0 }
 0xa80   : > { %v3342_v2 = vadd.f32 %v3313_v28, %v3206_v13  ;;  %v3339_v8 = vadd.f32 %v3305_v46, %v3188_v7  ;;  %v3385_v1 = vsel %vm3353_vm11, %v3337_v58, %v3369_v35  ;;  %v3388_v19 = vsel %vm3356_vm13, %v3340_v9, %v3372_v60 }
 0xa81   : > { %v8897_v5 = vsel %vm8210_vm12, %v3385_v1, -1e+30  ;;  %v8901_v50 = vsel %vm8179_vm4, %v3388_v19, -1e+30 }
 0xa82   : > { %v3374_v37 = vmul.f32 0.2, %v3342_v2  ;;  %v3371_v25 = vmul.f32 0.2, %v3339_v8  ;;  %v3423_v59 = vsel %vm1337_vm0, %v8897_v5, -inf  ;;  %v3432_v46 = vsel %vm1337_vm0, %v8901_v50, -inf }
 0xa83   : > { %v3217_v9 = vpop.permute.xlu0 %3216  ;;  %v3199_v58 = vpop.permute.xlu1 %3198  ;;  %3424 = vmax.xlane.f32.xlu0 %v3423_v59  ;;  %3433 = vmax.xlane.f32.xlu1 %v3432_v46  ;;  %vm3355_vm14 = vcmp.gt.f32.partialorder %v3339_v8, 0.0  ;;  %vm3358_vm15 = vcmp.gt.f32.partialorder %v3342_v2, 0.0 }
 0xa84   : > { %v3344_v60 = vadd.f32 %v3317_v6, %v3217_v9  ;;  %v3341_v35 = vadd.f32 %v3309_v12, %v3199_v58  ;;  %v3387_v13 = vsel %vm3355_vm14, %v3339_v8, %v3371_v25  ;;  %v3390_v7 = vsel %vm3358_vm15, %v3342_v2, %v3374_v37 }
 0xa85   : > { %v8910_v1 = vsel %vm8210_vm12, %v3387_v13, -1e+30  ;;  %v8914_v19 = vsel %vm8179_vm4, %v3390_v7, -1e+30 }
 0xa86   : > { %v3376_v33 = vmul.f32 0.2, %v3344_v60  ;;  %v3373_v59 = vmul.f32 0.2, %v3341_v35  ;;  %v3429_v46 = vsel %vm1337_vm0, %v8910_v1, -inf  ;;  %v3438_v12 = vsel %vm1337_vm0, %v8914_v19, -inf }
 0xa87   : > { %v3228_v37 = vpop.permute.xlu0 %3227  ;;  %v3210_v2 = vpop.permute.xlu1 %3209  ;;  %3430 = vmax.xlane.f32.xlu0 %v3429_v46  ;;  %3439 = vmax.xlane.f32.xlu1 %v3438_v12  ;;  %vm3357_vm1 = vcmp.gt.f32.partialorder %v3341_v35, 0.0  ;;  %vm3360_vm2 = vcmp.gt.f32.partialorder %v3344_v60, 0.0 }
 0xa88   : > { %v3346_v55 = vadd.f32 %v3321_v26, %v3228_v37  ;;  %v3343_v8 = vadd.f32 %v3313_v28, %v3210_v2  ;;  %v3389_v25 = vsel %vm3357_vm1, %v3341_v35, %v3373_v59  ;;  %v3392_v9 = vsel %vm3360_vm2, %v3344_v60, %v3376_v33 }
 0xa89   : > { %v8923_v58 = vsel %vm8210_vm12, %v3389_v25, -1e+30  ;;  %v8927_v13 = vsel %vm8179_vm4, %v3392_v9, -1e+30 }
 0xa8a   : > { %v3378_v7 = vmul.f32 0.2, %v3346_v55  ;;  %v3375_v32 = vmul.f32 0.2, %v3343_v8  ;;  %v3435_v46 = vsel %vm1337_vm0, %v8923_v58, -inf  ;;  %v3444_v28 = vsel %vm1337_vm0, %v8927_v13, -inf }
 0xa8b   : > { %v3239_v35 = vpop.permute.xlu0 %3238  ;;  %v3221_v33 = vpop.permute.xlu1 %3220  ;;  %3436 = vmax.xlane.f32.xlu0 %v3435_v46  ;;  %3445 = vmax.xlane.f32.xlu1 %v3444_v28  ;;  %vm3359_vm3 = vcmp.gt.f32.partialorder %v3343_v8, 0.0  ;;  %vm3362_vm5 = vcmp.gt.f32.partialorder %v3346_v55, 0.0 }
 0xa8c   : > { %v3348_v34 = vadd.f32 %v3325_v29, %v3239_v35  ;;  %v3345_v60 = vadd.f32 %v3317_v6, %v3221_v33  ;;  %v3391_v59 = vsel %vm3359_vm3, %v3343_v8, %v3375_v32  ;;  %v3394_v12 = vsel %vm3362_vm5, %v3346_v55, %v3378_v7 }
 0xa8d   : > { %v8935_v37 = vsel %vm8210_vm12, %v3391_v59, -1e+30  ;;  %v8939_v2 = vsel %vm8179_vm4, %v3394_v12, -1e+30 }
 0xa8e   : > { %v3380_v25 = vmul.f32 0.2, %v3348_v34  ;;  %v3377_v9 = vmul.f32 0.2, %v3345_v60  ;;  %v3441_v46 = vsel %vm1337_vm0, %v8935_v37, -inf  ;;  %v3450_v28 = vsel %vm1337_vm0, %v8939_v2, -inf }
 0xa8f   : > { %v3232_v35 = vpop.permute.xlu1 %3231  ;;  %3442 = vmax.xlane.f32.xlu0 %v3441_v46  ;;  %3451 = vmax.xlane.f32.xlu1 %v3450_v28  ;;  %vm3361_vm6 = vcmp.gt.f32.partialorder %v3345_v60, 0.0  ;;  %vm3364_vm7 = vcmp.gt.f32.partialorder %v3348_v34, 0.0 }
 0xa90   : > { %v3347_v32 = vadd.f32 %v3321_v26, %v3232_v35  ;;  %v3393_v6 = vsel %vm3361_vm6, %v3345_v60, %v3377_v9  ;;  %v3396_v55 = vsel %vm3364_vm7, %v3348_v34, %v3380_v25 }
 0xa91   : > { %v8947_v8 = vsel %vm8210_vm12, %v3393_v6, -1e+30  ;;  %v8951_v7 = vsel %vm8179_vm4, %v3396_v55, -1e+30 }
 0xa92   : > { %v3379_v33 = vmul.f32 0.2, %v3347_v32  ;;  %v3447_v59 = vsel %vm1337_vm0, %v8947_v8, -inf  ;;  %v3456_v12 = vsel %vm1337_vm0, %v8951_v7, -inf  ;;  %vm3363_vm8 = vcmp.gt.f32.partialorder %v3347_v32, 0.0 }
 0xa93   : > { %v3243_v46 = vpop.permute.xlu1 %3242  ;;  %3448 = vmax.xlane.f32.xlu0 %v3447_v59  ;;  %3457 = vmax.xlane.f32.xlu1 %v3456_v12 }
 0xa94   : > { %v3349_v26 = vadd.f32 %v3325_v29, %v3243_v46  ;;  %v3395_v34 = vsel %vm3363_vm8, %v3347_v32, %v3379_v33 }
 0xa95   : > { %v8959_v60 = vsel %vm8210_vm12, %v3395_v34, -1e+30 }
 0xa96   : > { %v3381_v25 = vmul.f32 0.2, %v3349_v26  ;;  %v3453_v9 = vsel %vm1337_vm0, %v8959_v60, -inf  ;;  %vm3365_vm9 = vcmp.gt.f32.partialorder %v3349_v26, 0.0 }
 0xa97   : > { %3454 = vmax.xlane.f32.xlu0 %v3453_v9 }
 0xa98   : > { %v3397_v28 = vsel %vm3365_vm9, %v3349_v26, %v3381_v25 }
 0xa99   : > { %v8965_v35 = vsel %vm8210_vm12, %v3397_v28, -1e+30 }
 0xa9a   : > { %v3459_v6 = vsel %vm1337_vm0, %v8965_v35, -inf }
 0xa9b   : > { %3460 = vmax.xlane.f32.xlu0 %v3459_v6 }
 0xb08   : > { %v3419_v29 = vpop.xlane.xlu1 %3418  ;;  %v3416_v32 = vpop.xlane.xlu0 %3415 }
 0xb09   : > { %v3463_v55 = vsub.f32 %v8869_v52, %v3419_v29  ;;  %v3462_v33 = vsub.f32 %v8873_v53, %v3416_v32 }
 0xb0b   : > { %v3480_v59 = vmul.f32 1.442695, %v3463_v55  ;;  %v3478_v12 = vmul.f32 1.442695, %v3462_v33 }
 0xb0c   : > { %v3428_v46 = vpop.xlane.xlu1 %3427  ;;  %v3422_v34 = vpop.xlane.xlu0 %3421 }
 0xb0d   : > { %7192 = vpow2.f32 %v3480_v59  ;;  %v3466_v26 = vsub.f32 %v8883_v51, %v3428_v46  ;;  %v3464_v25 = vsub.f32 %v8887_v22, %v3422_v34 }
 0xb0e   : > { %7194 = vpow2.f32 %v3478_v12 }
 0xb0f   : > { %v3486_v9 = vmul.f32 1.442695, %v3466_v26  ;;  %v3482_v28 = vmul.f32 1.442695, %v3464_v25 }
 0xb10   : > { %v3425_v10 = vpop.xlane.xlu0 %3424  ;;  %v3434_v6 = vpop.xlane.xlu1 %3433 }
 0xb11   : > { %7196 = vpow2.f32 %v3486_v9  ;;  %v3465_v42 = vsub.f32 %v8897_v5, %v3425_v10  ;;  %v3468_v52 = vsub.f32 %v8901_v50, %v3434_v6  ;;  %v9917_v5 = vld [vmem:[#allocation31_spill] sm:$0xff] }
 0xb12   : > { %7198 = vpow2.f32 %v3482_v28 }
 0xb13   : > { %v3484_v53 = vmul.f32 1.442695, %v3465_v42  ;;  %v3490_v29 = vmul.f32 1.442695, %v3468_v52 }
 0xb14   : > { %v3431_v32 = vpop.xlane.xlu0 %3430  ;;  %v3440_v55 = vpop.xlane.xlu1 %3439 }
 0xb15   : > { %7200 = vpow2.f32 %v3484_v53  ;;  %v3467_v51 = vsub.f32 %v8910_v1, %v3431_v32  ;;  %v3470_v22 = vsub.f32 %v8914_v19, %v3440_v55 }
 0xb16   : > { %7202 = vpow2.f32 %v3490_v29 }
 0xb17   : > { %v7193_v33 = vpop.eup %7192  ;;  %v3488_v59 = vmul.f32 1.442695, %v3467_v51  ;;  %v3494_v12 = vmul.f32 1.442695, %v3470_v22 }
 0xb18   : > { %v7195_v46 = vpop.eup %7194  ;;  %v3437_v34 = vpop.xlane.xlu0 %3436  ;;  %v8978_v10 = vmul.f32 %v7193_v33, %v8217_v45 }
 0xb19   : > { %v3446_v26 = vpop.xlane.xlu1 %3445  ;;  %7204 = vpow2.f32 %v3488_v59  ;;  %v3469_v42 = vsub.f32 %v8923_v58, %v3437_v34  ;;  %v8983_v25 = vmul.f32 %v7195_v46, %v9917_v5 }
 0xb1a   : > { %v3472_v50 = vsub.f32 %v8927_v13, %v3446_v26  ;;  %7206 = vpow2.f32 %v3494_v12  ;;  %v3529_v1 = vsel %vm1337_vm0, %v8978_v10, 0.0 }
 0xb1b   : > { %v7197_v19 = vpop.eup %7196  ;;  %v3492_v9 = vmul.f32 1.442695, %v3469_v42  ;;  %3530 = vadd.xlane.f32.xlu0 %v3529_v1  ;;  %v3526_v6 = vsel %vm1337_vm0, %v8983_v25, 0.0 }
 0xb1c   : > { %v3498_v28 = vmul.f32 1.442695, %v3472_v50  ;;  %v7199_v52 = vpop.eup %7198  ;;  %3527 = vadd.xlane.f32.xlu1 %v3526_v6  ;;  %v3443_v53 = vpop.xlane.xlu0 %3442  ;;  %v8997_v59 = vmul.f32 %v7197_v19, %v9917_v5 }
 0xb1d   : > { %v3452_v58 = vpop.xlane.xlu1 %3451  ;;  %7208 = vpow2.f32 %v3492_v9  ;;  %v3471_v13 = vsub.f32 %v8935_v37, %v3443_v53  ;;  %v8992_v32 = vmul.f32 %v7199_v52, %v9917_v5 }
 0xb1e   : > { %v3474_v29 = vsub.f32 %v8939_v2, %v3452_v58  ;;  %7210 = vpow2.f32 %v3498_v28  ;;  %v3538_v9 = vsel %vm1337_vm0, %v8997_v59, 0.0 }
 0xb1f   : > { %v7201_v55 = vpop.eup %7200  ;;  %v3496_v51 = vmul.f32 1.442695, %v3471_v13  ;;  %v3532_v33 = vsel %vm1337_vm0, %v8992_v32, 0.0 }
 0xb20   : > { %v3502_v22 = vmul.f32 1.442695, %v3474_v29  ;;  %v7203_v12 = vpop.eup %7202  ;;  %3533 = vadd.xlane.f32.xlu1 %v3532_v33  ;;  %v3449_v46 = vpop.xlane.xlu0 %3448  ;;  %v9000_v37 = vmul.f32 %v7201_v55, %v8217_v45 }
 0xb21   : > { %v3458_v34 = vpop.xlane.xlu1 %3457  ;;  %7212 = vpow2.f32 %v3496_v51  ;;  %v3473_v2 = vsub.f32 %v8947_v8, %v3449_v46  ;;  %v9009_v28 = vmul.f32 %v7203_v12, %v9917_v5 }
 0xb22   : > { %v3476_v26 = vsub.f32 %v8951_v7, %v3458_v34  ;;  %7214 = vpow2.f32 %v3502_v22  ;;  %v3535_v42 = vsel %vm1337_vm0, %v9000_v37, 0.0 }
 0xb23   : > { %v7205_v50 = vpop.eup %7204  ;;  %v3500_v1 = vmul.f32 1.442695, %v3473_v2  ;;  %3536 = vadd.xlane.f32.xlu0 %v3535_v42  ;;  %v3544_v29 = vsel %vm1337_vm0, %v9009_v28, 0.0 }
 0xb24   : > { %v3506_v19 = vmul.f32 1.442695, %v3476_v26  ;;  %v7207_v6 = vpop.eup %7206  ;;  %3539 = vadd.xlane.f32.xlu1 %v3538_v9  ;;  %v3455_v52 = vpop.xlane.xlu0 %3454  ;;  %v9012_v8 = vmul.f32 %v7205_v50, %v8217_v45 }
 0xb25   : > { %7216 = vpow2.f32 %v3500_v1  ;;  %v3475_v7 = vsub.f32 %v8959_v60, %v3455_v52  ;;  %v9020_v55 = vmul.f32 %v7207_v6, %v9917_v5 }
 0xb26   : > { %7218 = vpow2.f32 %v3506_v19  ;;  %v3541_v53 = vsel %vm1337_vm0, %v9012_v8, 0.0 }
 0xb27   : > { %v7209_v58 = vpop.eup %7208  ;;  %v3504_v13 = vmul.f32 1.442695, %v3475_v7  ;;  %3542 = vadd.xlane.f32.xlu0 %v3541_v53  ;;  %v3550_v2 = vsel %vm1337_vm0, %v9020_v55, 0.0 }
 0xb28   : > { %v7211_v51 = vpop.eup %7210  ;;  %3545 = vadd.xlane.f32.xlu1 %v3544_v29  ;;  %v3461_v22 = vpop.xlane.xlu0 %3460  ;;  %v9023_v33 = vmul.f32 %v7209_v58, %v8217_v45 }
 0xb29   : > { %7220 = vpow2.f32 %v3504_v13  ;;  %v3477_v60 = vsub.f32 %v8965_v35, %v3461_v22  ;;  %v9031_v26 = vmul.f32 %v7211_v51, %v9917_v5 }
 0xb2a   : > { %v3547_v12 = vsel %vm1337_vm0, %v9023_v33, 0.0 }
 0xb2b   : > { %v7213_v46 = vpop.eup %7212  ;;  %v3508_v34 = vmul.f32 1.442695, %v3477_v60  ;;  %3548 = vadd.xlane.f32.xlu0 %v3547_v12  ;;  %v3556_v19 = vsel %vm1337_vm0, %v9031_v26, 0.0 }
 0xb2c   : > { %v7215_v42 = vpop.eup %7214  ;;  %3551 = vadd.xlane.f32.xlu1 %v3550_v2  ;;  %v9034_v50 = vmul.f32 %v7213_v46, %v8217_v45  ;;  %v4406_v2 = vld [vmem:[#allocation3 + $0x200] sm:$0xff] }
 0xb2d   : > { %7222 = vpow2.f32 %v3508_v34  ;;  %v9041_v9 = vmul.f32 %v7215_v42, %v9917_v5  ;;  %v4407_v34 = vld [vmem:[#allocation3 + $0x208] sm:$0xff]  ;;  %v4409_v42 = vld [vmem:[#allocation3 + $0x218] sm:$0xff] }
 0xb2e   : > { %v3553_v35 = vsel %vm1337_vm0, %v9034_v50, 0.0  ;;  %4438 = vmatprep.subr.bf16.mxu0 %v4407_v34  ;;  %v4421_v34 = vld [vmem:[#allocation3 + $0x278] sm:$0xff] }
 0xb2f   : > { %v7217_v1 = vpop.eup %7216  ;;  %3554 = vadd.xlane.f32.xlu0 %v3553_v35  ;;  %v3562_v58 = vsel %vm1337_vm0, %v9041_v9, 0.0  ;;  %4439 = vmatpush1.bf16.msra.mxu0 %v4406_v2  ;;  %v4408_v35 = vld [vmem:[#allocation3 + $0x210] sm:$0xff] }
 0xb30   : > { %v7219_v6 = vpop.eup %7218  ;;  %3557 = vadd.xlane.f32.xlu1 %v3556_v19  ;;  %v9044_v52 = vmul.f32 %v7217_v1, %v8217_v45  ;;  %4440 = vmatprep.subr.bf16.mxu0 %v4409_v42  ;;  %v4411_v1 = vld [vmem:[#allocation3 + $0x228] sm:$0xff]  ;;  %v4410_v19 = vld [vmem:[#allocation3 + $0x220] sm:$0xff]  ;;  %v4420_v2 = vld [vmem:[#allocation3 + $0x270] sm:$0xff] }
 0xb31   : > { %v9051_v13 = vmul.f32 %v7219_v6, %v9917_v5  ;;  %v4413_v6 = vld [vmem:[#allocation3 + $0x238] sm:$0xff]  ;;  %v4423_v42 = vld [vmem:[#allocation3 + $0x288] sm:$0xff] }
 0xb32   : > { %v3559_v7 = vsel %vm1337_vm0, %v9044_v52, 0.0 }
 0xb33   : > { %v7221_v53 = vpop.eup %7220  ;;  %3560 = vadd.xlane.f32.xlu0 %v3559_v7  ;;  %v3568_v60 = vsel %vm1337_vm0, %v9051_v13, 0.0  ;;  %4441 = vmatpush1.bf16.msra.mxu0 %v4408_v35  ;;  %v4412_v7 = vld [vmem:[#allocation3 + $0x230] sm:$0xff]  ;;  %v4422_v35 = vld [vmem:[#allocation3 + $0x280] sm:$0xff] }
 0xb34   : > { %3563 = vadd.xlane.f32.xlu1 %v3562_v58  ;;  %v9054_v29 = vmul.f32 %v7221_v53, %v8217_v45  ;;  %4442 = vmatprep.subr.bf16.mxu0 %v4411_v1  ;;  %v4415_v53 = vld [vmem:[#allocation3 + $0x248] sm:$0xff]  ;;  %v4414_v58 = vld [vmem:[#allocation3 + $0x240] sm:$0xff]  ;;  %v4425_v1 = vld [vmem:[#allocation3 + $0x298] sm:$0xff] }
 0xb36   : > { %v3565_v51 = vsel %vm1337_vm0, %v9054_v29, 0.0 }
 0xb37   : > { %v7223_v22 = vpop.eup %7222  ;;  %3566 = vadd.xlane.f32.xlu0 %v3565_v51  ;;  %4443 = vmatpush1.bf16.msra.mxu0 %v4410_v19  ;;  %v4417_v51 = vld [vmem:[#allocation3 + $0x258] sm:$0xff]  ;;  %v4424_v19 = vld [vmem:[#allocation3 + $0x290] sm:$0xff] }
 0xb38   : > { %3569 = vadd.xlane.f32.xlu1 %v3568_v60  ;;  %v9061_v12 = vmul.f32 %v7223_v22, %v8217_v45  ;;  %4444 = vmatprep.subr.bf16.mxu0 %v4413_v6  ;;  %v4416_v22 = vld [vmem:[#allocation3 + $0x250] sm:$0xff]  ;;  %v4419_v60 = vld [vmem:[#allocation3 + $0x268] sm:$0xff] }
 0xb39   : > { %v4427_v6 = vld [vmem:[#allocation3 + $0x2a8] sm:$0xff] }
 0xb3a   : > { %v3571_v46 = vsel %vm1337_vm0, %v9061_v12, 0.0 }
 0xb3b   : > { %3572 = vadd.xlane.f32.xlu0 %v3571_v46  ;;  %4445 = vmatpush1.bf16.msra.mxu0 %v4412_v7  ;;  %v4418_v46 = vld [vmem:[#allocation3 + $0x260] sm:$0xff] }
 0xb3c   : > { %4446 = vmatprep.subr.bf16.mxu0 %v4415_v53  ;;  %v4426_v7 = vld [vmem:[#allocation3 + $0x2a0] sm:$0xff]  ;;  %v4429_v53 = vld [vmem:[#allocation3 + $0x2b8] sm:$0xff] }
 0xb3f   : > { %4447 = vmatpush1.bf16.msra.mxu0 %v4414_v58  ;;  %v4428_v58 = vld [vmem:[#allocation3 + $0x2b0] sm:$0xff] }
 0xb40   : > { %4448 = vmatprep.subr.bf16.mxu0 %v4417_v51  ;;  %v4431_v51 = vld [vmem:[#allocation3 + $0x2c8] sm:$0xff] }
 0xb43   : > { %4449 = vmatpush1.bf16.msra.mxu0 %v4416_v22 }
 0xb44   : > { %4450 = vmatprep.subr.bf16.mxu0 %v4419_v60 }
 0xb47   : > { %4451 = vmatpush1.bf16.msra.mxu0 %v4418_v46 }
 0xb48   : > { %4452 = vmatprep.subr.bf16.mxu0 %v4421_v34 }
 0xb4b   : > { %4453 = vmatpush1.bf16.msra.mxu0 %v4420_v2 }
 0xb4c   : > { %4454 = vmatprep.subr.bf16.mxu0 %v4423_v42 }
 0xb4f   : > { %4455 = vmatpush1.bf16.msra.mxu0 %v4422_v35 }
 0xb50   : > { %4456 = vmatprep.subr.bf16.mxu0 %v4425_v1 }
 0xb53   : > { %4457 = vmatpush1.bf16.msra.mxu0 %v4424_v19 }
 0xb54   : > { %4458 = vmatprep.subr.bf16.mxu0 %v4427_v6 }
 0xb57   : > { %4459 = vmatpush1.bf16.msra.mxu0 %v4426_v7 }
 0xb58   : > { %4460 = vmatprep.subr.bf16.mxu0 %v4429_v53 }
 0xb5b   : > { %4461 = vmatpush1.bf16.msra.mxu0 %v4428_v58  ;;  %v9918_v58 = vpack.c.bf16 %v8759_v23, %v8741_v17 }
 0xb5c   : > { %4462 = vmatprep.subr.bf16.mxu0 %v4431_v51 }
 0xba8   : > { %v3531_v22 = vpop.xlane.xlu0 %3530 }
 0xba9   : > { %7224 = vrcp.f32 %v3531_v22  ;;  %v3528_v60 = vpop.xlane.xlu1 %3527  ;;  %vm3575_vm11 = vcmp.gt.f32.partialorder %v3531_v22, 0.0  ;;  %v9919_v22 = vpack.c.bf16 %v8767_v44, %v8752_v24  ;;  %v9920_v24 = vpack.c.bf16 %v8762_v61, %v8744_v36 }
 0xbaa   : > { %7226 = vrcp.f32 %v3528_v60  ;;  %vm3574_vm10 = vcmp.gt.f32.partialorder %v3528_v60, 0.0 }
 0xbad   : > { %v3534_v46 = vpop.xlane.xlu1 %3533 }
 0xbae   : > { %7228 = vrcp.f32 %v3534_v46  ;;  %vm3576_vm13 = vcmp.gt.f32.partialorder %v3534_v46, 0.0 }
 0xbb0   : > { %v3537_v34 = vpop.xlane.xlu0 %3536 }
 0xbb1   : > { %7230 = vrcp.f32 %v3537_v34  ;;  %v3540_v42 = vpop.xlane.xlu1 %3539  ;;  %vm3577_vm14 = vcmp.gt.f32.partialorder %v3537_v34, 0.0 }
 0xbb2   : > { %7232 = vrcp.f32 %v3540_v42  ;;  %vm3578_vm15 = vcmp.gt.f32.partialorder %v3540_v42, 0.0 }
 0xbb3   : > { %v7225_v2 = vpop.eup %7224 }
 0xbb4   : > { %v7227_v35 = vpop.eup %7226  ;;  %v3623_v6 = vsel %vm3575_vm11, %v7225_v2, 0.0  ;;  %v3543_v7 = vpop.xlane.xlu0 %3542 }
 0xbb5   : > { %v3622_v1 = vsel %vm3574_vm10, %v7227_v35, 0.0  ;;  %v3639_v51 = vmul.f32 %v3623_v6, %v8978_v10  ;;  %7234 = vrcp.f32 %v3543_v7  ;;  %v3546_v60 = vpop.xlane.xlu1 %3545  ;;  %vm3579_vm1 = vcmp.gt.f32.partialorder %v3543_v7, 0.0 }
 0xbb6   : > { %v3638_v19 = vmul.f32 %v3622_v1, %v8983_v25  ;;  %7236 = vrcp.f32 %v3546_v60  ;;  %vm3580_vm2 = vcmp.gt.f32.partialorder %v3546_v60, 0.0 }
 0xbb8   : > { %v7229_v53 = vpop.eup %7228  ;;  %6528 = vmatmul.mubr.msk.f32.vlgmr.msra.gmra.mrb[10].mxu1 %vm1337_vm0, %v3638_v19  ;;  %v3549_v35 = vpop.xlane.xlu0 %3548 }
 0xbb9   : > { %6706 = vmatpush1.bf16.msra.mxu1 %v9918_v58  ;;  %3762 = vmatprep.mubr.f32.mxu1 %v9886_v57  ;;  %v3624_v25 = vsel %vm3576_vm13, %v7229_v53, 0.0  ;;  %7238 = vrcp.f32 %v3549_v35  ;;  %v3552_v34 = vpop.xlane.xlu1 %3551  ;;  %vm3581_vm3 = vcmp.gt.f32.partialorder %v3549_v35, 0.0 }
 0xbba   : > { %6708 = vmatprep.subr.bf16.mxu1 %v9919_v22  ;;  %v3640_v17 = vmul.f32 %v3624_v25, %v8992_v32  ;;  %v9921_v32 = vpack.c.bf16 %v8775_v3, %v8755_v30  ;;  %7240 = vrcp.f32 %v3552_v34  ;;  %v9922_v30 = vpack.c.bf16 %v8780_v18, %v8747_v56 }
 0xbbb   : > { %v7231_v2 = vpop.eup %7230  ;;  %vm3582_vm5 = vcmp.gt.f32.partialorder %v3552_v34, 0.0  ;;  %v4435_v34 = vld [vmem:[#allocation3 + $0x2e8] sm:$0xff] }
 0xbbc   : > { %6529 = vmatmul.mubr.msk.f32.gmra.mrb[12].mxu1 %vm1337_vm0, %v3639_v51  ;;  %v3625_v23 = vsel %vm3577_vm14, %v7231_v2, 0.0  ;;  %v7233_v10 = vpop.eup %7232  ;;  %v3555_v19 = vpop.xlane.xlu0 %3554 }
 0xbbd   : > { %3839 = vmatprep.mubr.f32.mxu1 %v9886_v57  ;;  %v3641_v44 = vmul.f32 %v3625_v23, %v9000_v37  ;;  %v3626_v46 = vsel %vm3578_vm15, %v7233_v10, 0.0  ;;  %7242 = vrcp.f32 %v3555_v19  ;;  %v3558_v6 = vpop.xlane.xlu1 %3557  ;;  %vm3583_vm6 = vcmp.gt.f32.partialorder %v3555_v19, 0.0 }
 0xbbe   : > { %v3642_v36 = vmul.f32 %v3626_v46, %v8997_v59  ;;  %v9923_v59 = vpack.c.bf16 %v8788_v15, %v8785_v54  ;;  %7244 = vrcp.f32 %v3558_v6  ;;  %v9924_v54 = vpack.c.bf16 %v8796_v40, %v8791_v41  ;;  %v4432_v46 = vld [vmem:[#allocation3 + $0x2d0] sm:$0xff] }
 0xbbf   : > { %v7235_v1 = vpop.eup %7234  ;;  %vm3584_vm7 = vcmp.gt.f32.partialorder %v3558_v6, 0.0 }
 0xbc0   : > { %6530 = vmatmul.mubr.msk.f32.vlgmr.msra.gmra.mrb[10].mxu1 %vm1337_vm0, %v3640_v17  ;;  %v3627_v61 = vsel %vm3579_vm1, %v7235_v1, 0.0  ;;  %v7237_v37 = vpop.eup %7236  ;;  %v3561_v53 = vpop.xlane.xlu0 %3560  ;;  %v4434_v1 = vld [vmem:[#allocation3 + $0x2e0] sm:$0xff] }
 0xbc1   : > { %6710 = vmatpush1.bf16.msra.mxu1 %v9920_v24  ;;  %3845 = vmatprep.mubr.f32.mxu1 %v9886_v57  ;;  %v3643_v3 = vmul.f32 %v3627_v61, %v9012_v8  ;;  %v3628_v42 = vsel %vm3580_vm2, %v7237_v37, 0.0  ;;  %7246 = vrcp.f32 %v3561_v53  ;;  %v3564_v51 = vpop.xlane.xlu1 %3563  ;;  %vm3585_vm8 = vcmp.gt.f32.partialorder %v3561_v53, 0.0 }
 0xbc2   : > { %6712 = vmatprep.subr.bf16.mxu1 %v9921_v32  ;;  %v3644_v56 = vmul.f32 %v3628_v42, %v9009_v28  ;;  %v9925_v28 = vpack.c.bf16 %v8802_v62, %v8799_v11  ;;  %7248 = vrcp.f32 %v3564_v51  ;;  %v9926_v11 = vpack.c.bf16 %v8810_v38, %v8807_v14 }
 0xbc3   : > { %v7239_v7 = vpop.eup %7238  ;;  %vm3586_vm9 = vcmp.gt.f32.partialorder %v3564_v51, 0.0 }
 0xbc4   : > { %6531 = vmatmul.mubr.msk.f32.gmra.mrb[12].mxu1 %vm1337_vm0, %v3641_v44  ;;  %v3629_v18 = vsel %vm3581_vm3, %v7239_v7, 0.0  ;;  %v7241_v8 = vpop.eup %7240  ;;  %v3567_v25 = vpop.xlane.xlu0 %3566 }
 0xbc5   : > { %3922 = vmatprep.mubr.f32.mxu1 %v9886_v57  ;;  %v3645_v15 = vmul.f32 %v3629_v18, %v9023_v33  ;;  %v3630_v58 = vsel %vm3582_vm5, %v7241_v8, 0.0  ;;  %7250 = vrcp.f32 %v3567_v25  ;;  %v3570_v2 = vpop.xlane.xlu1 %3569  ;;  %vm3587_vm10 = vcmp.gt.f32.partialorder %v3567_v25, 0.0 }
 0xbc6   : > { %v3646_v41 = vmul.f32 %v3630_v58, %v9020_v55  ;;  %v9927_v55 = vpack.c.bf16 %v8820_v27, %v8813_v4  ;;  %7252 = vrcp.f32 %v3570_v2  ;;  %v9928_v4 = vpack.c.bf16 %v8828_v43, %v8823_v21 }
 0xbc7   : > { %v7243_v22 = vpop.eup %7242  ;;  %vm3588_vm11 = vcmp.gt.f32.partialorder %v3570_v2, 0.0 }
 0xbc8   : > { %6532 = vmatmul.mubr.msk.f32.vlgmr.msra.gmra.mrb[10].mxu1 %vm1337_vm0, %v3642_v36  ;;  %v3631_v40 = vsel %vm3583_vm6, %v7243_v22, 0.0  ;;  %v7245_v33 = vpop.eup %7244  ;;  %v3573_v23 = vpop.xlane.xlu0 %3572  ;;  %v4436_v36 = vld [vmem:[#allocation3 + $0x2f0] sm:$0xff] }
 0xbc9   : > { %6714 = vmatpush1.bf16.msra.mxu1 %v9922_v30  ;;  %3928 = vmatprep.mubr.f32.mxu1 %v9886_v57  ;;  %v3647_v62 = vmul.f32 %v3631_v40, %v9034_v50  ;;  %v3632_v60 = vsel %vm3584_vm7, %v7245_v33, 0.0  ;;  %7254 = vrcp.f32 %v3573_v23  ;;  %vm3589_vm13 = vcmp.gt.f32.partialorder %v3573_v23, 0.0  ;;  %v4483_v40 = vld [vmem:[#allocation16 + $0x28] sm:$0xff]  ;;  %v9934_v23 = vld [vmem:[#allocation38_spill] sm:$0xff] }
 0xbca   : > { %6716 = vmatprep.subr.bf16.mxu1 %v9923_v59  ;;  %v3648_v14 = vmul.f32 %v3632_v60, %v9031_v26  ;;  %v9929_v26 = vpack.c.bf16 %v8834_v47, %v8831_v20  ;;  %v9932_v60 = vld [vmem:[#allocation36_spill] sm:$0xff] }
 0xbcb   : > { %v7247_v17 = vpop.eup %7246 }
 0xbcc   : > { %6533 = vmatmul.mubr.msk.f32.gmra.mrb[12].mxu1 %vm1337_vm0, %v3643_v3  ;;  %v3633_v38 = vsel %vm3585_vm8, %v7247_v17, 0.0  ;;  %v7249_v50 = vpop.eup %7248  ;;  %v9933_v17 = vld [vmem:[#allocation37_spill] sm:$0xff] }
 0xbcd   : > { %4005 = vmatprep.mubr.f32.mxu1 %v9886_v57  ;;  %v3649_v27 = vmul.f32 %v3633_v38, %v9044_v52  ;;  %v3634_v35 = vsel %vm3586_vm9, %v7249_v50, 0.0  ;;  %v9930_v52 = vpack.c.bf16 %v8842_v39, %v8839_v16  ;;  %v4430_v16 = vld [vmem:[#allocation3 + $0x2c0] sm:$0xff] }
 0xbce   : > { %v3650_v24 = vmul.f32 %v3634_v35, %v9041_v9  ;;  %4463 = vmatpush1.bf16.msra.mxu0 %v4430_v16 }
 0xbcf   : > { %v7251_v10 = vpop.eup %7250 }
 0xbd0   : > { %6534 = vmatmul.mubr.msk.f32.vlgmr.msra.gmra.mrb[10].mxu1 %vm1337_vm0, %v3644_v56  ;;  %v3635_v21 = vsel %vm3587_vm10, %v7251_v10, 0.0  ;;  %v7253_v43 = vpop.eup %7252  ;;  %v9937_v10 = vld [vmem:[#allocation41_spill] sm:$0xff] }
 0xbd1   : > { %6718 = vmatpush1.bf16.msra.mxu1 %v9924_v54  ;;  %4011 = vmatprep.mubr.f32.mxu1 %v9886_v57  ;;  %v3651_v20 = vmul.f32 %v3635_v21, %v9054_v29  ;;  %v3636_v47 = vsel %vm3588_vm11, %v7253_v43, 0.0  ;;  %v4433_v29 = vld [vmem:[#allocation3 + $0x2d8] sm:$0xff] }
 0xbd2   : > { %6720 = vmatprep.subr.bf16.mxu1 %v9925_v28  ;;  %v3652_v9 = vmul.f32 %v3636_v47, %v9051_v13  ;;  %4464 = vmatprep.subr.bf16.mxu0 %v4433_v29  ;;  %v4437_v13 = vld [vmem:[#allocation3 + $0x2f8] sm:$0xff] }
 0xbd3   : > { %v7255_v44 = vpop.eup %7254  ;;  %4465 = vmatpush1.bf16.msra.mxu0 %v4432_v46 }
 0xbd4   : > { %6535 = vmatmul.mubr.msk.f32.gmra.mrb[12].mxu1 %vm1337_vm0, %v3645_v15  ;;  %v3637_v32 = vsel %vm3589_vm13, %v7255_v44, 0.0  ;;  %4466 = vmatprep.subr.bf16.mxu0 %v4435_v34 }
 0xbd5   : > { %4088 = vmatprep.mubr.f32.mxu1 %v9886_v57  ;;  %v3653_v39 = vmul.f32 %v3637_v32, %v9061_v12  ;;  %v6544_v12 = vld [vmem:[%s9897_s20 + $0x2] sm:$0x3] }
 0xbd6   : > { %v4384_v61 = vrot.slane %v6544_v12, %v8191_v63  ;;  %v4388_v19 = vrot.slane %v6544_v12, %v8194_v0 }
 0xbd7   : > { %4467 = vmatpush1.bf16.msra.mxu0 %v4434_v1 }
 0xbd8   : > { %6536 = vmatmul.mubr.msk.f32.vlgmr.msra.gmra.mrb[10].mxu1 %vm1337_vm0, %v3646_v41  ;;  %4468 = vmatprep.subr.bf16.mxu0 %v4437_v13 }
 0xbd9   : > { %6722 = vmatpush1.bf16.msra.mxu1 %v9926_v11  ;;  %4094 = vmatprep.mubr.f32.mxu1 %v9886_v57 }
 0xbda   : > { %6724 = vmatprep.subr.bf16.mxu1 %v9927_v55 }
 0xbdb   : > { %4469 = vmatpush1.bf16.msra.mxu0 %v4436_v36 }
 0xbdc   : > { %6537 = vmatmul.mubr.msk.f32.gmra.mrb[12].mxu1 %vm1337_vm0, %v3647_v62  ;;  %v9931_v62 = vld [vmem:[#allocation35_spill] sm:$0xff] }
 0xbdd   : > { %4171 = vmatprep.mubr.f32.mxu1 %v9886_v57 }
 0xbe0   : > { %6538 = vmatmul.mubr.msk.f32.vlgmr.msra.gmra.mrb[10].mxu1 %vm1337_vm0, %v3648_v14 }
 0xbe1   : > { %6726 = vmatpush1.bf16.msra.mxu1 %v9928_v4  ;;  %4177 = vmatprep.mubr.f32.mxu1 %v9886_v57  ;;  %v9935_v4 = vld [vmem:[#allocation39_spill] sm:$0xff] }
 0xbe2   : > { %6728 = vmatprep.subr.bf16.mxu1 %v9929_v26  ;;  %v9936_v26 = vld [vmem:[#allocation40_spill] sm:$0xff] }
 0xbe4   : > { %6539 = vmatmul.mubr.msk.f32.gmra.mrb[12].mxu1 %vm1337_vm0, %v3649_v27 }
 0xbe5   : > { %4254 = vmatprep.mubr.f32.mxu1 %v9886_v57 }
 0xbe8   : > { %6540 = vmatmul.mubr.msk.f32.vlgmr.msra.gmra.mrb[10].mxu1 %vm1337_vm0, %v3650_v24 }
 0xbe9   : > { %6730 = vmatpush1.bf16.msra.mxu1 %v9930_v52  ;;  %4260 = vmatprep.mubr.f32.mxu1 %v9886_v57 }
 0xbec   : > { %6541 = vmatmul.mubr.msk.f32.gmra.mrb[12].mxu1 %vm1337_vm0, %v3651_v20 }
 0xbed   : > { %4337 = vmatprep.mubr.f32.mxu1 %v9886_v57 }
 0xbf0   : > { %6542 = vmatmul.mubr.msk.f32.vlgmr.msra.gmra.mrb[10].mxu1 %vm1337_vm0, %v3652_v9 }
 0xbf1   : > { %4343 = vmatprep.mubr.f32.mxu1 %v9886_v57 }
 0xbf4   : > { %6543 = vmatmul.mubr.msk.f32.gmra.mrb[12].mxu1 %vm1337_vm0, %v3653_v39 }
 0xbf5   : > { %4548 = vmatprep.mubr.f32.mxu1 %v4483_v40 }
 0xcc3   : > { %v4339_v37 = vpop.f32.mrb[10].mxu1 }
 0xcc4   : > { %v4391_v30 = vadd.f32 %v4384_v61, %v4339_v37  ;;  %v4341_v3 = vpop.f32.mrb[11].mxu1 }
 0xcc5   : > { %v4392_v59 = vadd.f32 %v4388_v19, %v4341_v3 }
 0xcc6   : > { %v4395_v6 = vmax.f32 %v4391_v30, 0.0  ;;  %v9939_v30 = vld [vmem:[#allocation42_spill] sm:$0xff] }
 0xcc7   : > { %v4345_v42 = vpop.f32.mrb[12].mxu1  ;;  %v4396_v18 = vmax.f32 %v4392_v59, 0.0 }
 0xcc8   : > { %v4393_v7 = vadd.f32 %v4384_v61, %v4345_v42  ;;  %v4347_v56 = vpop.f32.mrb[13].mxu1  ;;  %v4399_v15 = vmul.f32 %v8219_v48, %v4395_v6  ;;  %v9938_v61 = vld [vmem:[#allocation43_spill] sm:$0xff]  ;;  %v9940_v6 = vld [vmem:[#allocation45_spill] sm:$0xff] }
 0xcc9   : > { %v4394_v53 = vadd.f32 %v4388_v19, %v4347_v56  ;;  %v4400_v58 = vmul.f32 %v8219_v48, %v4396_v18 }
 0xcca   : > { %v4397_v8 = vmax.f32 %v4393_v7, 0.0 }
 0xccb   : > { %v4398_v54 = vmax.f32 %v4394_v53, 0.0  ;;  %v9941_v53 = vld [vmem:[#allocation44_spill] sm:$0xff] }
 0xccc   : > { %v4401_v28 = vmul.f32 %v8221_v49, %v4397_v8 }
 0xccd   : > { %v4402_v51 = vmul.f32 %v8221_v49, %v4398_v54 }
 0xcce   : > { %v4403_v22 = vpack.c.bf16 %v4401_v28, %v4399_v15  ;;  %v9942_v15 = vld [vmem:[#allocation47_spill] sm:$0xff] }
 0xccf   : > { %v4404_v41 = vpack.c.bf16 %v4402_v51, %v4400_v58 }
 0xcd1   : > { %4470 = vmatprep.mubr.bf16.mxu0 %v4404_v41  ;;  %v9943_v41 = vld [vmem:[#allocation46_spill] sm:$0xff] }
 0xcd2   : > { %4471 = vmatmul.mubr.bf16.vlgmr.msra.gmra.mrb[16].mxu0 %v4403_v22 }
 0xcd3   : > { %5955 = vmatprep.mubr.f32.mxu0 %v9886_v57 }
 0xda5   : > { %v4472_v25 = vpop.f32.mrb[16].mxu0 }
 0xda6   : > { %v4474_v33 = vpop.f32.mrb[17].mxu0  ;;  %v9162_v11 = vmul.f32 %v4472_v25, %v8244_v31  ;;  %v9165_v55 = vmul.f32 %v4472_v25, %v9931_v62  ;;  %v9168_v2 = vmul.f32 %v4472_v25, %v9932_v60  ;;  %v9171_v14 = vmul.f32 %v4472_v25, %v9933_v17 }
 0xda7   : > { %v4476_v38 = vpop.f32.mrb[18].mxu0  ;;  %v5126_v50 = vmul.f32 %v4474_v33, %v9934_v23  ;;  %v5130_v27 = vmul.f32 %v4474_v33, %v9935_v4  ;;  %v9176_v35 = vmul.f32 %v4474_v33, %v9936_v26  ;;  %v9179_v24 = vmul.f32 %v4474_v33, %v9937_v10 }
 0xda8   : > { %v4478_v21 = vpop.f32.mrb[19].mxu0  ;;  %v6733_v43 = vpack.c.bf16 %v4476_v38, %v4472_v25  ;;  %v5127_v52 = vmul.f32 %v4476_v38, %v8244_v31  ;;  %v9183_v20 = vmul.f32 %v4476_v38, %v9931_v62  ;;  %v9186_v47 = vmul.f32 %v4476_v38, %v9932_v60 }
 0xda9   : > { %v6731_v44 = vpack.c.bf16 %v4478_v21, %v4474_v33  ;;  %v5128_v9 = vmul.f32 %v4478_v21, %v9934_v23  ;;  %v5132_v32 = vmul.f32 %v4478_v21, %v9935_v4  ;;  %v9191_v39 = vmul.f32 %v4478_v21, %v9936_v26  ;;  %v4556_v4 = vld [vmem:[#allocation14 + $0x28] sm:$0xff]  ;;  %v9945_v26 = vld [vmem:[#allocation48_spill] sm:$0xff] }
 0xdaa   : > { %v6741_v16 = vpack.c.bf16 %v5127_v52, %v9162_v11  ;;  %v9199_v46 = vmul.f32 %v4478_v21, %v9937_v10  ;;  %v9204_v36 = vmul.f32 %v4476_v38, %v9933_v17  ;;  %v9209_v19 = vmul.f32 %v4474_v33, %v9938_v61  ;;  %v4482_v11 = vld [vmem:[#allocation16 + $0x20] sm:$0xff]  ;;  %v9944_v17 = vld [vmem:[#allocation49_spill] sm:$0xff] }
 0xdab   : > { %6732 = vmatprep.subr.bf16.mxu1 %v6731_v44  ;;  %v6739_v34 = vpack.c.bf16 %v5128_v9, %v5126_v50  ;;  %v6743_v1 = vpack.c.bf16 %v5132_v32, %v5130_v27  ;;  %v9212_v37 = vmul.f32 %v4478_v21, %v9938_v61  ;;  %v9215_v3 = vmul.f32 %v4472_v25, %v9939_v30  ;;  %v4555_v9 = vld [vmem:[#allocation14 + $0x20] sm:$0xff] }
 0xdac   : > { %6734 = vmatpush1.bf16.xpose.msra.mxu1 %v6733_v43  ;;  %v9220_v42 = vmul.f32 %v4476_v38, %v9939_v30  ;;  %v9223_v7 = vmul.f32 %v4474_v33, %v9940_v6  ;;  %v9226_v56 = vmul.f32 %v4478_v21, %v9940_v6  ;;  %v9231_v8 = vmul.f32 %v4472_v25, %v9941_v53  ;;  %v9946_v61 = vld [vmem:[#allocation50_spill] sm:$0xff] }
 0xdad   : > { %6736 = vmatprep.subr.bf16.mxu1 %v6731_v44  ;;  %v9234_v54 = vmul.f32 %v4476_v38, %v9941_v53  ;;  %v9237_v28 = vmul.f32 %v4474_v33, %v9942_v15  ;;  %v9244_v22 = vmul.f32 %v4478_v21, %v9942_v15  ;;  %v9247_v40 = vmul.f32 %v4472_v25, %v9943_v41 }
 0xdae   : > { %v9252_v60 = vmul.f32 %v4476_v38, %v9943_v41  ;;  %v9255_v23 = vmul.f32 %v4474_v33, %v9944_v17  ;;  %v9258_v50 = vmul.f32 %v4478_v21, %v9944_v17  ;;  %v9263_v10 = vmul.f32 %v4472_v25, %v9945_v26  ;;  %v9949_v41 = vld [vmem:[#allocation53_spill] sm:$0xff]  ;;  %v9950_v17 = vld [vmem:[#allocation54_spill] sm:$0xff] }
 0xdaf   : > { %v9266_v52 = vmul.f32 %v4476_v38, %v9945_v26  ;;  %v9951_v26 = vld [vmem:[#allocation55_spill] sm:$0xff] }
 0xdb3   : > { %4549 = vmatmul.mubr.f32.vlgmr.msra.gmra.mrb[14].mxu1 %v4482_v11 }
 0xdb4   : > { %6738 = vmatpush1.bf16.xpose.msra.mxu1 %v6733_v43  ;;  %4621 = vmatprep.mubr.f32.mxu1 %v4556_v4 }
 0xdb5   : > { %6740 = vmatprep.subr.bf16.mxu1 %v6739_v34  ;;  %v9947_v34 = vld [vmem:[#allocation51_spill] sm:$0xff] }
 0xdbb   : > { %4622 = vmatmul.mubr.f32.vlgmr.msra.gmra.mrb[16].mxu1 %v4555_v9 }
 0xdbc   : > { %6742 = vmatpush1.bf16.msra.mxu1 %v6741_v16  ;;  %5227 = vmatprep.mubr.f32.mxu1 %v9886_v57  ;;  %v9948_v16 = vld [vmem:[#allocation52_spill] sm:$0xff] }
 0xdbd   : > { %6744 = vmatprep.subr.bf16.mxu1 %v6743_v1 }
 0xe86   : > { %v4550_v25 = vpop.f32.mrb[14].mxu1 }
 0xe87   : > { %v4552_v38 = vpop.f32.mrb[15].mxu1  ;;  %v4630_v32 = vrot.slane %v4550_v25, %v8191_v63  ;;  %v4652_v30 = vrot.slane %v4550_v25, %v9946_v61  ;;  %v4641_v6 = vrot.slane %v4550_v25, %v8194_v0  ;;  %v4663_v53 = vrot.slane %v4550_v25, %v9947_v34 }
 0xe88   : > { %v4674_v1 = vrot.slane %v4550_v25, %v9948_v16  ;;  %v4685_v11 = vrot.slane %v4550_v25, %v9949_v41  ;;  %v4696_v4 = vrot.slane %v4550_v25, %v9950_v17  ;;  %v4707_v9 = vrot.slane %v4550_v25, %v9951_v26  ;;  %v9952_v38 = vld [vmem:[#allocation56_spill] sm:$0xff] }
 0xe89   : > { %4636 = vbcast.lane.b32.xlu0 %v4630_v32, 264  ;;  %4632 = vbcast.lane.b32.xlu1 %v4630_v32, 256 }
 0xe8d   : > { %4654 = vbcast.lane.b32.xlu0 %v4652_v30, 256  ;;  %4643 = vbcast.lane.b32.xlu1 %v4641_v6, 256 }
 0xe8e   : > { %v4623_v43 = vpop.f32.mrb[16].mxu1 }
 0xe8f   : > { %v4625_v15 = vpop.f32.mrb[17].mxu1  ;;  %v4723_v32 = vrot.slane %v4623_v43, %v9952_v38 }
 0xe91   : > { %4665 = vbcast.lane.b32.xlu0 %v4663_v53, 256  ;;  %4647 = vbcast.lane.b32.xlu1 %v4641_v6, 264  ;;  %v4739_v61 = vrot.slane %v4723_v32, %v9952_v38  ;;  %v4731_v6 = vcombine.high %v4723_v32, %v4723_v32 }
 0xe93   : > { %v4768_v34 = vrot.slane %v4739_v61, %v8191_v63  ;;  %v4761_v15 = vcombine.high %v4739_v61, %v4739_v61 }
 0xe95   : > { %4676 = vbcast.lane.b32.xlu0 %v4674_v1, 256  ;;  %4658 = vbcast.lane.b32.xlu1 %v4652_v30, 264  ;;  %v4716_v30 = vcombine.high %v4623_v43, %v4623_v43 }
 0xe97   : > { %v4730_v16 = vrot.slane %v4716_v30, %v9952_v38 }
 0xe99   : > { %4687 = vbcast.lane.b32.xlu0 %v4685_v11, 256  ;;  %4669 = vbcast.lane.b32.xlu1 %v4663_v53, 264  ;;  %v4753_v53 = vrot.slane %v4731_v6, %v9952_v38  ;;  %v4732_v32 = vcombine.high %v4730_v16, %v4730_v16 }
 0xe9b   : > { %v4763_v26 = vcombine.high %v4753_v53, %v4753_v53  ;;  %v4760_v58 = vrot.slane %v4732_v32, %v9952_v38 }
 0xe9d   : > { %4698 = vbcast.lane.b32.xlu0 %v4696_v4, 256  ;;  %4680 = vbcast.lane.b32.xlu1 %v4674_v1, 264  ;;  %v4780_v27 = vrot.slane %v4763_v26, %v8191_v63  ;;  %v4788_v32 = vrot.slane %v4760_v58, %v8191_v63 }
 0xea1   : > { %4709 = vbcast.lane.b32.xlu0 %v4707_v9, 256  ;;  %4691 = vbcast.lane.b32.xlu1 %v4685_v11, 264  ;;  %v4776_v11 = vrot.slane %v4761_v15, %v8191_v63 }
 0xea5   : > { %4702 = vbcast.lane.b32.xlu1 %v4696_v4, 264  ;;  %v4772_v4 = vrot.slane %v4753_v53, %v8191_v63 }
 0xea9   : > { %4713 = vbcast.lane.b32.xlu1 %v4707_v9, 264 }
 0xefb   : > { %v4637_v1 = vpop.permute.xlu0 %4636  ;;  %v4633_v41 = vpop.permute.xlu1 %4632 }
 0xefc   : > { %v4806_v25 = vadd.f32 %v4768_v34, %v4637_v1  ;;  %v4805_v17 = vadd.f32 %v4768_v34, %v4633_v41  ;;  %v4746_v41 = vrot.slane %v4730_v16, %v9952_v38 }
 0xefe   : > { %vm4822_vm14 = vcmp.gt.f32.partialorder %v4806_v25, 0.0  ;;  %v4838_v9 = vmul.f32 0.2, %v4806_v25  ;;  %vm4821_vm15 = vcmp.gt.f32.partialorder %v4805_v17, 0.0  ;;  %v4837_v43 = vmul.f32 0.2, %v4805_v17 }
 0xeff   : > { %v4655_v21 = vpop.permute.xlu0 %4654  ;;  %v4644_v61 = vpop.permute.xlu1 %4643 }
 0xf00   : > { %v4809_v33 = vadd.f32 %v4776_v11, %v4655_v21  ;;  %v4807_v6 = vadd.f32 %v4772_v4, %v4644_v61  ;;  %v4854_v44 = vsel %vm4822_vm14, %v4806_v25, %v4838_v9  ;;  %v4853_v30 = vsel %vm4821_vm15, %v4805_v17, %v4837_v43 }
 0xf01   : > { %v9293_v34 = vsel %vm8210_vm12, %v4854_v44, -1e+30  ;;  %v9297_v53 = vsel %vm8179_vm4, %v4853_v30, -1e+30  ;;  %v4784_v43 = vrot.slane %v4746_v41, %v8191_v63 }
 0xf02   : > { %vm4825_vm1 = vcmp.gt.f32.partialorder %v4809_v33, 0.0  ;;  %v4841_v62 = vmul.f32 0.2, %v4809_v33  ;;  %vm4823_vm2 = vcmp.gt.f32.partialorder %v4807_v6, 0.0  ;;  %v4839_v51 = vmul.f32 0.2, %v4807_v6 }
 0xf03   : > { %v4666_v21 = vpop.permute.xlu0 %4665  ;;  %v4648_v61 = vpop.permute.xlu1 %4647  ;;  %v4888_v25 = vsel %vm1337_vm0, %v9293_v34, -inf  ;;  %v4885_v17 = vsel %vm1337_vm0, %v9297_v53, -inf }
 0xf04   : > { %v4811_v44 = vadd.f32 %v4780_v27, %v4666_v21  ;;  %v4808_v26 = vadd.f32 %v4772_v4, %v4648_v61  ;;  %4889 = vmax.xlane.f32.xlu1 %v4888_v25  ;;  %4886 = vmax.xlane.f32.xlu0 %v4885_v17  ;;  %v4857_v9 = vsel %vm4825_vm1, %v4809_v33, %v4841_v62 }
 0xf05   : > { %v9307_v16 = vsel %vm8179_vm4, %v4857_v9, -1e+30  ;;  %v4855_v30 = vsel %vm4823_vm2, %v4807_v6, %v4839_v51  ;;  %v4762_v25 = vcombine.high %v4746_v41, %v4746_v41 }
 0xf06   : > { %vm4827_vm3 = vcmp.gt.f32.partialorder %v4811_v44, 0.0  ;;  %v4843_v18 = vmul.f32 0.2, %v4811_v44  ;;  %vm4824_vm5 = vcmp.gt.f32.partialorder %v4808_v26, 0.0  ;;  %v4840_v59 = vmul.f32 0.2, %v4808_v26 }
 0xf07   : > { %v4677_v12 = vpop.permute.xlu0 %4676  ;;  %v4659_v31 = vpop.permute.xlu1 %4658  ;;  %v4897_v4 = vsel %vm1337_vm0, %v9307_v16, -inf  ;;  %v9314_v62 = vsel %vm8179_vm4, %v4855_v30, -1e+30  ;;  %v4792_v41 = vrot.slane %v4762_v25, %v8191_v63 }
 0xf08   : > { %v4813_v33 = vadd.f32 %v4784_v43, %v4677_v12  ;;  %v4810_v21 = vadd.f32 %v4776_v11, %v4659_v31  ;;  %4898 = vmax.xlane.f32.xlu1 %v4897_v4  ;;  %v4891_v51 = vsel %vm1337_vm0, %v9314_v62, -inf  ;;  %v4856_v38 = vsel %vm4824_vm5, %v4808_v26, %v4840_v59 }
 0xf09   : > { %4892 = vmax.xlane.f32.xlu0 %v4891_v51  ;;  %v9321_v6 = vsel %vm8210_vm12, %v4856_v38, -1e+30  ;;  %v4859_v61 = vsel %vm4827_vm3, %v4811_v44, %v4843_v18  ;;  %v4764_v38 = vcombine.high %v4760_v58, %v4760_v58 }
 0xf0a   : > { %vm4829_vm6 = vcmp.gt.f32.partialorder %v4813_v33, 0.0  ;;  %v4845_v17 = vmul.f32 0.2, %v4813_v33  ;;  %vm4826_vm7 = vcmp.gt.f32.partialorder %v4810_v21, 0.0  ;;  %v4842_v12 = vmul.f32 0.2, %v4810_v21 }
 0xf0b   : > { %v4688_v31 = vpop.permute.xlu0 %4687  ;;  %v4670_v11 = vpop.permute.xlu1 %4669  ;;  %v4894_v9 = vsel %vm1337_vm0, %v9321_v6, -inf  ;;  %v9328_v59 = vsel %vm8179_vm4, %v4859_v61, -1e+30  ;;  %v4796_v58 = vrot.slane %v4764_v38, %v8191_v63 }
 0xf0c   : > { %v4815_v26 = vadd.f32 %v4788_v32, %v4688_v31  ;;  %v4812_v30 = vadd.f32 %v4780_v27, %v4670_v11  ;;  %v4903_v4 = vsel %vm1337_vm0, %v9328_v59, -inf  ;;  %v4858_v18 = vsel %vm4826_vm7, %v4810_v21, %v4842_v12 }
 0xf0d   : > { %4895 = vmax.xlane.f32.xlu0 %v4894_v9  ;;  %4904 = vmax.xlane.f32.xlu1 %v4903_v4  ;;  %v9335_v44 = vsel %vm8210_vm12, %v4858_v18, -1e+30  ;;  %v4861_v51 = vsel %vm4829_vm6, %v4813_v33, %v4845_v17 }
 0xf0e   : > { %vm4831_vm8 = vcmp.gt.f32.partialorder %v4815_v26, 0.0  ;;  %v4847_v61 = vmul.f32 0.2, %v4815_v26  ;;  %vm4828_vm9 = vcmp.gt.f32.partialorder %v4812_v30, 0.0  ;;  %v4844_v31 = vmul.f32 0.2, %v4812_v30 }
 0xf0f   : > { %v4699_v27 = vpop.permute.xlu0 %4698  ;;  %v4681_v11 = vpop.permute.xlu1 %4680  ;;  %v4900_v21 = vsel %vm1337_vm0, %v9335_v44, -inf  ;;  %v9342_v12 = vsel %vm8179_vm4, %v4861_v51, -1e+30 }
 0xf10   : > { %v4817_v25 = vadd.f32 %v4792_v41, %v4699_v27  ;;  %v4814_v9 = vadd.f32 %v4784_v43, %v4681_v11  ;;  %v4909_v4 = vsel %vm1337_vm0, %v9342_v12, -inf  ;;  %v4860_v33 = vsel %vm4828_vm9, %v4812_v30, %v4844_v31 }
 0xf11   : > { %4901 = vmax.xlane.f32.xlu0 %v4900_v21  ;;  %4910 = vmax.xlane.f32.xlu1 %v4909_v4  ;;  %v9349_v17 = vsel %vm8210_vm12, %v4860_v33, -1e+30  ;;  %v4863_v18 = vsel %vm4831_vm8, %v4815_v26, %v4847_v61 }
 0xf12   : > { %vm4833_vm10 = vcmp.gt.f32.partialorder %v4817_v25, 0.0  ;;  %v4849_v13 = vmul.f32 0.2, %v4817_v25  ;;  %vm4830_vm11 = vcmp.gt.f32.partialorder %v4814_v9, 0.0  ;;  %v4846_v51 = vmul.f32 0.2, %v4814_v9 }
 0xf13   : > { %v4710_v27 = vpop.permute.xlu0 %4709  ;;  %v4692_v43 = vpop.permute.xlu1 %4691  ;;  %v4906_v11 = vsel %vm1337_vm0, %v9349_v17, -inf  ;;  %v9356_v30 = vsel %vm8179_vm4, %v4863_v18, -1e+30 }
 0xf14   : > { %v4819_v38 = vadd.f32 %v4796_v58, %v4710_v27  ;;  %v4816_v31 = vadd.f32 %v4788_v32, %v4692_v43  ;;  %v4915_v21 = vsel %vm1337_vm0, %v9356_v30, -inf  ;;  %v4862_v4 = vsel %vm4830_vm11, %v4814_v9, %v4846_v51 }
 0xf15   : > { %4907 = vmax.xlane.f32.xlu0 %v4906_v11  ;;  %4916 = vmax.xlane.f32.xlu1 %v4915_v21  ;;  %v9362_v26 = vsel %vm8210_vm12, %v4862_v4, -1e+30  ;;  %v4865_v61 = vsel %vm4833_vm10, %v4817_v25, %v4849_v13 }
 0xf16   : > { %vm4835_vm13 = vcmp.gt.f32.partialorder %v4819_v38, 0.0  ;;  %v4851_v33 = vmul.f32 0.2, %v4819_v38  ;;  %vm4832_vm14 = vcmp.gt.f32.partialorder %v4816_v31, 0.0  ;;  %v4848_v29 = vmul.f32 0.2, %v4816_v31 }
 0xf17   : > { %v4703_v49 = vpop.permute.xlu1 %4702  ;;  %v4912_v18 = vsel %vm1337_vm0, %v9362_v26, -inf  ;;  %v9368_v32 = vsel %vm8179_vm4, %v4865_v61, -1e+30 }
 0xf18   : > { %v4818_v9 = vadd.f32 %v4792_v41, %v4703_v49  ;;  %v4921_v51 = vsel %vm1337_vm0, %v9368_v32, -inf  ;;  %v4864_v27 = vsel %vm4832_vm14, %v4816_v31, %v4848_v29  ;;  %v4867_v43 = vsel %vm4835_vm13, %v4819_v38, %v4851_v33 }
 0xf19   : > { %4913 = vmax.xlane.f32.xlu0 %v4912_v18  ;;  %4922 = vmax.xlane.f32.xlu1 %v4921_v51  ;;  %v9374_v13 = vsel %vm8210_vm12, %v4864_v27, -1e+30  ;;  %v9378_v25 = vsel %vm8179_vm4, %v4867_v43, -1e+30 }
 0xf1a   : > { %vm4834_vm15 = vcmp.gt.f32.partialorder %v4818_v9, 0.0  ;;  %v4850_v11 = vmul.f32 0.2, %v4818_v9  ;;  %v4918_v49 = vsel %vm1337_vm0, %v9374_v13, -inf  ;;  %v4927_v41 = vsel %vm1337_vm0, %v9378_v25, -inf }
 0xf1b   : > { %v4714_v29 = vpop.permute.xlu1 %4713 }
 0xf1c   : > { %v4820_v38 = vadd.f32 %v4796_v58, %v4714_v29  ;;  %v4866_v31 = vsel %vm4834_vm15, %v4818_v9, %v4850_v11 }
 0xf1d   : > { %4919 = vmax.xlane.f32.xlu0 %v4918_v49  ;;  %4928 = vmax.xlane.f32.xlu1 %v4927_v41  ;;  %v9386_v21 = vsel %vm8210_vm12, %v4866_v31, -1e+30 }
 0xf1e   : > { %vm4836_vm1 = vcmp.gt.f32.partialorder %v4820_v38, 0.0  ;;  %v4852_v15 = vmul.f32 0.2, %v4820_v38  ;;  %v4924_v4 = vsel %vm1337_vm0, %v9386_v21, -inf }
 0xf20   : > { %v4868_v61 = vsel %vm4836_vm1, %v4820_v38, %v4852_v15 }
 0xf21   : > { %4925 = vmax.xlane.f32.xlu0 %v4924_v4  ;;  %v9392_v33 = vsel %vm8210_vm12, %v4868_v61, -1e+30 }
 0xf22   : > { %v4930_v58 = vsel %vm1337_vm0, %v9392_v33, -inf }
 0xf25   : > { %4931 = vmax.xlane.f32.xlu0 %v4930_v58 }
 0xf91   : > { %v4890_v18 = vpop.xlane.xlu1 %4889  ;;  %v4887_v9 = vpop.xlane.xlu0 %4886 }
 0xf92   : > { %v4934_v51 = vsub.f32 %v9293_v34, %v4890_v18  ;;  %v4933_v27 = vsub.f32 %v9297_v53, %v4887_v9 }
 0xf94   : > { %v4951_v43 = vmul.f32 1.442695, %v4934_v51  ;;  %v4949_v11 = vmul.f32 1.442695, %v4933_v27 }
 0xf95   : > { %v4899_v49 = vpop.xlane.xlu1 %4898 }
 0xf96   : > { %7256 = vpow2.f32 %v4951_v43  ;;  %v4937_v41 = vsub.f32 %v9307_v16, %v4899_v49  ;;  %v4893_v29 = vpop.xlane.xlu0 %4892 }
 0xf97   : > { %7258 = vpow2.f32 %v4949_v11  ;;  %v4935_v1 = vsub.f32 %v9314_v62, %v4893_v29 }
 0xf98   : > { %v4957_v38 = vmul.f32 1.442695, %v4937_v41 }
 0xf99   : > { %v4953_v31 = vmul.f32 1.442695, %v4935_v1 }
 0xf9a   : > { %7260 = vpow2.f32 %v4957_v38  ;;  %v4896_v15 = vpop.xlane.xlu0 %4895  ;;  %v4905_v4 = vpop.xlane.xlu1 %4904 }
 0xf9b   : > { %7262 = vpow2.f32 %v4953_v31  ;;  %v4936_v34 = vsub.f32 %v9321_v6, %v4896_v15  ;;  %v4939_v53 = vsub.f32 %v9328_v59, %v4905_v4 }
 0xf9d   : > { %v4955_v61 = vmul.f32 1.442695, %v4936_v34  ;;  %v4961_v58 = vmul.f32 1.442695, %v4939_v53 }
 0xf9e   : > { %v4902_v18 = vpop.xlane.xlu0 %4901  ;;  %v4911_v9 = vpop.xlane.xlu1 %4910 }
 0xf9f   : > { %7264 = vpow2.f32 %v4955_v61  ;;  %v4938_v16 = vsub.f32 %v9335_v44, %v4902_v18  ;;  %v4941_v51 = vsub.f32 %v9342_v12, %v4911_v9 }
 0xfa0   : > { %v7257_v62 = vpop.eup %7256  ;;  %7266 = vpow2.f32 %v4961_v58 }
 0xfa1   : > { %v7259_v27 = vpop.eup %7258  ;;  %v4959_v43 = vmul.f32 1.442695, %v4938_v16  ;;  %v4965_v11 = vmul.f32 1.442695, %v4941_v51  ;;  %v9405_v49 = vmul.f32 %v7257_v62, %v8217_v45 }
 0xfa2   : > { %v4908_v6 = vpop.xlane.xlu0 %4907  ;;  %v4917_v41 = vpop.xlane.xlu1 %4916  ;;  %v9408_v59 = vmul.f32 %v7259_v27, %v9917_v5 }
 0xfa3   : > { %7268 = vpow2.f32 %v4959_v43  ;;  %v4940_v29 = vsub.f32 %v9349_v17, %v4908_v6  ;;  %v4943_v44 = vsub.f32 %v9356_v30, %v4917_v41  ;;  %v5000_v12 = vsel %vm1337_vm0, %v9405_v49, 0.0 }
 0xfa4   : > { %v7261_v1 = vpop.eup %7260  ;;  %7270 = vpow2.f32 %v4965_v11  ;;  %5001 = vadd.xlane.f32.xlu0 %v5000_v12  ;;  %v4997_v38 = vsel %vm1337_vm0, %v9408_v59, 0.0 }
 0xfa5   : > { %v7263_v31 = vpop.eup %7262  ;;  %v4963_v15 = vmul.f32 1.442695, %v4940_v29  ;;  %v4969_v4 = vmul.f32 1.442695, %v4943_v44  ;;  %4998 = vadd.xlane.f32.xlu1 %v4997_v38  ;;  %v9424_v18 = vmul.f32 %v7261_v1, %v9917_v5 }
 0xfa6   : > { %v4914_v34 = vpop.xlane.xlu0 %4913  ;;  %v4923_v53 = vpop.xlane.xlu1 %4922  ;;  %v9417_v61 = vmul.f32 %v7263_v31, %v9917_v5 }
 0xfa7   : > { %7272 = vpow2.f32 %v4963_v15  ;;  %v4942_v17 = vsub.f32 %v9362_v26, %v4914_v34  ;;  %v4945_v30 = vsub.f32 %v9368_v32, %v4923_v53  ;;  %v5009_v41 = vsel %vm1337_vm0, %v9424_v18, 0.0 }
 0xfa8   : > { %7274 = vpow2.f32 %v4969_v4  ;;  %v5003_v58 = vsel %vm1337_vm0, %v9417_v61, 0.0 }
 0xfa9   : > { %v7265_v9 = vpop.eup %7264  ;;  %v4967_v16 = vmul.f32 1.442695, %v4942_v17  ;;  %v4973_v51 = vmul.f32 1.442695, %v4945_v30  ;;  %5004 = vadd.xlane.f32.xlu1 %v5003_v58 }
 0xfaa   : > { %v7267_v62 = vpop.eup %7266  ;;  %v4920_v27 = vpop.xlane.xlu0 %4919  ;;  %v9427_v11 = vmul.f32 %v7265_v9, %v8217_v45 }
 0xfab   : > { %v4929_v43 = vpop.xlane.xlu1 %4928  ;;  %7276 = vpow2.f32 %v4967_v16  ;;  %v4944_v26 = vsub.f32 %v9374_v13, %v4920_v27  ;;  %v9436_v29 = vmul.f32 %v7267_v62, %v9917_v5 }
 0xfac   : > { %v4947_v32 = vsub.f32 %v9378_v25, %v4929_v43  ;;  %7278 = vpow2.f32 %v4973_v51  ;;  %v5006_v6 = vsel %vm1337_vm0, %v9427_v11, 0.0 }
 0xfad   : > { %v7269_v44 = vpop.eup %7268  ;;  %v4971_v12 = vmul.f32 1.442695, %v4944_v26  ;;  %5007 = vadd.xlane.f32.xlu0 %v5006_v6  ;;  %5010 = vadd.xlane.f32.xlu1 %v5009_v41  ;;  %v5015_v4 = vsel %vm1337_vm0, %v9436_v29, 0.0 }
 0xfae   : > { %v4977_v1 = vmul.f32 1.442695, %v4947_v32  ;;  %v7271_v38 = vpop.eup %7270  ;;  %v4926_v31 = vpop.xlane.xlu0 %4925  ;;  %v9439_v13 = vmul.f32 %v7269_v44, %v8217_v45 }
 0xfaf   : > { %7280 = vpow2.f32 %v4971_v12  ;;  %v4946_v25 = vsub.f32 %v9386_v21, %v4926_v31  ;;  %v9447_v34 = vmul.f32 %v7271_v38, %v9917_v5 }
 0xfb0   : > { %7282 = vpow2.f32 %v4977_v1  ;;  %v5012_v15 = vsel %vm1337_vm0, %v9439_v13, 0.0 }
 0xfb1   : > { %v7273_v53 = vpop.eup %7272  ;;  %v4975_v17 = vmul.f32 1.442695, %v4946_v25  ;;  %5013 = vadd.xlane.f32.xlu0 %v5012_v15  ;;  %5016 = vadd.xlane.f32.xlu1 %v5015_v4  ;;  %v5021_v51 = vsel %vm1337_vm0, %v9447_v34, 0.0 }
 0xfb2   : > { %v7275_v30 = vpop.eup %7274  ;;  %v4932_v58 = vpop.xlane.xlu0 %4931  ;;  %v9450_v9 = vmul.f32 %v7273_v53, %v8217_v45 }
 0xfb3   : > { %7284 = vpow2.f32 %v4975_v17  ;;  %v4948_v21 = vsub.f32 %v9392_v33, %v4932_v58  ;;  %v9458_v62 = vmul.f32 %v7275_v30, %v9917_v5 }
 0xfb4   : > { %v5018_v16 = vsel %vm1337_vm0, %v9450_v9, 0.0 }
 0xfb5   : > { %v7277_v27 = vpop.eup %7276  ;;  %v4979_v43 = vmul.f32 1.442695, %v4948_v21  ;;  %5019 = vadd.xlane.f32.xlu0 %v5018_v16  ;;  %5022 = vadd.xlane.f32.xlu1 %v5021_v51  ;;  %v5027_v6 = vsel %vm1337_vm0, %v9458_v62, 0.0 }
 0xfb6   : > { %v7279_v26 = vpop.eup %7278  ;;  %v9461_v32 = vmul.f32 %v7277_v27, %v8217_v45 }
 0xfb7   : > { %7286 = vpow2.f32 %v4979_v43  ;;  %v9468_v41 = vmul.f32 %v7279_v26, %v9917_v5 }
 0xfb8   : > { %v5024_v33 = vsel %vm1337_vm0, %v9461_v32, 0.0 }
 0xfb9   : > { %v7281_v44 = vpop.eup %7280  ;;  %5025 = vadd.xlane.f32.xlu0 %v5024_v33  ;;  %5028 = vadd.xlane.f32.xlu1 %v5027_v6  ;;  %v5033_v31 = vsel %vm1337_vm0, %v9468_v41, 0.0 }
 0xfba   : > { %v7283_v12 = vpop.eup %7282  ;;  %v9471_v1 = vmul.f32 %v7281_v44, %v8217_v45 }
 0xfbb   : > { %v9478_v25 = vmul.f32 %v7283_v12, %v9917_v5 }
 0xfbc   : > { %v5030_v38 = vsel %vm1337_vm0, %v9471_v1, 0.0 }
 0xfbd   : > { %v7285_v15 = vpop.eup %7284  ;;  %5031 = vadd.xlane.f32.xlu0 %v5030_v38  ;;  %5034 = vadd.xlane.f32.xlu1 %v5033_v31  ;;  %v5039_v17 = vsel %vm1337_vm0, %v9478_v25, 0.0  ;;  %v9955_v31 = vpack.c.bf16 %v9183_v20, %v9165_v55 }
 0xfbe   : > { %v9481_v4 = vmul.f32 %v7285_v15, %v8217_v45 }
 0xfc0   : > { %v5036_v53 = vsel %vm1337_vm0, %v9481_v4, 0.0 }
 0xfc1   : > { %v7287_v30 = vpop.eup %7286  ;;  %5037 = vadd.xlane.f32.xlu0 %v5036_v53  ;;  %5040 = vadd.xlane.f32.xlu1 %v5039_v17  ;;  %v9956_v53 = vpack.c.bf16 %v9191_v39, %v9176_v35  ;;  %v9957_v35 = vpack.c.bf16 %v9186_v47, %v9168_v2 }
 0xfc2   : > { %v9488_v58 = vmul.f32 %v7287_v30, %v8217_v45 }
 0xfc4   : > { %v5042_v5 = vsel %vm1337_vm0, %v9488_v58, 0.0 }
 0xfc5   : > { %5043 = vadd.xlane.f32.xlu0 %v5042_v5 }
0x1031   : > { %v5002_v21 = vpop.xlane.xlu0 %5001 }
0x1032   : > { %7288 = vrcp.f32 %v5002_v21  ;;  %v4999_v16 = vpop.xlane.xlu1 %4998  ;;  %vm5046_vm12 = vcmp.gt.f32.partialorder %v5002_v21, 0.0 }
0x1033   : > { %7290 = vrcp.f32 %v4999_v16  ;;  %vm5045_vm4 = vcmp.gt.f32.partialorder %v4999_v16, 0.0 }
0x1036   : > { %v5005_v51 = vpop.xlane.xlu1 %5004 }
0x1037   : > { %7292 = vrcp.f32 %v5005_v51  ;;  %vm5047_vm2 = vcmp.gt.f32.partialorder %v5005_v51, 0.0 }
0x103a   : > { %v5008_v27 = vpop.xlane.xlu0 %5007  ;;  %v5011_v26 = vpop.xlane.xlu1 %5010 }
0x103b   : > { %7294 = vrcp.f32 %v5008_v27  ;;  %vm5048_vm3 = vcmp.gt.f32.partialorder %v5008_v27, 0.0  ;;  %vm5049_vm5 = vcmp.gt.f32.partialorder %v5011_v26, 0.0 }
0x103c   : > { %v7289_v43 = vpop.eup %7288  ;;  %7296 = vrcp.f32 %v5011_v26 }
0x103d   : > { %v7291_v33 = vpop.eup %7290  ;;  %v5094_v44 = vsel %vm5046_vm12, %v7289_v43, 0.0 }
0x103e   : > { %v5093_v6 = vsel %vm5045_vm4, %v7291_v33, 0.0  ;;  %v5014_v12 = vpop.xlane.xlu0 %5013  ;;  %v5110_v15 = vmul.f32 %v5094_v44, %v9405_v49  ;;  %v5017_v17 = vpop.xlane.xlu1 %5016 }
0x103f   : > { %v5109_v45 = vmul.f32 %v5093_v6, %v9408_v59  ;;  %7298 = vrcp.f32 %v5014_v12  ;;  %vm5050_vm6 = vcmp.gt.f32.partialorder %v5014_v12, 0.0  ;;  %vm5051_vm7 = vcmp.gt.f32.partialorder %v5017_v17, 0.0 }
0x1040   : > { %7300 = vrcp.f32 %v5017_v17 }
0x1041   : > { %v7293_v38 = vpop.eup %7292  ;;  %6545 = vmatmul.mubr.msk.f32.vlgmr.msra.gmra.mrb[18].mxu1 %vm1337_vm0, %v5109_v45 }
0x1042   : > { %6746 = vmatpush1.bf16.msra.mxu1 %v9955_v31  ;;  %5233 = vmatprep.mubr.f32.mxu1 %v9886_v57  ;;  %v5095_v59 = vsel %vm5047_vm2, %v7293_v38, 0.0  ;;  %v5020_v5 = vpop.xlane.xlu0 %5019  ;;  %v5023_v16 = vpop.xlane.xlu1 %5022  ;;  %vm5884_vm2 = vcmask 123904  }
0x1043   : > { %6748 = vmatprep.subr.bf16.mxu1 %v9956_v53  ;;  %v5111_v55 = vmul.f32 %v5095_v59, %v9417_v61  ;;  %7302 = vrcp.f32 %v5020_v5  ;;  %v9958_v61 = vpack.c.bf16 %v9199_v46, %v9179_v24  ;;  %v9959_v24 = vpack.c.bf16 %v9204_v36, %v9171_v14 }
0x1044   : > { %7304 = vrcp.f32 %v5023_v16  ;;  %vm5052_vm8 = vcmp.gt.f32.partialorder %v5020_v5, 0.0  ;;  %vm5053_vm9 = vcmp.gt.f32.partialorder %v5023_v16, 0.0 }
0x1045   : > { %v7295_v30 = vpop.eup %7294  ;;  %6546 = vmatmul.mubr.msk.f32.gmra.mrb[20].mxu1 %vm1337_vm0, %v5110_v15 }
0x1046   : > { %5310 = vmatprep.mubr.f32.mxu1 %v9886_v57  ;;  %v5096_v20 = vsel %vm5048_vm3, %v7295_v30, 0.0  ;;  %v7297_v49 = vpop.eup %7296  ;;  %v5026_v27 = vpop.xlane.xlu0 %5025  ;;  %vm7666_vm3 = vmmov 0  }
0x1047   : > { %v5112_v39 = vmul.f32 %v5096_v20, %v9427_v11  ;;  %v5097_v21 = vsel %vm5049_vm5, %v7297_v49, 0.0  ;;  %7306 = vrcp.f32 %v5026_v27  ;;  %v5029_v26 = vpop.xlane.xlu1 %5028  ;;  %vm5054_vm10 = vcmp.gt.f32.partialorder %v5026_v27, 0.0 }
0x1048   : > { %v5113_v2 = vmul.f32 %v5097_v21, %v9424_v18  ;;  %v9960_v18 = vpack.c.bf16 %v9212_v37, %v9209_v19  ;;  %7308 = vrcp.f32 %v5029_v26  ;;  %v9961_v19 = vpack.c.bf16 %v9220_v42, %v9215_v3 }
0x1049   : > { %6547 = vmatmul.mubr.msk.f32.vlgmr.msra.gmra.mrb[18].mxu1 %vm1337_vm0, %v5111_v55  ;;  %v7299_v51 = vpop.eup %7298  ;;  %vm5055_vm11 = vcmp.gt.f32.partialorder %v5029_v26, 0.0  ;;  %vm6267_vm5 = vcmask 58368  }
0x104a   : > { %6750 = vmatpush1.bf16.msra.mxu1 %v9957_v35  ;;  %5316 = vmatprep.mubr.f32.mxu1 %v9886_v57  ;;  %v5098_v47 = vsel %vm5050_vm6, %v7299_v51, 0.0  ;;  %v7301_v11 = vpop.eup %7300  ;;  %v5032_v6 = vpop.xlane.xlu0 %5031 }
0x104b   : > { %6752 = vmatprep.subr.bf16.mxu1 %v9958_v61  ;;  %v5114_v46 = vmul.f32 %v5098_v47, %v9439_v13  ;;  %v5099_v43 = vsel %vm5051_vm7, %v7301_v11, 0.0  ;;  %7310 = vrcp.f32 %v5032_v6  ;;  %v5035_v44 = vpop.xlane.xlu1 %5034  ;;  %vm5056_vm13 = vcmp.gt.f32.partialorder %v5032_v6, 0.0 }
0x104c   : > { %v5115_v14 = vmul.f32 %v5099_v43, %v9436_v29  ;;  %v9962_v29 = vpack.c.bf16 %v9226_v56, %v9223_v7  ;;  %7312 = vrcp.f32 %v5035_v44  ;;  %v9963_v7 = vpack.c.bf16 %v9234_v54, %v9231_v8 }
0x104d   : > { %6548 = vmatmul.mubr.msk.f32.gmra.mrb[20].mxu1 %vm1337_vm0, %v5112_v39  ;;  %v7303_v33 = vpop.eup %7302  ;;  %vm5057_vm14 = vcmp.gt.f32.partialorder %v5035_v44, 0.0  ;;  %v7110_v44 = vld [vmem:[%s9970_s7 + $0x58] sm:$0xff]  }
0x104e   : > { %5393 = vmatprep.mubr.f32.mxu1 %v9886_v57  ;;  %v5100_v36 = vsel %vm5052_vm8, %v7303_v33, 0.0  ;;  %v7305_v13 = vpop.eup %7304  ;;  %v5038_v38 = vpop.xlane.xlu0 %5037  ;;  %v9969_v33 = vld [vmem:[#allocation34_spill] sm:$0xff] }
0x104f   : > { %v5116_v37 = vmul.f32 %v5100_v36, %v9450_v9  ;;  %v5101_v45 = vsel %vm5053_vm9, %v7305_v13, 0.0  ;;  %7314 = vrcp.f32 %v5038_v38  ;;  %v5041_v15 = vpop.xlane.xlu1 %5040  ;;  %vm5058_vm15 = vcmp.gt.f32.partialorder %v5038_v38, 0.0  ;;  %v7104_v13 = vld [vmem:[%s9970_s7 + $0x40] sm:$0xff]   ;;  %v7114_v38 = vld [vmem:[%s9970_s7 + $0x68] sm:$0xff]  }
0x1050   : > { %v5117_v3 = vmul.f32 %v5101_v45, %v9447_v34  ;;  %v9964_v34 = vpack.c.bf16 %v9244_v22, %v9237_v28  ;;  %7316 = vrcp.f32 %v5041_v15  ;;  %v9965_v28 = vpack.c.bf16 %v9252_v60, %v9247_v40  ;;  %v7109_v45 = vld [vmem:[%s9970_s7 + $0x10] sm:$0xff]  }
0x1051   : > { %6549 = vmatmul.mubr.msk.f32.vlgmr.msra.gmra.mrb[18].mxu1 %vm1337_vm0, %v5113_v2  ;;  %v7307_v12 = vpop.eup %7306  ;;  %vm5059_vm1 = vcmp.gt.f32.partialorder %v5041_v15, 0.0  ;;  %v7120_v15 = vld [vmem:[%s9971_s23] sm:$0xff]  }
0x1052   : > { %6754 = vmatpush1.bf16.msra.mxu1 %v9959_v24  ;;  %5399 = vmatprep.mubr.f32.mxu1 %v9886_v57  ;;  %v5102_v42 = vsel %vm5054_vm10, %v7307_v12, 0.0  ;;  %v7309_v9 = vpop.eup %7308  ;;  %v5044_v59 = vpop.xlane.xlu0 %5043  ;;  %v7111_v12 = vld [vmem:[%s9970_s7 + $0x18] sm:$0xff]  }
0x1053   : > { %6756 = vmatprep.subr.bf16.mxu1 %v9960_v18  ;;  %v5118_v56 = vmul.f32 %v5102_v42, %v9461_v32  ;;  %v5103_v31 = vsel %vm5055_vm11, %v7309_v9, 0.0  ;;  %7318 = vrcp.f32 %v5044_v59  ;;  %vm5060_vm4 = vcmp.gt.f32.partialorder %v5044_v59, 0.0  ;;  %v7113_v42 = vld [vmem:[%s9970_s7 + $0x20] sm:$0xff]   ;;  %v7115_v9 = vld [vmem:[%s9970_s7 + $0x28] sm:$0xff]  }
0x1054   : > { %v5119_v8 = vmul.f32 %v5103_v31, %v9458_v62  ;;  %v9966_v62 = vpack.c.bf16 %v9258_v50, %v9255_v23  ;;  %v7119_v31 = vld [vmem:[%s9970_s7 + $0x38] sm:$0xff]   ;;  %v7124_v59 = vld [vmem:[%s9971_s23 + $0x20] sm:$0xff]  }
0x1055   : > { %6550 = vmatmul.mubr.msk.f32.gmra.mrb[20].mxu1 %vm1337_vm0, %v5114_v46  ;;  %v7311_v53 = vpop.eup %7310 }
0x1056   : > { %5476 = vmatprep.mubr.f32.mxu1 %v9886_v57  ;;  %v5104_v54 = vsel %vm5056_vm13, %v7311_v53, 0.0  ;;  %v7313_v32 = vpop.eup %7312  ;;  %v7121_v53 = vld [vmem:[%s9971_s23 + $0x8] sm:$0xff]  }
0x1057   : > { %v5120_v22 = vmul.f32 %v5104_v54, %v9471_v1  ;;  %v5105_v17 = vsel %vm5057_vm14, %v7313_v32, 0.0  ;;  %v9967_v1 = vpack.c.bf16 %v9266_v52, %v9263_v10  ;;  %v6562_v52 = vld [vmem:[#allocation13] ss:$0 sm:$0xff]  ;;  %v7123_v54 = vld [vmem:[%s9971_s23 + $0x18] sm:$0xff]  }
0x1058   : > { %v5121_v55 = vmul.f32 %v5105_v17, %v9468_v41 }
0x1059   : > { %6551 = vmatmul.mubr.msk.f32.vlgmr.msra.gmra.mrb[18].mxu1 %vm1337_vm0, %v5115_v14  ;;  %v7315_v30 = vpop.eup %7314 }
0x105a   : > { %6758 = vmatpush1.bf16.msra.mxu1 %v9961_v19  ;;  %5482 = vmatprep.mubr.f32.mxu1 %v9886_v57  ;;  %v5106_v40 = vsel %vm5058_vm15, %v7315_v30, 0.0  ;;  %v7317_v60 = vpop.eup %7316  ;;  %v7105_v19 = vld [vmem:[%s9970_s7] sm:$0xff]  }
0x105b   : > { %6760 = vmatprep.subr.bf16.mxu1 %v9962_v29  ;;  %v5122_v23 = vmul.f32 %v5106_v40, %v9481_v4  ;;  %v5107_v50 = vsel %vm5059_vm1, %v7317_v60, 0.0  ;;  %v9968_v4 = vld [vmem:[#allocation32_spill] sm:$0xff]  ;;  %v7108_v29 = vld [vmem:[%s9970_s7 + $0x50] sm:$0xff]  }
0x105c   : > { %v5123_v41 = vmul.f32 %v5107_v50, %v9478_v25  ;;  %vm5881_vm12 = vcmp.eq.s32.totalorder %v9968_v4, %v6562_v52  ;;  %v6561_v25 = vld [vmem:[%s9897_s20 + $0x4] sm:$0x3]  ;;  %v7127_v50 = vld [vmem:[%s9971_s23 + $0x38] sm:$0xff]   ;;  %v6581_v52 = vld [vmem:[#allocation17] ss:$0 sm:$0xff] }
0x105d   : > { %6552 = vmatmul.mubr.msk.f32.gmra.mrb[20].mxu1 %vm1337_vm0, %v5116_v37  ;;  %v7319_v20 = vpop.eup %7318  ;;  %v6563_v49 = vsel %vm5881_vm12, 1.0, %v9886_v57  ;;  %v5855_v39 = vrot.slane %v6561_v25, %v8191_v63  ;;  %v5859_v61 = vrot.slane %v6561_v25, %v8194_v0  ;;  %v7106_v37 = vld [vmem:[%s9970_s7 + $0x48] sm:$0xff]  }
0x105e   : > { %5559 = vmatprep.mubr.f32.mxu1 %v9886_v57  ;;  %v5108_v5 = vsel %vm5060_vm4, %v7319_v20, 0.0  ;;  %v5885_v35 = vsel %vm5884_vm2, %v6563_v49, 0.0 }
0x105f   : > { %v5124_v10 = vmul.f32 %v5108_v5, %v9488_v58  ;;  %5886 = vadd.xlane.f32.xlu1 %v5885_v35  ;;  %v6582_v35 = vld [vmem:[%s9972_s9] ss:$0 sm:$0xff] }
0x1061   : > { %6553 = vmatmul.mubr.msk.f32.vlgmr.msra.gmra.mrb[18].mxu1 %vm1337_vm0, %v5117_v3  ;;  %v7112_v3 = vld [vmem:[%s9970_s7 + $0x60] sm:$0xff]  }
0x1062   : > { %6762 = vmatpush1.bf16.msra.mxu1 %v9963_v7  ;;  %5565 = vmatprep.mubr.f32.mxu1 %v9886_v57  ;;  %v7116_v7 = vld [vmem:[%s9970_s7 + $0x70] sm:$0xff]  }
0x1063   : > { %6764 = vmatprep.subr.bf16.mxu1 %v9964_v34  ;;  %v7118_v34 = vld [vmem:[%s9970_s7 + $0x78] sm:$0xff]  }
0x1065   : > { %6554 = vmatmul.mubr.msk.f32.gmra.mrb[20].mxu1 %vm1337_vm0, %v5118_v56  ;;  %v7117_v56 = vld [vmem:[%s9970_s7 + $0x30] sm:$0xff]  }
0x1066   : > { %5642 = vmatprep.mubr.f32.mxu1 %v9886_v57 }
0x1069   : > { %6555 = vmatmul.mubr.msk.f32.vlgmr.msra.gmra.mrb[18].mxu1 %vm1337_vm0, %v5119_v8  ;;  %v7122_v8 = vld [vmem:[%s9971_s23 + $0x10] sm:$0xff]  }
0x106a   : > { %6766 = vmatpush1.bf16.msra.mxu1 %v9965_v28  ;;  %5648 = vmatprep.mubr.f32.mxu1 %v9886_v57 }
0x106b   : > { %6768 = vmatprep.subr.bf16.mxu1 %v9966_v62 }
0x106d   : > { %6556 = vmatmul.mubr.msk.f32.gmra.mrb[20].mxu1 %vm1337_vm0, %v5120_v22 }
0x106e   : > { %5725 = vmatprep.mubr.f32.mxu1 %v9886_v57 }
0x1071   : > { %6557 = vmatmul.mubr.msk.f32.vlgmr.msra.gmra.mrb[18].mxu1 %vm1337_vm0, %v5121_v55 }
0x1072   : > { %6770 = vmatpush1.bf16.msra.mxu1 %v9967_v1  ;;  %5731 = vmatprep.mubr.f32.mxu1 %v9886_v57  ;;  %v7125_v1 = vld [vmem:[%s9971_s23 + $0x28] sm:$0xff]  }
0x1073   : > { %6631 = vmatprep.subr.bf16.mxu1 %v9886_v57 }
0x1075   : > { %6558 = vmatmul.mubr.msk.f32.gmra.mrb[20].mxu1 %vm1337_vm0, %v5122_v23  ;;  %v7126_v23 = vld [vmem:[%s9971_s23 + $0x30] sm:$0xff]  }
0x1076   : > { %5808 = vmatprep.mubr.f32.mxu1 %v9886_v57 }
0x1079   : > { %6559 = vmatmul.mubr.msk.f32.vlgmr.msra.gmra.mrb[18].mxu1 %vm1337_vm0, %v5123_v41 }
0x107a   : > { %5814 = vmatprep.mubr.f32.mxu1 %v9886_v57  ;;  %6632 = vmatpush3.bf16.msra.mxu1 %v7120_v15 }
0x107b   : > { %6633 = vmatprep.subr.bf16.mxu1 %v9886_v57 }
0x107d   : > { %6560 = vmatmul.mubr.msk.f32.gmra.mrb[20].mxu1 %vm1337_vm0, %v5124_v10 }
0x107e   : > { %6634 = vmatpush3.bf16.msra.mxu1 %v7121_v53  ;;  %6647 = vmatprep.mubr.msk.bf16.mxu1 %vm7666_vm3, %v9886_v57 }
0x107f   : > { %6635 = vmatprep.subr.bf16.mxu1 %v9886_v57 }
0x1082   : > { %6636 = vmatpush3.bf16.msra.mxu1 %v7122_v8 }
0x1083   : > { %6637 = vmatprep.subr.bf16.mxu1 %v9886_v57 }
0x1086   : > { %6638 = vmatpush3.bf16.msra.mxu1 %v7123_v54 }
0x1087   : > { %6639 = vmatprep.subr.bf16.mxu1 %v9886_v57 }
0x108a   : > { %6640 = vmatpush3.bf16.msra.mxu1 %v7124_v59 }
0x108b   : > { %6641 = vmatprep.subr.bf16.mxu1 %v9886_v57 }
0x108e   : > { %6642 = vmatpush3.bf16.msra.mxu1 %v7125_v1 }
0x108f   : > { %6643 = vmatprep.subr.bf16.mxu1 %v9886_v57 }
0x1092   : > { %6644 = vmatpush3.bf16.msra.mxu1 %v7126_v23 }
0x1093   : > { %6645 = vmatprep.subr.bf16.mxu1 %v9886_v57  ;;  %v6583_v57 = vld [vmem:[%s9973_s16] ss:$0 sm:$0xff] }
0x1096   : > { %6646 = vmatpush3.bf16.msra.mxu1 %v7127_v50 }
0x10ec   : > { %v5887_v32 = vpop.xlane.xlu1 %5886 }
0x10ed   : > { %7320 = vrcp.f32 %v5887_v32 }
0x10f7   : > { %v7321_v28 = vpop.eup %7320 }
0x114c   : > { %v5810_v21 = vpop.f32.mrb[18].mxu1 }
0x114d   : > { %v5862_v58 = vadd.f32 %v5855_v39, %v5810_v21  ;;  %v5812_v16 = vpop.f32.mrb[19].mxu1 }
0x114e   : > { %v5863_v51 = vadd.f32 %v5859_v61, %v5812_v16 }
0x114f   : > { %v5866_v47 = vmax.f32 %v5862_v58, 0.0 }
0x1150   : > { %v5816_v2 = vpop.f32.mrb[20].mxu1  ;;  %v5867_v24 = vmax.f32 %v5863_v51, 0.0 }
0x1151   : > { %v5864_v27 = vadd.f32 %v5855_v39, %v5816_v2  ;;  %v5818_v11 = vpop.f32.mrb[21].mxu1  ;;  %v5870_v26 = vmul.f32 %v8219_v48, %v5866_v47 }
0x1152   : > { %v5865_v46 = vadd.f32 %v5859_v61, %v5818_v11  ;;  %v5871_v63 = vmul.f32 %v8219_v48, %v5867_v24  ;;  %v7107_v48 = vld [vmem:[%s9970_s7 + $0x8] sm:$0xff]  }
0x1153   : > { %v5868_v18 = vmax.f32 %v5864_v27, 0.0 }
0x1154   : > { %v5869_v43 = vmax.f32 %v5865_v46, 0.0 }
0x1155   : > { %v5872_v14 = vmul.f32 %v9969_v33, %v5868_v18 }
0x1156   : > { %v5873_v0 = vmul.f32 %v9969_v33, %v5869_v43 }
0x1157   : > { %v6773_v36 = vpack.c.bf16 %v5872_v14, %v5870_v26 }
0x1158   : > { %v6771_v6 = vpack.c.bf16 %v5873_v0, %v5871_v63 }
0x115a   : > { %6772 = vmatprep.subr.bf16.mxu0 %v6771_v6 }
0x115b   : > { %6774 = vmatpush1.bf16.msra.mxu0 %v6773_v36 }
0x115c   : > { %6600 = vmatprep.subr.bf16.mxu0 %v7104_v13 }
0x115e   : > { %6564 = vmatmul.mubr.msk.f32.vlgmr.msra.gmra.mrb[10].mxu0 %vm1337_vm0, %v6563_v49  ;;  %vm5962_vm0 = vcmp.gt.f32.partialorder %v5887_v32, 0.0 }
0x115f   : > { %6601 = vmatpush3.bf16.msra.mxu0 %v7105_v19  ;;  %v5965_v62 = vsel %vm5962_vm0, %v7321_v28, 0.0 }
0x1160   : > { %6602 = vmatprep.subr.bf16.mxu0 %v7106_v37 }
0x1163   : > { %6603 = vmatpush3.bf16.msra.mxu0 %v7107_v48 }
0x1164   : > { %6604 = vmatprep.subr.bf16.mxu0 %v7108_v29 }
0x1167   : > { %6605 = vmatpush3.bf16.msra.mxu0 %v7109_v45 }
0x1168   : > { %6606 = vmatprep.subr.bf16.mxu0 %v7110_v44 }
0x116b   : > { %6607 = vmatpush3.bf16.msra.mxu0 %v7111_v12 }
0x116c   : > { %6608 = vmatprep.subr.bf16.mxu0 %v7112_v3 }
0x116f   : > { %6609 = vmatpush3.bf16.msra.mxu0 %v7113_v42 }
0x1170   : > { %6610 = vmatprep.subr.bf16.mxu0 %v7114_v38 }
0x1173   : > { %6611 = vmatpush3.bf16.msra.mxu0 %v7115_v9 }
0x1174   : > { %6612 = vmatprep.subr.bf16.mxu0 %v7116_v7 }
0x1177   : > { %6613 = vmatpush3.bf16.msra.mxu0 %v7117_v56 }
0x1178   : > { %6614 = vmatprep.subr.bf16.mxu0 %v7118_v34 }
0x117b   : > { %6615 = vmatpush3.bf16.msra.mxu0 %v7119_v31 }
0x1231   : > { %v5957_v22 = vpop.f32.mrb[10].mxu0 }
0x1232   : > { %v5966_v17 = vmul.f32 %v5965_v62, %v5957_v22  ;;  %v5959_v30 = vpop.f32.mrb[11].mxu0 }
0x1233   : > { %v5967_v55 = vmul.f32 %v5965_v62, %v5959_v30 }
0x1234   : > { %v5968_v60 = vpack.c.bf16 %v5966_v17, %v5966_v17 }
0x1235   : > { %v5969_v40 = vpack.c.bf16 %v5967_v55, %v5967_v55 }
0x1237   : > { %6130 = vmatprep.mubr.bf16.mxu0 %v5969_v40 }
0x1238   : > { %6131 = vmatmul.mubr.bf16.vlgmr.msra.gmra.mrb[20].mxu0 %v5968_v60 }
0x130b   : > { %v6616_v20 = vpop.f32.mrb[20].mxu0 }
0x130c   : > { %v6617_v41 = vpop.f32.mrb[21].mxu0 }
0x130d   : > { %v6618_v5 = vadd.f32 %v6617_v41, %v6616_v20  ;;  %v6619_v10 = vpop.f32.mrb[22].mxu0 }
0x130e   : > { %v6620_v4 = vpop.f32.mrb[23].mxu0 }
0x130f   : > { %v6138_v49 = vmax.f32 %v6618_v5, 0.0 }
0x1311   : > { %v6146_v25 = vmul.f32 %v6581_v52, %v6138_v49 }
0x1313   : > { %v6154_v39 = vadd.f32 %v6582_v35, %v6146_v25 }
0x1315   : > { %v6155_v61 = vpack.c.bf16 %v6154_v39, %v6154_v39 }
0x1317   : > { %6648 = vmatmul.mubr.bf16.vlgmr.msra.gmra.mrb[24].mxu1 %v6155_v61 }
0x13ea   : > { %v6261_v21 = vpop.f32.mrb[24].mxu1 }
0x13eb   : > { %v6262_v58 = vadd.f32 %v6583_v57, %v6261_v21  ;;  %v6649_v16 = vpop.f32.mrb[25].mxu1 }
0x13ec   : > { %v6264_v51 = vpop.f32.mrb[26].mxu1 }
0x13ed   : > { %6268 = vst.msk [vmem:[#allocation19] sm:$0x3] %vm6267_vm5, %v6262_v58  ;;  %v6650_v2 = vpop.f32.mrb[27].mxu1 }
0x13ee PF: > { %p6934_p1 = scmp.eq.s32.totalorder %s7784_s1, 1  ;;  %s7667_s18 = smov [#allocation19]  }
0x13ef   : > { %s6276_s13 = sshll.u32 %s7667_s18, 4  ;;  %s6277_s13 = int_to_ptr.vmem [resolvable:$true] %s6276_s13 }
0x13f0   : > { %s7550_s0 = scalar_lea.vmem %s6277_s13, 32  ;;  %p7557_p6 = scmp.lt.s32.totalorder %s6277_s13, %s6277_s13 }
0x13f1   : > { %p7551_p4 = scmp.ne.s32.totalorder %s6277_s13, %s7550_s0  ;;  %p7558_p3 = scmp.lt.s32.totalorder %s7550_s0, %s7550_s0 }
0x13f3   : > { %p7552_p10 = pnand %p7551_p4, %p6934_p1  ;;  %p7559_p12 = por %p7558_p3, %p7557_p6 }
0x13f5   : > { %p7553_p13 = pneg %p7552_p10 }
0x13f7   : > { %p7560_p0 = pnand %p7559_p12, %p7553_p13 }
0x13f9   : > { %7563 = shalt.err (!%p7560_p0)
}
0x13fa   : > { %s9974_s24 = sld [smem:[#allocation72_spill]] }
0x1400   : > { %s7564_s17 = scalar_lea.hbm %s9974_s24, 32 }
0x1401   : > { %p7565_p5 = scmp.ne.s32.totalorder %s9974_s24, %s7564_s17  ;;  %p7570_p7 = scmp.lt.u32.totalorder %s7564_s17, %s9974_s24 }
0x1403   : > { %p7566_p8 = pnand %p7565_p5, %p6934_p1 }
0x1405   : > { %p7567_p11 = pneg %p7566_p8 }
0x1407   : > { %p7572_p2 = pnand %p7570_p7, %p7567_p11 }
0x1409   : > { %7575 = shalt.err (!%p7572_p2)
}
0x140a   : > { %6892 = dma.vmem_to_hbm [thread:$0]  (%p6934_p1), %s6277_s13, 32, %s9974_s24, [#allocation7]  }
0x140b   : > { %7619 = dma.done.wait (%p6934_p1), [#allocation7], 32  }
0x140c   : > { %7621 = vsyncadd (%p6934_p1), [#allocation7], 4294967264 }
0x140d PF: > { %p35_p9 = scmp.ge.s32.totalorder %s7937_s21, 4   ;;  %s9975_s27 = smov %s7628_s28 }
0x140e   : > { %s9976_s28 = smov %s7632_s29  ;;  %s9977_s29 = smov %s7949_s15 }
0x140f   : > { %s9978_s30 = smov %s7937_s21  ;;  %37 = sbr.rel (!%p35_p9) target bundleno = 26 (0x1a), region = 186 }
0x1416   :  { %6289 = vsyncpa [#allocation6], 1 }
0x1417   :  { %6291 = vsyncpa [#allocation6 + $0x1], 1 }
0x1418   :  { %6292 = vsyncpa [#allocation9], 1 }
0x1419   :  { %6294 = vsyncpa [#allocation9 + $0x1], 1 }
0x141a   :  { %6295 = vsyncpa [#allocation12], 1 }
0x141b   :  { %6296 = vsyncpa [#allocation15], 1 }
0x141c   :  { %6297 = vsyncpa [#allocation18], 1 }
0x141d   :  { %6298 = vsyncpa [#allocation7], 1 }
0x141e   :  { %6300 = vsyncpa [#allocation7 + $0x1], 1 }
0x141f   :  { %6301 = vsyncmov [#allocation4] }
0x1422   :  { %s6302_s1 = vpop.sfrf %6301 }
0x1423   :  { %p6596_p1 = scmp.ne.s32.totalorder %s6302_s1, 0 }
0x1425   :  { %6306 = shalt.err (%p6596_p1)  }

</bundles_post_ra>
